<compile_context>
chip_gen: v5e
topology: v5e:2x2
jax: 0.10.0
libtpu: 0.0.40
codegen_flags: <defaults>
</compile_context>

<pallas_src>
import functools

import jax
import jax.numpy as jnp
from jax import lax
from jax.experimental import pallas as pl
from jax.experimental.pallas import tpu as pltpu

EPS = 1e-5
LANE = 128   # channel padding granule (lane width)


def _round_up(v, m):
    return (v + m - 1) // m * m


def _vmem_limit_bytes():
    """~half of physical VMEM, clamped to [32 MiB, 64 MiB] (gen-aware)."""
    cap = 128 * 1024 * 1024
    try:
        info_fn = getattr(pltpu, "get_tpu_info", None)
        if info_fn is not None:
            cap = int(getattr(info_fn(), "vmem_capacity_bytes", cap))
    except Exception:
        pass
    return int(min(64 * 1024 * 1024, max(32 * 1024 * 1024, cap // 2)))


VMEM_LIMIT = _vmem_limit_bytes()


# --------------------------------------------------------------------------
# Pallas kernels
# --------------------------------------------------------------------------
def _partial_stats(acc_f32, cout_p):
    """Single-pass partial BN stats (sum, sum-of-squares) -> (1, 8, cout_p)."""
    ssum = jnp.sum(acc_f32, axis=0, keepdims=True)
    ssq = jnp.sum(acc_f32 * acc_f32, axis=0, keepdims=True)
    return jnp.concatenate(
        [ssum, ssq, jnp.zeros((6, cout_p), jnp.float32)], axis=0)[None]


def _conv1_extra_kernel(x_ref, w1_ref, we_ref,
                        y1_ref, y3_ref, s1_ref, s3_ref,
                        *, k, s, pad, H_out, W_out, Cin_p, Cout_p):
    """One image: fused conv3x3(stride s, pad) + shortcut conv1x1(stride s).

    Per-tap accumulated MXU matmuls (K = Cin_p each, no im2col concat).
    Emits un-normalized bf16 conv outputs + per-image partial BN statistics
    for both branches.
    """
    rows = H_out * W_out

    acc = None
    for dh in range(k):
        for dw in range(k):
            ph = (dh % s) * s + (dw % s)          # stride phase
            oh, ow = dh // s, dw // s             # offset inside the phase
            tap = x_ref[ph, oh:oh + H_out, ow:ow + W_out, :].reshape(rows, Cin_p)
            d = jnp.dot(tap, w1_ref[dh * k + dw],
                        preferred_element_type=jnp.float32)
            acc = d if acc is None else acc + d

    # Shortcut 1x1 conv (stride s, pad 0): its single tap sits at padded
    # offset (pad, pad) of the conv1-padded input.
    phe = (pad % s) * s + (pad % s)
    oe = pad // s
    tape = x_ref[phe, oe:oe + H_out, oe:oe + W_out, :].reshape(rows, Cin_p)
    acc_e = jnp.dot(tape, we_ref[...], preferred_element_type=jnp.float32)

    y1_ref[...] = acc.reshape(1, H_out, W_out, Cout_p).astype(jnp.bfloat16)
    y3_ref[...] = acc_e.reshape(1, H_out, W_out, Cout_p).astype(jnp.bfloat16)
    s1_ref[...] = _partial_stats(acc, Cout_p)
    s3_ref[...] = _partial_stats(acc_e, Cout_p)


def _conv2_kernel(x_ref, w_ref, y_ref, st_ref,
                  *, k, s, H_out, W_out, Cin_p, Cout_p):
    """One image: conv3x3 as k*k accumulated matmuls + partial BN stats."""
    rows = H_out * W_out
    acc = None
    for dh in range(k):
        for dw in range(k):
            ph = (dh % s) * s + (dw % s)
            oh, ow = dh // s, dw // s
            tap = x_ref[ph, oh:oh + H_out, ow:ow + W_out, :].reshape(rows, Cin_p)
            d = jnp.dot(tap, w_ref[dh * k + dw],
                        preferred_element_type=jnp.float32)
            acc = d if acc is None else acc + d
    y_ref[...] = acc.reshape(1, H_out, W_out, Cout_p).astype(jnp.bfloat16)
    st_ref[...] = _partial_stats(acc, Cout_p)


def _finalize_kernel(y2_ref, y3_ref, s2_ref, s3_ref, sh_ref, o_ref):
    """Fused BN2(y2) + BN_extra(y3) + residual add + ReLU (bf16 in, f32 out)."""
    y = (y2_ref[...].astype(jnp.float32) * s2_ref[...]
         + y3_ref[...].astype(jnp.float32) * s3_ref[...]
         + sh_ref[...])
    o_ref[...] = jnp.maximum(y, 0.0)


# --------------------------------------------------------------------------
# Wrapper-side helpers
# --------------------------------------------------------------------------
def _prep_conv_input(x, k, s, pad, cin_p):
    """Zero-pad, channel-pad, phase-split (for stride) and cast to bf16.

    Returns (x_ph, H_out, W_out) with x_ph of shape (N*s*s, Hq, Wq, cin_p),
    the s*s stride phases of each image stored contiguously.
    """
    N, H, W, C = x.shape
    H_out = (H + 2 * pad - k) // s + 1
    W_out = (W + 2 * pad - k) // s + 1
    Hq = (k - 1) // s + H_out
    Wq = (k - 1) // s + W_out
    pb = max(pad, s * Hq - H - pad)      # extra bottom/right zeros only make the
    pr = max(pad, s * Wq - W - pad)      # phase tensors rectangular; never read.
    xp = jnp.pad(x, ((0, 0), (pad, pb), (pad, pr), (0, cin_p - C)))
    phases = [xp[:, a::s, b::s, :][:, :Hq, :Wq, :]
              for a in range(s) for b in range(s)]
    x_ph = jnp.stack(phases, axis=1)                     # (N, s*s, Hq, Wq, cin_p)
    x_ph = x_ph.reshape(N * s * s, Hq, Wq, cin_p).astype(jnp.bfloat16)
    return x_ph, H_out, W_out


def _bn_scale_shift(stats, count, gamma, beta, Cout, Cout_p):
    """Reduce per-tile partial stats -> per-channel affine (scale, shift)."""
    ssum = jnp.sum(stats[:, 0, :], axis=0)
    ssq = jnp.sum(stats[:, 1, :], axis=0)
    mean = ssum / count
    var = jnp.maximum(ssq / count - mean * mean, 0.0)
    g = jnp.zeros((Cout_p,), jnp.float32).at[:Cout].set(gamma.astype(jnp.float32))
    b = jnp.zeros((Cout_p,), jnp.float32).at[:Cout].set(beta.astype(jnp.float32))
    scale = g * lax.rsqrt(var + EPS)
    shift = b - mean * scale
    return scale.reshape(1, 1, 1, Cout_p), shift.reshape(1, 1, 1, Cout_p)


def _pad_conv_weight(w_hwio, Cin_p, Cout_p):
    k = w_hwio.shape[0]
    Cin, Cout = w_hwio.shape[2], w_hwio.shape[3]
    w_p = jnp.zeros((k, k, Cin_p, Cout_p), jnp.float32)
    w_p = w_p.at[:, :, :Cin, :Cout].set(w_hwio.astype(jnp.float32))
    return w_p.reshape(k * k, Cin_p, Cout_p).astype(jnp.bfloat16)


def _stage1_conv1_extra(x_nhwc, w1, g1, be1, we, ge, bee, *, stride):
    """Fused conv1(3x3, stride, pad 1) + shortcut conv(1x1, stride, pad 0)."""
    k, pad, s = 3, 1, stride
    Cin, Cout = w1.shape[2], w1.shape[3]
    N, H, W, Cx = x_nhwc.shape
    assert Cin <= Cx
    Cin_p = _round_up(Cx, LANE)
    Cout_p = _round_up(Cout, LANE)

    x_ph, H_out, W_out = _prep_conv_input(x_nhwc, k, s, pad, Cin_p)
    P = s * s
    Hq, Wq = x_ph.shape[1], x_ph.shape[2]

    w1_mat = _pad_conv_weight(w1, Cin_p, Cout_p)                 # (9, Cin_p, Cout_p)
    we_p = jnp.zeros((Cin_p, Cout_p), jnp.float32)
    we_p = we_p.at[:Cin, :Cout].set(we.reshape(Cin, Cout).astype(jnp.float32))
    we_mat = we_p.astype(jnp.bfloat16)                           # (Cin_p, Cout_p)

    kernel = functools.partial(
        _conv1_extra_kernel, k=k, s=s, pad=pad, H_out=H_out, W_out=W_out,
        Cin_p=Cin_p, Cout_p=Cout_p)

    flops = 2 * N * H_out * W_out * (k * k + 1) * Cin_p * Cout_p
    bytes_accessed = (x_ph.size * 2 + w1_mat.size * 2 + we_mat.size * 2
                      + 2 * N * H_out * W_out * Cout_p * 2
                      + 2 * N * 8 * Cout_p * 4)

    y1, y3, st1, st3 = pl.pallas_call(
        kernel,
        grid=(N,),
        in_specs=[
            pl.BlockSpec((P, Hq, Wq, Cin_p), lambda n: (n, 0, 0, 0)),
            pl.BlockSpec((k * k, Cin_p, Cout_p), lambda n: (0, 0, 0)),
            pl.BlockSpec((Cin_p, Cout_p), lambda n: (0, 0)),
        ],
        out_specs=[
            pl.BlockSpec((1, H_out, W_out, Cout_p), lambda n: (n, 0, 0, 0)),
            pl.BlockSpec((1, H_out, W_out, Cout_p), lambda n: (n, 0, 0, 0)),
            pl.BlockSpec((1, 8, Cout_p), lambda n: (n, 0, 0)),
            pl.BlockSpec((1, 8, Cout_p), lambda n: (n, 0, 0)),
        ],
        out_shape=(
            jax.ShapeDtypeStruct((N, H_out, W_out, Cout_p), jnp.bfloat16),
            jax.ShapeDtypeStruct((N, H_out, W_out, Cout_p), jnp.bfloat16),
            jax.ShapeDtypeStruct((N, 8, Cout_p), jnp.float32),
            jax.ShapeDtypeStruct((N, 8, Cout_p), jnp.float32),
        ),
        compiler_params=pltpu.CompilerParams(
            dimension_semantics=("parallel",),
            vmem_limit_bytes=VMEM_LIMIT),
        cost_estimate=pl.CostEstimate(
            flops=flops, transcendentals=0, bytes_accessed=bytes_accessed),
    )(x_ph, w1_mat, we_mat)

    count = float(N * H_out * W_out)
    sc1, sh1 = _bn_scale_shift(st1, count, g1, be1, Cout, Cout_p)
    sc3, sh3 = _bn_scale_shift(st3, count, ge, bee, Cout, Cout_p)
    return y1, sc1, sh1, y3, sc3, sh3


def _stage2_conv2(a1_nhwc, w2, g2, be2, *, stride):
    """conv2 (3x3, stride, pad 1) + training-mode BN2 statistics."""
    k, pad, s = 3, 1, stride
    Cin, Cout = w2.shape[2], w2.shape[3]
    N, H, W, Cx = a1_nhwc.shape
    assert Cin <= Cx
    Cin_p = _round_up(Cx, LANE)
    Cout_p = _round_up(Cout, LANE)

    x_ph, H_out, W_out = _prep_conv_input(a1_nhwc, k, s, pad, Cin_p)
    P = s * s
    Hq, Wq = x_ph.shape[1], x_ph.shape[2]

    w_mat = _pad_conv_weight(w2, Cin_p, Cout_p)

    kernel = functools.partial(
        _conv2_kernel, k=k, s=s, H_out=H_out, W_out=W_out,
        Cin_p=Cin_p, Cout_p=Cout_p)

    flops = 2 * N * H_out * W_out * k * k * Cin_p * Cout_p
    bytes_accessed = (x_ph.size * 2 + w_mat.size * 2
                      + N * H_out * W_out * Cout_p * 2 + N * 8 * Cout_p * 4)

    y2, st2 = pl.pallas_call(
        kernel,
        grid=(N,),
        in_specs=[
            pl.BlockSpec((P, Hq, Wq, Cin_p), lambda n: (n, 0, 0, 0)),
            pl.BlockSpec((k * k, Cin_p, Cout_p), lambda n: (0, 0, 0)),
        ],
        out_specs=[
            pl.BlockSpec((1, H_out, W_out, Cout_p), lambda n: (n, 0, 0, 0)),
            pl.BlockSpec((1, 8, Cout_p), lambda n: (n, 0, 0)),
        ],
        out_shape=(
            jax.ShapeDtypeStruct((N, H_out, W_out, Cout_p), jnp.bfloat16),
            jax.ShapeDtypeStruct((N, 8, Cout_p), jnp.float32),
        ),
        compiler_params=pltpu.CompilerParams(
            dimension_semantics=("parallel",),
            vmem_limit_bytes=VMEM_LIMIT),
        cost_estimate=pl.CostEstimate(
            flops=flops, transcendentals=0, bytes_accessed=bytes_accessed),
    )(x_ph, w_mat)

    count = float(N * H_out * W_out)
    sc2, sh2 = _bn_scale_shift(st2, count, g2, be2, Cout, Cout_p)
    return y2, sc2, sh2


def _finalize(y2, y3, sc2, sc3, shift_sum):
    N, H, W, Cp = y2.shape
    return pl.pallas_call(
        _finalize_kernel,
        grid=(N,),
        in_specs=[
            pl.BlockSpec((1, H, W, Cp), lambda n: (n, 0, 0, 0)),
            pl.BlockSpec((1, H, W, Cp), lambda n: (n, 0, 0, 0)),
            pl.BlockSpec((1, 1, 1, Cp), lambda n: (0, 0, 0, 0)),
            pl.BlockSpec((1, 1, 1, Cp), lambda n: (0, 0, 0, 0)),
            pl.BlockSpec((1, 1, 1, Cp), lambda n: (0, 0, 0, 0)),
        ],
        out_specs=pl.BlockSpec((1, H, W, Cp), lambda n: (n, 0, 0, 0)),
        out_shape=jax.ShapeDtypeStruct((N, H, W, Cp), jnp.float32),
        compiler_params=pltpu.CompilerParams(
            dimension_semantics=("parallel",),
            vmem_limit_bytes=VMEM_LIMIT),
        cost_estimate=pl.CostEstimate(
            flops=5 * N * H * W * Cp, transcendentals=0,
            bytes_accessed=N * H * W * Cp * (2 + 2 + 4)),
    )(y2, y3, sc2, sc3, shift_sum)


def resnet_down_block(x_nchw, params, stride=(2, 1)):
    """Pallas implementation of RestNetDownBlock.forward (training-mode BN)."""
    s0, s1 = stride
    # TODO(synk): if the surrounding network is NHWC, drop these boundary
    # transposes entirely (each costs a full HBM read+write of the tensor).
    x = jnp.transpose(x_nchw, (0, 2, 3, 1)).astype(jnp.float32)   # NCHW -> NHWC

    # Stage 1 (one kernel): conv1(3x3, s0) + shortcut conv(1x1, s0); bf16
    # un-normalized outputs + partial BN statistics for both branches.
    y1, sc1, sh1, y3, sc3, sh3 = _stage1_conv1_extra(
        x, params["w1"], params["g1"], params["be1"],
        params["we"], params["ge"], params["bee"], stride=s0)

    # BN1 + ReLU folded into conv2's input preparation (XLA fuses the affine
    # with the pad / phase-split copy; padded channels stay exactly zero).
    a1 = jnp.maximum(y1.astype(jnp.float32) * sc1 + sh1, 0.0)

    # Stage 2: conv2(3x3, s1) + BN2 statistics.
    y2, sc2, sh2 = _stage2_conv2(a1, params["w2"], params["g2"], params["be2"],
                                 stride=s1)

    assert y2.shape == y3.shape, (y2.shape, y3.shape)
    out_p = _finalize(y2, y3, sc2, sc3, sh2 + sh3)    # ReLU(BN2(y2)+BNe(y3))

    Cout = params["w2"].shape[-1]
    out = out_p[:, :, :, :Cout]                       # drop channel padding
    return jnp.transpose(out, (0, 3, 1, 2))           # NHWC -> NCHW


# --------------------------------------------------------------------------
# Pure-JAX f32 reference (faithful to the PyTorch module, incl. conv bias)
# --------------------------------------------------------------------------
def _ref_conv_bn(x, w, b, g, be, stride, pad):
    y = lax.conv_general_dilated(
        x, w, window_strides=(stride, stride),
        padding=((pad, pad), (pad, pad)),
        dimension_numbers=("NHWC", "HWIO", "NHWC")) + b
    mean = y.mean(axis=(0, 1, 2), keepdims=True)
    var = ((y - mean) ** 2).mean(axis=(0, 1, 2), keepdims=True)
    return (y - mean) * g / jnp.sqrt(var + EPS) + be


def _reference(x_nchw, p, stride):
    s0, s1 = stride
    x = jnp.transpose(x_nchw, (0, 2, 3, 1))
    extra = _ref_conv_bn(x, p["we"], p["bbe"], p["ge"], p["bee"], s0, 0)
    o = jax.nn.relu(_ref_conv_bn(x, p["w1"], p["b1"], p["g1"], p["be1"], s0, 1))
    o = _ref_conv_bn(o, p["w2"], p["b2"], p["g2"], p["be2"], s1, 1)
    return jnp.transpose(jax.nn.relu(extra + o), (0, 3, 1, 2))


# --------------------------------------------------------------------------
if __name__ == "__main__":
    N, Cin, Cout, H, W = 2, 4, 8, 16, 16
    stride = (2, 1)

    key = jax.random.PRNGKey(0)
    ks = jax.random.split(key, 13)
    x = jax.random.normal(ks[0], (N, Cin, H, W), jnp.float32)

    params = {
        "w1": jax.random.normal(ks[1], (3, 3, Cin, Cout), jnp.float32) * 0.1,
        "b1": jax.random.normal(ks[2], (Cout,), jnp.float32) * 0.1,
        "g1": 1.0 + 0.1 * jax.random.normal(ks[3], (Cout,), jnp.float32),
        "be1": 0.1 * jax.random.normal(ks[4], (Cout,), jnp.float32),
        "w2": jax.random.normal(ks[5], (3, 3, Cout, Cout), jnp.float32) * 0.1,
        "b2": jax.random.normal(ks[6], (Cout,), jnp.float32) * 0.1,
        "g2": 1.0 + 0.1 * jax.random.normal(ks[7], (Cout,), jnp.float32),
        "be2": 0.1 * jax.random.normal(ks[8], (Cout,), jnp.float32),
        "we": jax.random.normal(ks[9], (1, 1, Cin, Cout), jnp.float32) * 0.1,
        "bbe": jax.random.normal(ks[10], (Cout,), jnp.float32) * 0.1,
        "ge": 1.0 + 0.1 * jax.random.normal(ks[11], (Cout,), jnp.float32),
        "bee": 0.1 * jax.random.normal(ks[12], (Cout,), jnp.float32),
    }

    fn = jax.jit(lambda xx, pp: resnet_down_block(xx, pp, stride=stride))
    out = jax.block_until_ready(fn(x, params))

    Ho = (H - 1) // stride[0] + 1
    Wo = (W - 1) // stride[0] + 1
    assert out.shape == (N, Cout, Ho, Wo), out.shape

    ref = _reference(x, params, stride)
    err = float(jnp.max(jnp.abs(out - ref)))
    # bf16 matmul inputs / bf16 intermediates (f32 accumulation & BN math).
    assert jnp.allclose(out, ref, atol=5e-2, rtol=5e-2), f"max abs err {err}"

    print("KERNEL_OK")
</pallas_src>

<mosaic_0001>
module attributes {stable_mosaic.version = 11 : i64} {
  func.func @_conv1_extra_kernel(%arg0: i32, %arg1: memref<4x9x9x128xbf16, #tpu.memory_space<vmem>>, %arg2: memref<9x128x128xbf16, #tpu.memory_space<vmem>>, %arg3: memref<128x128xbf16, #tpu.memory_space<vmem>>, %arg4: memref<1x8x8x128xbf16, #tpu.memory_space<vmem>>, %arg5: memref<1x8x8x128xbf16, #tpu.memory_space<vmem>>, %arg6: memref<1x8x128xf32, #tpu.memory_space<vmem>>, %arg7: memref<1x8x128xf32, #tpu.memory_space<vmem>>) attributes {dimension_semantics = [#tpu.dimension_semantics<parallel>], iteration_bounds = array<i64: 2>, scalar_prefetch = 0 : i64, scratch_operands = 0 : i64, tpu.core_type = #tpu.core_type<tc>, window_params = [{transform_indices = @transform_0, window_bounds = array<i64: 4, 9, 9, 128>}, {pipeline_mode = #tpu.pipeline_mode<synchronous>, transform_indices = @transform_1, window_bounds = array<i64: 9, 128, 128>}, {pipeline_mode = #tpu.pipeline_mode<synchronous>, transform_indices = @transform_2, window_bounds = array<i64: 128, 128>}, {transform_indices = @transform_3, window_bounds = array<i64: 1, 8, 8, 128>}, {transform_indices = @transform_4, window_bounds = array<i64: 1, 8, 8, 128>}, {transform_indices = @transform_5, window_bounds = array<i64: 1, 8, 128>}, {transform_indices = @transform_6, window_bounds = array<i64: 1, 8, 128>}]} {
    %c0 = arith.constant 0 : index
    %c0_0 = arith.constant 0 : index
    %c0_1 = arith.constant 0 : index
    %c0_2 = arith.constant 0 : index
    %0 = vector.load %arg1[%c0, %c0_0, %c0_1, %c0_2] : memref<4x9x9x128xbf16, #tpu.memory_space<vmem>>, vector<1x8x8x128xbf16>
    %1 = vector.shape_cast %0 : vector<1x8x8x128xbf16> to vector<8x8x128xbf16>
    %2 = vector.shape_cast %1 : vector<8x8x128xbf16> to vector<64x128xbf16>
    %c0_3 = arith.constant 0 : index
    %c0_4 = arith.constant 0 : index
    %c0_5 = arith.constant 0 : index
    %3 = vector.load %arg2[%c0_3, %c0_4, %c0_5] : memref<9x128x128xbf16, #tpu.memory_space<vmem>>, vector<1x128x128xbf16>
    %4 = vector.shape_cast %3 : vector<1x128x128xbf16> to vector<128x128xbf16>
    %cst = arith.constant dense<0.000000e+00> : vector<64x128xf32>
    %5 = tpu.matmul %2, %4, %cst {dimension_numbers = #tpu.dot_dimension_numbers<[1], [0], [0], [1], [0, 0, 1, 1], [], []>} : vector<64x128xbf16>, vector<128x128xbf16>, vector<64x128xf32> -> vector<64x128xf32>
    %c1 = arith.constant 1 : index
    %c0_6 = arith.constant 0 : index
    %c0_7 = arith.constant 0 : index
    %c0_8 = arith.constant 0 : index
    %6 = vector.load %arg1[%c1, %c0_6, %c0_7, %c0_8] : memref<4x9x9x128xbf16, #tpu.memory_space<vmem>>, vector<1x8x8x128xbf16>
    %7 = vector.shape_cast %6 : vector<1x8x8x128xbf16> to vector<8x8x128xbf16>
    %8 = vector.shape_cast %7 : vector<8x8x128xbf16> to vector<64x128xbf16>
    %c1_9 = arith.constant 1 : index
    %c0_10 = arith.constant 0 : index
    %c0_11 = arith.constant 0 : index
    %9 = vector.load %arg2[%c1_9, %c0_10, %c0_11] : memref<9x128x128xbf16, #tpu.memory_space<vmem>>, vector<1x128x128xbf16>
    %10 = vector.shape_cast %9 : vector<1x128x128xbf16> to vector<128x128xbf16>
    %cst_12 = arith.constant dense<0.000000e+00> : vector<64x128xf32>
    %11 = tpu.matmul %8, %10, %cst_12 {dimension_numbers = #tpu.dot_dimension_numbers<[1], [0], [0], [1], [0, 0, 1, 1], [], []>} : vector<64x128xbf16>, vector<128x128xbf16>, vector<64x128xf32> -> vector<64x128xf32>
    %12 = arith.addf %5, %11 : vector<64x128xf32>
    %c0_13 = arith.constant 0 : index
    %c0_14 = arith.constant 0 : index
    %c1_15 = arith.constant 1 : index
    %c0_16 = arith.constant 0 : index
    %13 = vector.load %arg1[%c0_13, %c0_14, %c1_15, %c0_16] : memref<4x9x9x128xbf16, #tpu.memory_space<vmem>>, vector<1x8x8x128xbf16>
    %14 = vector.shape_cast %13 : vector<1x8x8x128xbf16> to vector<8x8x128xbf16>
    %15 = vector.shape_cast %14 : vector<8x8x128xbf16> to vector<64x128xbf16>
    %c2 = arith.constant 2 : index
    %c0_17 = arith.constant 0 : index
    %c0_18 = arith.constant 0 : index
    %16 = vector.load %arg2[%c2, %c0_17, %c0_18] : memref<9x128x128xbf16, #tpu.memory_space<vmem>>, vector<1x128x128xbf16>
    %17 = vector.shape_cast %16 : vector<1x128x128xbf16> to vector<128x128xbf16>
    %cst_19 = arith.constant dense<0.000000e+00> : vector<64x128xf32>
    %18 = tpu.matmul %15, %17, %cst_19 {dimension_numbers = #tpu.dot_dimension_numbers<[1], [0], [0], [1], [0, 0, 1, 1], [], []>} : vector<64x128xbf16>, vector<128x128xbf16>, vector<64x128xf32> -> vector<64x128xf32>
    %19 = arith.addf %12, %18 : vector<64x128xf32>
    %c2_20 = arith.constant 2 : index
    %c0_21 = arith.constant 0 : index
    %c0_22 = arith.constant 0 : index
    %c0_23 = arith.constant 0 : index
    %20 = vector.load %arg1[%c2_20, %c0_21, %c0_22, %c0_23] : memref<4x9x9x128xbf16, #tpu.memory_space<vmem>>, vector<1x8x8x128xbf16>
    %21 = vector.shape_cast %20 : vector<1x8x8x128xbf16> to vector<8x8x128xbf16>
    %22 = vector.shape_cast %21 : vector<8x8x128xbf16> to vector<64x128xbf16>
    %c3 = arith.constant 3 : index
    %c0_24 = arith.constant 0 : index
    %c0_25 = arith.constant 0 : index
    %23 = vector.load %arg2[%c3, %c0_24, %c0_25] : memref<9x128x128xbf16, #tpu.memory_space<vmem>>, vector<1x128x128xbf16>
    %24 = vector.shape_cast %23 : vector<1x128x128xbf16> to vector<128x128xbf16>
    %cst_26 = arith.constant dense<0.000000e+00> : vector<64x128xf32>
    %25 = tpu.matmul %22, %24, %cst_26 {dimension_numbers = #tpu.dot_dimension_numbers<[1], [0], [0], [1], [0, 0, 1, 1], [], []>} : vector<64x128xbf16>, vector<128x128xbf16>, vector<64x128xf32> -> vector<64x128xf32>
    %26 = arith.addf %19, %25 : vector<64x128xf32>
    %c3_27 = arith.constant 3 : index
    %c0_28 = arith.constant 0 : index
    %c0_29 = arith.constant 0 : index
    %c0_30 = arith.constant 0 : index
    %27 = vector.load %arg1[%c3_27, %c0_28, %c0_29, %c0_30] : memref<4x9x9x128xbf16, #tpu.memory_space<vmem>>, vector<1x8x8x128xbf16>
    %28 = vector.shape_cast %27 : vector<1x8x8x128xbf16> to vector<8x8x128xbf16>
    %29 = vector.shape_cast %28 : vector<8x8x128xbf16> to vector<64x128xbf16>
    %c4 = arith.constant 4 : index
    %c0_31 = arith.constant 0 : index
    %c0_32 = arith.constant 0 : index
    %30 = vector.load %arg2[%c4, %c0_31, %c0_32] : memref<9x128x128xbf16, #tpu.memory_space<vmem>>, vector<1x128x128xbf16>
    %31 = vector.shape_cast %30 : vector<1x128x128xbf16> to vector<128x128xbf16>
    %cst_33 = arith.constant dense<0.000000e+00> : vector<64x128xf32>
    %32 = tpu.matmul %29, %31, %cst_33 {dimension_numbers = #tpu.dot_dimension_numbers<[1], [0], [0], [1], [0, 0, 1, 1], [], []>} : vector<64x128xbf16>, vector<128x128xbf16>, vector<64x128xf32> -> vector<64x128xf32>
    %33 = arith.addf %26, %32 : vector<64x128xf32>
    %c2_34 = arith.constant 2 : index
    %c0_35 = arith.constant 0 : index
    %c1_36 = arith.constant 1 : index
    %c0_37 = arith.constant 0 : index
    %34 = vector.load %arg1[%c2_34, %c0_35, %c1_36, %c0_37] : memref<4x9x9x128xbf16, #tpu.memory_space<vmem>>, vector<1x8x8x128xbf16>
    %35 = vector.shape_cast %34 : vector<1x8x8x128xbf16> to vector<8x8x128xbf16>
    %36 = vector.shape_cast %35 : vector<8x8x128xbf16> to vector<64x128xbf16>
    %c5 = arith.constant 5 : index
    %c0_38 = arith.constant 0 : index
    %c0_39 = arith.constant 0 : index
    %37 = vector.load %arg2[%c5, %c0_38, %c0_39] : memref<9x128x128xbf16, #tpu.memory_space<vmem>>, vector<1x128x128xbf16>
    %38 = vector.shape_cast %37 : vector<1x128x128xbf16> to vector<128x128xbf16>
    %cst_40 = arith.constant dense<0.000000e+00> : vector<64x128xf32>
    %39 = tpu.matmul %36, %38, %cst_40 {dimension_numbers = #tpu.dot_dimension_numbers<[1], [0], [0], [1], [0, 0, 1, 1], [], []>} : vector<64x128xbf16>, vector<128x128xbf16>, vector<64x128xf32> -> vector<64x128xf32>
    %40 = arith.addf %33, %39 : vector<64x128xf32>
    %c0_41 = arith.constant 0 : index
    %c1_42 = arith.constant 1 : index
    %c0_43 = arith.constant 0 : index
    %c0_44 = arith.constant 0 : index
    %41 = vector.load %arg1[%c0_41, %c1_42, %c0_43, %c0_44] : memref<4x9x9x128xbf16, #tpu.memory_space<vmem>>, vector<1x8x8x128xbf16>
    %42 = vector.shape_cast %41 : vector<1x8x8x128xbf16> to vector<8x8x128xbf16>
    %43 = vector.shape_cast %42 : vector<8x8x128xbf16> to vector<64x128xbf16>
    %c6 = arith.constant 6 : index
    %c0_45 = arith.constant 0 : index
    %c0_46 = arith.constant 0 : index
    %44 = vector.load %arg2[%c6, %c0_45, %c0_46] : memref<9x128x128xbf16, #tpu.memory_space<vmem>>, vector<1x128x128xbf16>
    %45 = vector.shape_cast %44 : vector<1x128x128xbf16> to vector<128x128xbf16>
    %cst_47 = arith.constant dense<0.000000e+00> : vector<64x128xf32>
    %46 = tpu.matmul %43, %45, %cst_47 {dimension_numbers = #tpu.dot_dimension_numbers<[1], [0], [0], [1], [0, 0, 1, 1], [], []>} : vector<64x128xbf16>, vector<128x128xbf16>, vector<64x128xf32> -> vector<64x128xf32>
    %47 = arith.addf %40, %46 : vector<64x128xf32>
    %c1_48 = arith.constant 1 : index
    %c1_49 = arith.constant 1 : index
    %c0_50 = arith.constant 0 : index
    %c0_51 = arith.constant 0 : index
    %48 = vector.load %arg1[%c1_48, %c1_49, %c0_50, %c0_51] : memref<4x9x9x128xbf16, #tpu.memory_space<vmem>>, vector<1x8x8x128xbf16>
    %49 = vector.shape_cast %48 : vector<1x8x8x128xbf16> to vector<8x8x128xbf16>
    %50 = vector.shape_cast %49 : vector<8x8x128xbf16> to vector<64x128xbf16>
    %c7 = arith.constant 7 : index
    %c0_52 = arith.constant 0 : index
    %c0_53 = arith.constant 0 : index
    %51 = vector.load %arg2[%c7, %c0_52, %c0_53] : memref<9x128x128xbf16, #tpu.memory_space<vmem>>, vector<1x128x128xbf16>
    %52 = vector.shape_cast %51 : vector<1x128x128xbf16> to vector<128x128xbf16>
    %cst_54 = arith.constant dense<0.000000e+00> : vector<64x128xf32>
    %53 = tpu.matmul %50, %52, %cst_54 {dimension_numbers = #tpu.dot_dimension_numbers<[1], [0], [0], [1], [0, 0, 1, 1], [], []>} : vector<64x128xbf16>, vector<128x128xbf16>, vector<64x128xf32> -> vector<64x128xf32>
    %54 = arith.addf %47, %53 : vector<64x128xf32>
    %c0_55 = arith.constant 0 : index
    %c1_56 = arith.constant 1 : index
    %c1_57 = arith.constant 1 : index
    %c0_58 = arith.constant 0 : index
    %55 = vector.load %arg1[%c0_55, %c1_56, %c1_57, %c0_58] : memref<4x9x9x128xbf16, #tpu.memory_space<vmem>>, vector<1x8x8x128xbf16>
    %56 = vector.shape_cast %55 : vector<1x8x8x128xbf16> to vector<8x8x128xbf16>
    %57 = vector.shape_cast %56 : vector<8x8x128xbf16> to vector<64x128xbf16>
    %c8 = arith.constant 8 : index
    %c0_59 = arith.constant 0 : index
    %c0_60 = arith.constant 0 : index
    %58 = vector.load %arg2[%c8, %c0_59, %c0_60] : memref<9x128x128xbf16, #tpu.memory_space<vmem>>, vector<1x128x128xbf16>
    %59 = vector.shape_cast %58 : vector<1x128x128xbf16> to vector<128x128xbf16>
    %cst_61 = arith.constant dense<0.000000e+00> : vector<64x128xf32>
    %60 = tpu.matmul %57, %59, %cst_61 {dimension_numbers = #tpu.dot_dimension_numbers<[1], [0], [0], [1], [0, 0, 1, 1], [], []>} : vector<64x128xbf16>, vector<128x128xbf16>, vector<64x128xf32> -> vector<64x128xf32>
    %61 = arith.addf %54, %60 : vector<64x128xf32>
    %c3_62 = arith.constant 3 : index
    %c0_63 = arith.constant 0 : index
    %c0_64 = arith.constant 0 : index
    %c0_65 = arith.constant 0 : index
    %62 = vector.load %arg1[%c3_62, %c0_63, %c0_64, %c0_65] : memref<4x9x9x128xbf16, #tpu.memory_space<vmem>>, vector<1x8x8x128xbf16>
    %63 = vector.shape_cast %62 : vector<1x8x8x128xbf16> to vector<8x8x128xbf16>
    %64 = vector.shape_cast %63 : vector<8x8x128xbf16> to vector<64x128xbf16>
    %c0_66 = arith.constant 0 : index
    %c0_67 = arith.constant 0 : index
    %65 = vector.load %arg3[%c0_66, %c0_67] : memref<128x128xbf16, #tpu.memory_space<vmem>>, vector<128x128xbf16>
    %cst_68 = arith.constant dense<0.000000e+00> : vector<64x128xf32>
    %66 = tpu.matmul %64, %65, %cst_68 {dimension_numbers = #tpu.dot_dimension_numbers<[1], [0], [0], [1], [0, 0, 1, 1], [], []>} : vector<64x128xbf16>, vector<128x128xbf16>, vector<64x128xf32> -> vector<64x128xf32>
    %67 = vector.shape_cast %61 : vector<64x128xf32> to vector<1x8x8x128xf32>
    %68 = arith.truncf %67 : vector<1x8x8x128xf32> to vector<1x8x8x128xbf16>
    %c0_69 = arith.constant 0 : index
    %c0_70 = arith.constant 0 : index
    %c0_71 = arith.constant 0 : index
    %c0_72 = arith.constant 0 : index
    %69 = vector.load %arg4[%c0_69, %c0_70, %c0_71, %c0_72] : memref<1x8x8x128xbf16, #tpu.memory_space<vmem>>, vector<1x8x8x128xbf16>
    tpu.vector_store %arg4[%c0_69, %c0_70, %c0_71, %c0_72], %68 {strides = array<i32>} : memref<1x8x8x128xbf16, #tpu.memory_space<vmem>>, vector<1x8x8x128xbf16>,
    %70 = vector.shape_cast %66 : vector<64x128xf32> to vector<1x8x8x128xf32>
    %71 = arith.truncf %70 : vector<1x8x8x128xf32> to vector<1x8x8x128xbf16>
    %c0_73 = arith.constant 0 : index
    %c0_74 = arith.constant 0 : index
    %c0_75 = arith.constant 0 : index
    %c0_76 = arith.constant 0 : index
    %72 = vector.load %arg5[%c0_73, %c0_74, %c0_75, %c0_76] : memref<1x8x8x128xbf16, #tpu.memory_space<vmem>>, vector<1x8x8x128xbf16>
    tpu.vector_store %arg5[%c0_73, %c0_74, %c0_75, %c0_76], %71 {strides = array<i32>} : memref<1x8x8x128xbf16, #tpu.memory_space<vmem>>, vector<1x8x8x128xbf16>,
    %cst_77 = arith.constant dense<0.000000e+00> : vector<128xf32>
    %73 = vector.multi_reduction <add>, %61, %cst_77 [0] : vector<64x128xf32> to vector<128xf32>
    %74 = vector.shape_cast %73 : vector<128xf32> to vector<1x128xf32>
    %75 = arith.mulf %61, %61 : vector<64x128xf32>
    %cst_78 = arith.constant dense<0.000000e+00> : vector<128xf32>
    %76 = vector.multi_reduction <add>, %75, %cst_78 [0] : vector<64x128xf32> to vector<128xf32>
    %77 = vector.shape_cast %76 : vector<128xf32> to vector<1x128xf32>
    %cst_79 = arith.constant 0.000000e+00 : f32
    %78 = vector.broadcast %cst_79 : f32 to vector<6x128xf32>
    %79 = tpu.concatenate %74, %77, %78 in 0 : vector<1x128xf32>, vector<1x128xf32>, vector<6x128xf32> -> vector<8x128xf32>
    %80 = vector.shape_cast %79 : vector<8x128xf32> to vector<1x8x128xf32>
    %c0_80 = arith.constant 0 : index
    %c0_81 = arith.constant 0 : index
    %c0_82 = arith.constant 0 : index
    %81 = vector.load %arg6[%c0_80, %c0_81, %c0_82] : memref<1x8x128xf32, #tpu.memory_space<vmem>>, vector<1x8x128xf32>
    tpu.vector_store %arg6[%c0_80, %c0_81, %c0_82], %80 {strides = array<i32>} : memref<1x8x128xf32, #tpu.memory_space<vmem>>, vector<1x8x128xf32>,
    %cst_83 = arith.constant dense<0.000000e+00> : vector<128xf32>
    %82 = vector.multi_reduction <add>, %66, %cst_83 [0] : vector<64x128xf32> to vector<128xf32>
    %83 = vector.shape_cast %82 : vector<128xf32> to vector<1x128xf32>
    %84 = arith.mulf %66, %66 : vector<64x128xf32>
    %cst_84 = arith.constant dense<0.000000e+00> : vector<128xf32>
    %85 = vector.multi_reduction <add>, %84, %cst_84 [0] : vector<64x128xf32> to vector<128xf32>
    %86 = vector.shape_cast %85 : vector<128xf32> to vector<1x128xf32>
    %cst_85 = arith.constant 0.000000e+00 : f32
    %87 = vector.broadcast %cst_85 : f32 to vector<6x128xf32>
    %88 = tpu.concatenate %83, %86, %87 in 0 : vector<1x128xf32>, vector<1x128xf32>, vector<6x128xf32> -> vector<8x128xf32>
    %89 = vector.shape_cast %88 : vector<8x128xf32> to vector<1x8x128xf32>
    %c0_86 = arith.constant 0 : index
    %c0_87 = arith.constant 0 : index
    %c0_88 = arith.constant 0 : index
    %90 = vector.load %arg7[%c0_86, %c0_87, %c0_88] : memref<1x8x128xf32, #tpu.memory_space<vmem>>, vector<1x8x128xf32>
    tpu.vector_store %arg7[%c0_86, %c0_87, %c0_88], %89 {strides = array<i32>} : memref<1x8x128xf32, #tpu.memory_space<vmem>>, vector<1x8x128xf32>,
    return
  }
  func.func @transform_0(%arg0: i32) -> (i32, i32, i32, i32) {
    %c0_i32 = arith.constant 0 : i32
    %c0_i32_0 = arith.constant 0 : i32
    %c0_i32_1 = arith.constant 0 : i32
    %c0_i32_2 = arith.constant 0 : i32
    return %arg0, %c0_i32, %c0_i32_0, %c0_i32_1 : i32, i32, i32, i32
  }
  func.func @transform_1(%arg0: i32) -> (i32, i32, i32) {
    %c0_i32 = arith.constant 0 : i32
    %c0_i32_0 = arith.constant 0 : i32
    %c0_i32_1 = arith.constant 0 : i32
    %c0_i32_2 = arith.constant 0 : i32
    return %c0_i32, %c0_i32_0, %c0_i32_1 : i32, i32, i32
  }
  func.func @transform_2(%arg0: i32) -> (i32, i32) {
    %c0_i32 = arith.constant 0 : i32
    %c0_i32_0 = arith.constant 0 : i32
    %c0_i32_1 = arith.constant 0 : i32
    return %c0_i32, %c0_i32_0 : i32, i32
  }
  func.func @transform_3(%arg0: i32) -> (i32, i32, i32, i32) {
    %c0_i32 = arith.constant 0 : i32
    %c0_i32_0 = arith.constant 0 : i32
    %c0_i32_1 = arith.constant 0 : i32
    %c0_i32_2 = arith.constant 0 : i32
    return %arg0, %c0_i32, %c0_i32_0, %c0_i32_1 : i32, i32, i32, i32
  }
  func.func @transform_4(%arg0: i32) -> (i32, i32, i32, i32) {
    %c0_i32 = arith.constant 0 : i32
    %c0_i32_0 = arith.constant 0 : i32
    %c0_i32_1 = arith.constant 0 : i32
    %c0_i32_2 = arith.constant 0 : i32
    return %arg0, %c0_i32, %c0_i32_0, %c0_i32_1 : i32, i32, i32, i32
  }
  func.func @transform_5(%arg0: i32) -> (i32, i32, i32) {
    %c0_i32 = arith.constant 0 : i32
    %c0_i32_0 = arith.constant 0 : i32
    %c0_i32_1 = arith.constant 0 : i32
    return %arg0, %c0_i32, %c0_i32_0 : i32, i32, i32
  }
  func.func @transform_6(%arg0: i32) -> (i32, i32, i32) {
    %c0_i32 = arith.constant 0 : i32
    %c0_i32_0 = arith.constant 0 : i32
    %c0_i32_1 = arith.constant 0 : i32
    return %arg0, %c0_i32, %c0_i32_0 : i32, i32, i32
  }
}

module attributes {stable_mosaic.version = 11 : i64} {
  func.func @_conv2_kernel(%arg0: i32, %arg1: memref<1x10x10x128xbf16, #tpu.memory_space<vmem>>, %arg2: memref<9x128x128xbf16, #tpu.memory_space<vmem>>, %arg3: memref<1x8x8x128xbf16, #tpu.memory_space<vmem>>, %arg4: memref<1x8x128xf32, #tpu.memory_space<vmem>>) attributes {dimension_semantics = [#tpu.dimension_semantics<parallel>], iteration_bounds = array<i64: 2>, scalar_prefetch = 0 : i64, scratch_operands = 0 : i64, tpu.core_type = #tpu.core_type<tc>, window_params = [{transform_indices = @transform_0, window_bounds = array<i64: 1, 10, 10, 128>}, {pipeline_mode = #tpu.pipeline_mode<synchronous>, transform_indices = @transform_1, window_bounds = array<i64: 9, 128, 128>}, {transform_indices = @transform_2, window_bounds = array<i64: 1, 8, 8, 128>}, {transform_indices = @transform_3, window_bounds = array<i64: 1, 8, 128>}]} {
    %c0 = arith.constant 0 : index
    %c0_0 = arith.constant 0 : index
    %c0_1 = arith.constant 0 : index
    %c0_2 = arith.constant 0 : index
    %0 = vector.load %arg1[%c0, %c0_0, %c0_1, %c0_2] : memref<1x10x10x128xbf16, #tpu.memory_space<vmem>>, vector<1x8x8x128xbf16>
    %1 = vector.shape_cast %0 : vector<1x8x8x128xbf16> to vector<8x8x128xbf16>
    %2 = vector.shape_cast %1 : vector<8x8x128xbf16> to vector<64x128xbf16>
    %c0_3 = arith.constant 0 : index
    %c0_4 = arith.constant 0 : index
    %c0_5 = arith.constant 0 : index
    %3 = vector.load %arg2[%c0_3, %c0_4, %c0_5] : memref<9x128x128xbf16, #tpu.memory_space<vmem>>, vector<1x128x128xbf16>
    %4 = vector.shape_cast %3 : vector<1x128x128xbf16> to vector<128x128xbf16>
    %cst = arith.constant dense<0.000000e+00> : vector<64x128xf32>
    %5 = tpu.matmul %2, %4, %cst {dimension_numbers = #tpu.dot_dimension_numbers<[1], [0], [0], [1], [0, 0, 1, 1], [], []>} : vector<64x128xbf16>, vector<128x128xbf16>, vector<64x128xf32> -> vector<64x128xf32>
    %c0_6 = arith.constant 0 : index
    %c0_7 = arith.constant 0 : index
    %c1 = arith.constant 1 : index
    %c0_8 = arith.constant 0 : index
    %6 = vector.load %arg1[%c0_6, %c0_7, %c1, %c0_8] : memref<1x10x10x128xbf16, #tpu.memory_space<vmem>>, vector<1x8x8x128xbf16>
    %7 = vector.shape_cast %6 : vector<1x8x8x128xbf16> to vector<8x8x128xbf16>
    %8 = vector.shape_cast %7 : vector<8x8x128xbf16> to vector<64x128xbf16>
    %c1_9 = arith.constant 1 : index
    %c0_10 = arith.constant 0 : index
    %c0_11 = arith.constant 0 : index
    %9 = vector.load %arg2[%c1_9, %c0_10, %c0_11] : memref<9x128x128xbf16, #tpu.memory_space<vmem>>, vector<1x128x128xbf16>
    %10 = vector.shape_cast %9 : vector<1x128x128xbf16> to vector<128x128xbf16>
    %cst_12 = arith.constant dense<0.000000e+00> : vector<64x128xf32>
    %11 = tpu.matmul %8, %10, %cst_12 {dimension_numbers = #tpu.dot_dimension_numbers<[1], [0], [0], [1], [0, 0, 1, 1], [], []>} : vector<64x128xbf16>, vector<128x128xbf16>, vector<64x128xf32> -> vector<64x128xf32>
    %12 = arith.addf %5, %11 : vector<64x128xf32>
    %c0_13 = arith.constant 0 : index
    %c0_14 = arith.constant 0 : index
    %c2 = arith.constant 2 : index
    %c0_15 = arith.constant 0 : index
    %13 = vector.load %arg1[%c0_13, %c0_14, %c2, %c0_15] : memref<1x10x10x128xbf16, #tpu.memory_space<vmem>>, vector<1x8x8x128xbf16>
    %14 = vector.shape_cast %13 : vector<1x8x8x128xbf16> to vector<8x8x128xbf16>
    %15 = vector.shape_cast %14 : vector<8x8x128xbf16> to vector<64x128xbf16>
    %c2_16 = arith.constant 2 : index
    %c0_17 = arith.constant 0 : index
    %c0_18 = arith.constant 0 : index
    %16 = vector.load %arg2[%c2_16, %c0_17, %c0_18] : memref<9x128x128xbf16, #tpu.memory_space<vmem>>, vector<1x128x128xbf16>
    %17 = vector.shape_cast %16 : vector<1x128x128xbf16> to vector<128x128xbf16>
    %cst_19 = arith.constant dense<0.000000e+00> : vector<64x128xf32>
    %18 = tpu.matmul %15, %17, %cst_19 {dimension_numbers = #tpu.dot_dimension_numbers<[1], [0], [0], [1], [0, 0, 1, 1], [], []>} : vector<64x128xbf16>, vector<128x128xbf16>, vector<64x128xf32> -> vector<64x128xf32>
    %19 = arith.addf %12, %18 : vector<64x128xf32>
    %c0_20 = arith.constant 0 : index
    %c1_21 = arith.constant 1 : index
    %c0_22 = arith.constant 0 : index
    %c0_23 = arith.constant 0 : index
    %20 = vector.load %arg1[%c0_20, %c1_21, %c0_22, %c0_23] : memref<1x10x10x128xbf16, #tpu.memory_space<vmem>>, vector<1x8x8x128xbf16>
    %21 = vector.shape_cast %20 : vector<1x8x8x128xbf16> to vector<8x8x128xbf16>
    %22 = vector.shape_cast %21 : vector<8x8x128xbf16> to vector<64x128xbf16>
    %c3 = arith.constant 3 : index
    %c0_24 = arith.constant 0 : index
    %c0_25 = arith.constant 0 : index
    %23 = vector.load %arg2[%c3, %c0_24, %c0_25] : memref<9x128x128xbf16, #tpu.memory_space<vmem>>, vector<1x128x128xbf16>
    %24 = vector.shape_cast %23 : vector<1x128x128xbf16> to vector<128x128xbf16>
    %cst_26 = arith.constant dense<0.000000e+00> : vector<64x128xf32>
    %25 = tpu.matmul %22, %24, %cst_26 {dimension_numbers = #tpu.dot_dimension_numbers<[1], [0], [0], [1], [0, 0, 1, 1], [], []>} : vector<64x128xbf16>, vector<128x128xbf16>, vector<64x128xf32> -> vector<64x128xf32>
    %26 = arith.addf %19, %25 : vector<64x128xf32>
    %c0_27 = arith.constant 0 : index
    %c1_28 = arith.constant 1 : index
    %c1_29 = arith.constant 1 : index
    %c0_30 = arith.constant 0 : index
    %27 = vector.load %arg1[%c0_27, %c1_28, %c1_29, %c0_30] : memref<1x10x10x128xbf16, #tpu.memory_space<vmem>>, vector<1x8x8x128xbf16>
    %28 = vector.shape_cast %27 : vector<1x8x8x128xbf16> to vector<8x8x128xbf16>
    %29 = vector.shape_cast %28 : vector<8x8x128xbf16> to vector<64x128xbf16>
    %c4 = arith.constant 4 : index
    %c0_31 = arith.constant 0 : index
    %c0_32 = arith.constant 0 : index
    %30 = vector.load %arg2[%c4, %c0_31, %c0_32] : memref<9x128x128xbf16, #tpu.memory_space<vmem>>, vector<1x128x128xbf16>
    %31 = vector.shape_cast %30 : vector<1x128x128xbf16> to vector<128x128xbf16>
    %cst_33 = arith.constant dense<0.000000e+00> : vector<64x128xf32>
    %32 = tpu.matmul %29, %31, %cst_33 {dimension_numbers = #tpu.dot_dimension_numbers<[1], [0], [0], [1], [0, 0, 1, 1], [], []>} : vector<64x128xbf16>, vector<128x128xbf16>, vector<64x128xf32> -> vector<64x128xf32>
    %33 = arith.addf %26, %32 : vector<64x128xf32>
    %c0_34 = arith.constant 0 : index
    %c1_35 = arith.constant 1 : index
    %c2_36 = arith.constant 2 : index
    %c0_37 = arith.constant 0 : index
    %34 = vector.load %arg1[%c0_34, %c1_35, %c2_36, %c0_37] : memref<1x10x10x128xbf16, #tpu.memory_space<vmem>>, vector<1x8x8x128xbf16>
    %35 = vector.shape_cast %34 : vector<1x8x8x128xbf16> to vector<8x8x128xbf16>
    %36 = vector.shape_cast %35 : vector<8x8x128xbf16> to vector<64x128xbf16>
    %c5 = arith.constant 5 : index
    %c0_38 = arith.constant 0 : index
    %c0_39 = arith.constant 0 : index
    %37 = vector.load %arg2[%c5, %c0_38, %c0_39] : memref<9x128x128xbf16, #tpu.memory_space<vmem>>, vector<1x128x128xbf16>
    %38 = vector.shape_cast %37 : vector<1x128x128xbf16> to vector<128x128xbf16>
    %cst_40 = arith.constant dense<0.000000e+00> : vector<64x128xf32>
    %39 = tpu.matmul %36, %38, %cst_40 {dimension_numbers = #tpu.dot_dimension_numbers<[1], [0], [0], [1], [0, 0, 1, 1], [], []>} : vector<64x128xbf16>, vector<128x128xbf16>, vector<64x128xf32> -> vector<64x128xf32>
    %40 = arith.addf %33, %39 : vector<64x128xf32>
    %c0_41 = arith.constant 0 : index
    %c2_42 = arith.constant 2 : index
    %c0_43 = arith.constant 0 : index
    %c0_44 = arith.constant 0 : index
    %41 = vector.load %arg1[%c0_41, %c2_42, %c0_43, %c0_44] : memref<1x10x10x128xbf16, #tpu.memory_space<vmem>>, vector<1x8x8x128xbf16>
    %42 = vector.shape_cast %41 : vector<1x8x8x128xbf16> to vector<8x8x128xbf16>
    %43 = vector.shape_cast %42 : vector<8x8x128xbf16> to vector<64x128xbf16>
    %c6 = arith.constant 6 : index
    %c0_45 = arith.constant 0 : index
    %c0_46 = arith.constant 0 : index
    %44 = vector.load %arg2[%c6, %c0_45, %c0_46] : memref<9x128x128xbf16, #tpu.memory_space<vmem>>, vector<1x128x128xbf16>
    %45 = vector.shape_cast %44 : vector<1x128x128xbf16> to vector<128x128xbf16>
    %cst_47 = arith.constant dense<0.000000e+00> : vector<64x128xf32>
    %46 = tpu.matmul %43, %45, %cst_47 {dimension_numbers = #tpu.dot_dimension_numbers<[1], [0], [0], [1], [0, 0, 1, 1], [], []>} : vector<64x128xbf16>, vector<128x128xbf16>, vector<64x128xf32> -> vector<64x128xf32>
    %47 = arith.addf %40, %46 : vector<64x128xf32>
    %c0_48 = arith.constant 0 : index
    %c2_49 = arith.constant 2 : index
    %c1_50 = arith.constant 1 : index
    %c0_51 = arith.constant 0 : index
    %48 = vector.load %arg1[%c0_48, %c2_49, %c1_50, %c0_51] : memref<1x10x10x128xbf16, #tpu.memory_space<vmem>>, vector<1x8x8x128xbf16>
    %49 = vector.shape_cast %48 : vector<1x8x8x128xbf16> to vector<8x8x128xbf16>
    %50 = vector.shape_cast %49 : vector<8x8x128xbf16> to vector<64x128xbf16>
    %c7 = arith.constant 7 : index
    %c0_52 = arith.constant 0 : index
    %c0_53 = arith.constant 0 : index
    %51 = vector.load %arg2[%c7, %c0_52, %c0_53] : memref<9x128x128xbf16, #tpu.memory_space<vmem>>, vector<1x128x128xbf16>
    %52 = vector.shape_cast %51 : vector<1x128x128xbf16> to vector<128x128xbf16>
    %cst_54 = arith.constant dense<0.000000e+00> : vector<64x128xf32>
    %53 = tpu.matmul %50, %52, %cst_54 {dimension_numbers = #tpu.dot_dimension_numbers<[1], [0], [0], [1], [0, 0, 1, 1], [], []>} : vector<64x128xbf16>, vector<128x128xbf16>, vector<64x128xf32> -> vector<64x128xf32>
    %54 = arith.addf %47, %53 : vector<64x128xf32>
    %c0_55 = arith.constant 0 : index
    %c2_56 = arith.constant 2 : index
    %c2_57 = arith.constant 2 : index
    %c0_58 = arith.constant 0 : index
    %55 = vector.load %arg1[%c0_55, %c2_56, %c2_57, %c0_58] : memref<1x10x10x128xbf16, #tpu.memory_space<vmem>>, vector<1x8x8x128xbf16>
    %56 = vector.shape_cast %55 : vector<1x8x8x128xbf16> to vector<8x8x128xbf16>
    %57 = vector.shape_cast %56 : vector<8x8x128xbf16> to vector<64x128xbf16>
    %c8 = arith.constant 8 : index
    %c0_59 = arith.constant 0 : index
    %c0_60 = arith.constant 0 : index
    %58 = vector.load %arg2[%c8, %c0_59, %c0_60] : memref<9x128x128xbf16, #tpu.memory_space<vmem>>, vector<1x128x128xbf16>
    %59 = vector.shape_cast %58 : vector<1x128x128xbf16> to vector<128x128xbf16>
    %cst_61 = arith.constant dense<0.000000e+00> : vector<64x128xf32>
    %60 = tpu.matmul %57, %59, %cst_61 {dimension_numbers = #tpu.dot_dimension_numbers<[1], [0], [0], [1], [0, 0, 1, 1], [], []>} : vector<64x128xbf16>, vector<128x128xbf16>, vector<64x128xf32> -> vector<64x128xf32>
    %61 = arith.addf %54, %60 : vector<64x128xf32>
    %62 = vector.shape_cast %61 : vector<64x128xf32> to vector<1x8x8x128xf32>
    %63 = arith.truncf %62 : vector<1x8x8x128xf32> to vector<1x8x8x128xbf16>
    %c0_62 = arith.constant 0 : index
    %c0_63 = arith.constant 0 : index
    %c0_64 = arith.constant 0 : index
    %c0_65 = arith.constant 0 : index
    %64 = vector.load %arg3[%c0_62, %c0_63, %c0_64, %c0_65] : memref<1x8x8x128xbf16, #tpu.memory_space<vmem>>, vector<1x8x8x128xbf16>
    tpu.vector_store %arg3[%c0_62, %c0_63, %c0_64, %c0_65], %63 {strides = array<i32>} : memref<1x8x8x128xbf16, #tpu.memory_space<vmem>>, vector<1x8x8x128xbf16>,
    %cst_66 = arith.constant dense<0.000000e+00> : vector<128xf32>
    %65 = vector.multi_reduction <add>, %61, %cst_66 [0] : vector<64x128xf32> to vector<128xf32>
    %66 = vector.shape_cast %65 : vector<128xf32> to vector<1x128xf32>
    %67 = arith.mulf %61, %61 : vector<64x128xf32>
    %cst_67 = arith.constant dense<0.000000e+00> : vector<128xf32>
    %68 = vector.multi_reduction <add>, %67, %cst_67 [0] : vector<64x128xf32> to vector<128xf32>
    %69 = vector.shape_cast %68 : vector<128xf32> to vector<1x128xf32>
    %cst_68 = arith.constant 0.000000e+00 : f32
    %70 = vector.broadcast %cst_68 : f32 to vector<6x128xf32>
    %71 = tpu.concatenate %66, %69, %70 in 0 : vector<1x128xf32>, vector<1x128xf32>, vector<6x128xf32> -> vector<8x128xf32>
    %72 = vector.shape_cast %71 : vector<8x128xf32> to vector<1x8x128xf32>
    %c0_69 = arith.constant 0 : index
    %c0_70 = arith.constant 0 : index
    %c0_71 = arith.constant 0 : index
    %73 = vector.load %arg4[%c0_69, %c0_70, %c0_71] : memref<1x8x128xf32, #tpu.memory_space<vmem>>, vector<1x8x128xf32>
    tpu.vector_store %arg4[%c0_69, %c0_70, %c0_71], %72 {strides = array<i32>} : memref<1x8x128xf32, #tpu.memory_space<vmem>>, vector<1x8x128xf32>,
    return
  }
  func.func @transform_0(%arg0: i32) -> (i32, i32, i32, i32) {
    %c0_i32 = arith.constant 0 : i32
    %c0_i32_0 = arith.constant 0 : i32
    %c0_i32_1 = arith.constant 0 : i32
    %c0_i32_2 = arith.constant 0 : i32
    return %arg0, %c0_i32, %c0_i32_0, %c0_i32_1 : i32, i32, i32, i32
  }
  func.func @transform_1(%arg0: i32) -> (i32, i32, i32) {
    %c0_i32 = arith.constant 0 : i32
    %c0_i32_0 = arith.constant 0 : i32
    %c0_i32_1 = arith.constant 0 : i32
    %c0_i32_2 = arith.constant 0 : i32
    return %c0_i32, %c0_i32_0, %c0_i32_1 : i32, i32, i32
  }
  func.func @transform_2(%arg0: i32) -> (i32, i32, i32, i32) {
    %c0_i32 = arith.constant 0 : i32
    %c0_i32_0 = arith.constant 0 : i32
    %c0_i32_1 = arith.constant 0 : i32
    %c0_i32_2 = arith.constant 0 : i32
    return %arg0, %c0_i32, %c0_i32_0, %c0_i32_1 : i32, i32, i32, i32
  }
  func.func @transform_3(%arg0: i32) -> (i32, i32, i32) {
    %c0_i32 = arith.constant 0 : i32
    %c0_i32_0 = arith.constant 0 : i32
    %c0_i32_1 = arith.constant 0 : i32
    return %arg0, %c0_i32, %c0_i32_0 : i32, i32, i32
  }
}

module attributes {stable_mosaic.version = 11 : i64} {
  func.func @_finalize_kernel(%arg0: i32, %arg1: memref<1x8x8x128xbf16, #tpu.memory_space<vmem>>, %arg2: memref<1x8x8x128xbf16, #tpu.memory_space<vmem>>, %arg3: memref<1x1x1x128xf32, #tpu.memory_space<vmem>>, %arg4: memref<1x1x1x128xf32, #tpu.memory_space<vmem>>, %arg5: memref<1x1x1x128xf32, #tpu.memory_space<vmem>>, %arg6: memref<1x8x8x128xf32, #tpu.memory_space<vmem>>) attributes {dimension_semantics = [#tpu.dimension_semantics<parallel>], iteration_bounds = array<i64: 2>, scalar_prefetch = 0 : i64, scratch_operands = 0 : i64, tpu.core_type = #tpu.core_type<tc>, window_params = [{transform_indices = @transform_0, window_bounds = array<i64: 1, 8, 8, 128>}, {transform_indices = @transform_1, window_bounds = array<i64: 1, 8, 8, 128>}, {pipeline_mode = #tpu.pipeline_mode<synchronous>, transform_indices = @transform_2, window_bounds = array<i64: 1, 1, 1, 128>}, {pipeline_mode = #tpu.pipeline_mode<synchronous>, transform_indices = @transform_3, window_bounds = array<i64: 1, 1, 1, 128>}, {pipeline_mode = #tpu.pipeline_mode<synchronous>, transform_indices = @transform_4, window_bounds = array<i64: 1, 1, 1, 128>}, {transform_indices = @transform_5, window_bounds = array<i64: 1, 8, 8, 128>}]} {
    %c0 = arith.constant 0 : index
    %c0_0 = arith.constant 0 : index
    %c0_1 = arith.constant 0 : index
    %c0_2 = arith.constant 0 : index
    %0 = vector.load %arg1[%c0, %c0_0, %c0_1, %c0_2] : memref<1x8x8x128xbf16, #tpu.memory_space<vmem>>, vector<1x8x8x128xbf16>
    %1 = arith.extf %0 : vector<1x8x8x128xbf16> to vector<1x8x8x128xf32>
    %c0_3 = arith.constant 0 : index
    %c0_4 = arith.constant 0 : index
    %c0_5 = arith.constant 0 : index
    %c0_6 = arith.constant 0 : index
    %2 = vector.load %arg3[%c0_3, %c0_4, %c0_5, %c0_6] : memref<1x1x1x128xf32, #tpu.memory_space<vmem>>, vector<1x1x1x128xf32>
    %3 = vector.broadcast %2 : vector<1x1x1x128xf32> to vector<1x8x8x128xf32>
    %4 = arith.mulf %1, %3 : vector<1x8x8x128xf32>
    %c0_7 = arith.constant 0 : index
    %c0_8 = arith.constant 0 : index
    %c0_9 = arith.constant 0 : index
    %c0_10 = arith.constant 0 : index
    %5 = vector.load %arg2[%c0_7, %c0_8, %c0_9, %c0_10] : memref<1x8x8x128xbf16, #tpu.memory_space<vmem>>, vector<1x8x8x128xbf16>
    %6 = arith.extf %5 : vector<1x8x8x128xbf16> to vector<1x8x8x128xf32>
    %c0_11 = arith.constant 0 : index
    %c0_12 = arith.constant 0 : index
    %c0_13 = arith.constant 0 : index
    %c0_14 = arith.constant 0 : index
    %7 = vector.load %arg4[%c0_11, %c0_12, %c0_13, %c0_14] : memref<1x1x1x128xf32, #tpu.memory_space<vmem>>, vector<1x1x1x128xf32>
    %8 = vector.broadcast %7 : vector<1x1x1x128xf32> to vector<1x8x8x128xf32>
    %9 = arith.mulf %6, %8 : vector<1x8x8x128xf32>
    %10 = arith.addf %4, %9 : vector<1x8x8x128xf32>
    %c0_15 = arith.constant 0 : index
    %c0_16 = arith.constant 0 : index
    %c0_17 = arith.constant 0 : index
    %c0_18 = arith.constant 0 : index
    %11 = vector.load %arg5[%c0_15, %c0_16, %c0_17, %c0_18] : memref<1x1x1x128xf32, #tpu.memory_space<vmem>>, vector<1x1x1x128xf32>
    %12 = vector.broadcast %11 : vector<1x1x1x128xf32> to vector<1x8x8x128xf32>
    %13 = arith.addf %10, %12 : vector<1x8x8x128xf32>
    %cst = arith.constant 0.000000e+00 : f32
    %14 = vector.broadcast %cst : f32 to vector<1x8x8x128xf32>
    %15 = arith.maximumf %13, %14 : vector<1x8x8x128xf32>
    %c0_19 = arith.constant 0 : index
    %c0_20 = arith.constant 0 : index
    %c0_21 = arith.constant 0 : index
    %c0_22 = arith.constant 0 : index
    %16 = vector.load %arg6[%c0_19, %c0_20, %c0_21, %c0_22] : memref<1x8x8x128xf32, #tpu.memory_space<vmem>>, vector<1x8x8x128xf32>
    tpu.vector_store %arg6[%c0_19, %c0_20, %c0_21, %c0_22], %15 {strides = array<i32>} : memref<1x8x8x128xf32, #tpu.memory_space<vmem>>, vector<1x8x8x128xf32>,
    return
  }
  func.func @transform_0(%arg0: i32) -> (i32, i32, i32, i32) {
    %c0_i32 = arith.constant 0 : i32
    %c0_i32_0 = arith.constant 0 : i32
    %c0_i32_1 = arith.constant 0 : i32
    %c0_i32_2 = arith.constant 0 : i32
    return %arg0, %c0_i32, %c0_i32_0, %c0_i32_1 : i32, i32, i32, i32
  }
  func.func @transform_1(%arg0: i32) -> (i32, i32, i32, i32) {
    %c0_i32 = arith.constant 0 : i32
    %c0_i32_0 = arith.constant 0 : i32
    %c0_i32_1 = arith.constant 0 : i32
    %c0_i32_2 = arith.constant 0 : i32
    return %arg0, %c0_i32, %c0_i32_0, %c0_i32_1 : i32, i32, i32, i32
  }
  func.func @transform_2(%arg0: i32) -> (i32, i32, i32, i32) {
    %c0_i32 = arith.constant 0 : i32
    %c0_i32_0 = arith.constant 0 : i32
    %c0_i32_1 = arith.constant 0 : i32
    %c0_i32_2 = arith.constant 0 : i32
    %c0_i32_3 = arith.constant 0 : i32
    return %c0_i32, %c0_i32_0, %c0_i32_1, %c0_i32_2 : i32, i32, i32, i32
  }
  func.func @transform_3(%arg0: i32) -> (i32, i32, i32, i32) {
    %c0_i32 = arith.constant 0 : i32
    %c0_i32_0 = arith.constant 0 : i32
    %c0_i32_1 = arith.constant 0 : i32
    %c0_i32_2 = arith.constant 0 : i32
    %c0_i32_3 = arith.constant 0 : i32
    return %c0_i32, %c0_i32_0, %c0_i32_1, %c0_i32_2 : i32, i32, i32, i32
  }
  func.func @transform_4(%arg0: i32) -> (i32, i32, i32, i32) {
    %c0_i32 = arith.constant 0 : i32
    %c0_i32_0 = arith.constant 0 : i32
    %c0_i32_1 = arith.constant 0 : i32
    %c0_i32_2 = arith.constant 0 : i32
    %c0_i32_3 = arith.constant 0 : i32
    return %c0_i32, %c0_i32_0, %c0_i32_1, %c0_i32_2 : i32, i32, i32, i32
  }
  func.func @transform_5(%arg0: i32) -> (i32, i32, i32, i32) {
    %c0_i32 = arith.constant 0 : i32
    %c0_i32_0 = arith.constant 0 : i32
    %c0_i32_1 = arith.constant 0 : i32
    %c0_i32_2 = arith.constant 0 : i32
    return %arg0, %c0_i32, %c0_i32_0, %c0_i32_1 : i32, i32, i32, i32
  }
}

</mosaic_0001>

<bundles_post_ra>
// kernel: _lambda_.5
= control target key start
LH: loop header
LB: loop body
LE: loop exit
PB: predicated region body
PF: predicated region fallthrough
CT: control target
= control target key end

     0   :  { %s507_s18 = smov 0   ;;  %s582_s0 = inlined_call_operand.vmem [shape: bf16[2,8,8,128], index: 0, kind: input, shape index: {}]   ;;  %s583_s1 = inlined_call_operand.vmem [shape: bf16[2,8,8,128], index: 1, kind: input, shape index: {}]   ;;  %s584_s2 = inlined_call_operand.vmem [shape: f32[1,1,1,128], index: 2, kind: input, shape index: {}]   ;;  %s585_s3 = inlined_call_operand.vmem [shape: f32[1,1,1,128], index: 3, kind: input, shape index: {}]   ;;  %s586_s4 = inlined_call_operand.vmem [shape: f32[1,1,1,128], index: 4, kind: input, shape index: {}]   ;;  %s587_s5 = inlined_call_operand.vmem [shape: f32[2,8,8,128], index: 5, kind: output, shape index: {}]  }
   0x1 LB: > { %s404_s19 = sadd.s32 4294967295, %s475_s18   ;;  %p408_p0 = scmp.ge.s32.totalorder %s475_s18, 1  ;;  %s475_s18 = sphi %s507_s18, %s15_s18  }
   0x2   : > { %p197_p1 = scmp.lt.s32.totalorder %s475_s18, 3 }
   0x4   : > { %p198_p2 = pnand %p408_p0, %p197_p1 }
   0x5   : > { %p230_p3 = scmp.lt.s32.totalorder (!%p198_p2), %s404_s19, 1 }
   0x6   : > { %201 = sbr.rel (%p198_p2) target bundleno = 36 (0x24), region = 40 }
   0xb   : > { %s589_s19 = smov (!%p230_p3, %s404_s19), 1  ;;  %v531_v0 = vld [vmem:[%s584_s2] ss:$0 sm:$0xff] }
   0xc   : > { %s417_s20 = sshll.u32 %s589_s19, 5  ;;  %v536_v1 = vld [vmem:[%s585_s3] ss:$0 sm:$0xff]  ;;  %s419_s8 = sshll.u32 %s589_s19, 6 }
   0xd   : > { %s521_s23 = scalar_lea.vmem %s582_s0, %s417_s20  ;;  %s526_s26 = scalar_lea.vmem %s583_s1, %s417_s20  ;;  %v468_v18 = vld [vmem:[%s586_s4] ss:$0 sm:$0xff] }
   0xe   : > { %v421_v2 = vld [vmem:[%s521_s23] sm:$0xff]   ;;  %v452_v4 = vld [vmem:[%s521_s23 + $0x8] sm:$0xff]   ;;  %v453_v14 = vld [vmem:[%s521_s23 + $0x10] sm:$0xff]   ;;  %s563_s11 = scalar_lea.vmem %s587_s5, %s419_s8 }
   0xf   : > { %v437_v3 = vld [vmem:[%s526_s26] sm:$0xff]   ;;  %v422_v5 = vunpack.c.l.bf16 %v421_v2  ;;  %v423_v7 = vunpack.c.h.bf16 %v421_v2  ;;  %v455_v9 = vld [vmem:[%s526_s26 + $0x8] sm:$0xff]   ;;  %v426_v10 = vunpack.c.l.bf16 %v452_v4  ;;  %v427_v12 = vunpack.c.h.bf16 %v452_v4  ;;  %v456_v15 = vld [vmem:[%s526_s26 + $0x10] sm:$0xff]  }
  0x10   : > { %v438_v6 = vunpack.c.l.bf16 %v437_v3  ;;  %v439_v8 = vunpack.c.h.bf16 %v437_v3  ;;  %v442_v11 = vunpack.c.l.bf16 %v455_v9  ;;  %v443_v13 = vunpack.c.h.bf16 %v455_v9  ;;  %v454_v33 = vld [vmem:[%s521_s23 + $0x18] sm:$0xff]  }
  0x11   : > { %v265_v16 = vmul.f32 %v531_v0, %v422_v5  ;;  %v266_v19 = vmul.f32 %v531_v0, %v423_v7  ;;  %v267_v21 = vmul.f32 %v531_v0, %v426_v10  ;;  %v268_v23 = vmul.f32 %v531_v0, %v427_v12  ;;  %v457_v38 = vld [vmem:[%s526_s26 + $0x18] sm:$0xff]  }
  0x12   : > { %v293_v17 = vmul.f32 %v536_v1, %v438_v6  ;;  %v294_v20 = vmul.f32 %v536_v1, %v439_v8  ;;  %v295_v22 = vmul.f32 %v536_v1, %v442_v11  ;;  %v296_v24 = vmul.f32 %v536_v1, %v443_v13 }
  0x13   : > { %v430_v27 = vunpack.c.l.bf16 %v453_v14  ;;  %v446_v28 = vunpack.c.l.bf16 %v456_v15  ;;  %v431_v31 = vunpack.c.h.bf16 %v453_v14  ;;  %v447_v32 = vunpack.c.h.bf16 %v456_v15 }
  0x14   : > { %v301_v25 = vadd.f32 %v293_v17, %v265_v16  ;;  %v302_v26 = vadd.f32 %v294_v20, %v266_v19  ;;  %v303_v29 = vadd.f32 %v295_v22, %v267_v21  ;;  %v304_v30 = vadd.f32 %v296_v24, %v268_v23 }
  0x15   : > { %v269_v36 = vmul.f32 %v531_v0, %v430_v27  ;;  %v297_v37 = vmul.f32 %v536_v1, %v446_v28  ;;  %v270_v41 = vmul.f32 %v531_v0, %v431_v31  ;;  %v298_v42 = vmul.f32 %v536_v1, %v447_v32 }
  0x16   : > { %v313_v34 = vadd.f32 %v468_v18, %v301_v25  ;;  %v314_v35 = vadd.f32 %v468_v18, %v302_v26  ;;  %v315_v39 = vadd.f32 %v468_v18, %v303_v29  ;;  %v316_v40 = vadd.f32 %v468_v18, %v304_v30 }
  0x17   : > { %v305_v45 = vadd.f32 %v297_v37, %v269_v36  ;;  %v434_v46 = vunpack.c.l.bf16 %v454_v33  ;;  %v306_v49 = vadd.f32 %v298_v42, %v270_v41  ;;  %v450_v50 = vunpack.c.l.bf16 %v457_v38 }
  0x18   : > { %v321_v43 = vmax.f32 %v313_v34, 0.0  ;;  %v322_v44 = vmax.f32 %v314_v35, 0.0  ;;  %v323_v47 = vmax.f32 %v315_v39, 0.0  ;;  %v324_v48 = vmax.f32 %v316_v40, 0.0 }
  0x19   : > { %v317_v51 = vadd.f32 %v468_v18, %v305_v45  ;;  %v271_v52 = vmul.f32 %v531_v0, %v434_v46  ;;  %v435_v53 = vunpack.c.h.bf16 %v454_v33  ;;  %v451_v54 = vunpack.c.h.bf16 %v457_v38 }
  0x1a   : > { %329 = vst [vmem:[%s563_s11] sm:$0xff] %v321_v43  ;;  %v318_v55 = vadd.f32 %v468_v18, %v306_v49  ;;  %v299_v56 = vmul.f32 %v536_v1, %v450_v50 }
  0x1b   : > { %330 = vst [vmem:[%s563_s11 + $0x8] sm:$0xff] %v322_v44  ;;  %v325_v57 = vmax.f32 %v317_v51, 0.0  ;;  %v272_v58 = vmul.f32 %v531_v0, %v435_v53  ;;  %v300_v59 = vmul.f32 %v536_v1, %v451_v54 }
  0x1c   : > { %331 = vst [vmem:[%s563_s11 + $0x10] sm:$0xff] %v323_v47  ;;  %v326_v60 = vmax.f32 %v318_v55, 0.0  ;;  %v307_v61 = vadd.f32 %v299_v56, %v271_v52 }
  0x1d   : > { %332 = vst [vmem:[%s563_s11 + $0x18] sm:$0xff] %v324_v48  ;;  %v308_v62 = vadd.f32 %v300_v59, %v272_v58 }
  0x1e   : > { %333 = vst [vmem:[%s563_s11 + $0x20] sm:$0xff] %v325_v57  ;;  %v319_v63 = vadd.f32 %v468_v18, %v307_v61 }
  0x1f   : > { %334 = vst [vmem:[%s563_s11 + $0x28] sm:$0xff] %v326_v60  ;;  %v320_v2 = vadd.f32 %v468_v18, %v308_v62 }
  0x20   : > { %v327_v3 = vmax.f32 %v319_v63, 0.0 }
  0x21   : > { %v328_v4 = vmax.f32 %v320_v2, 0.0 }
  0x22   : > { %335 = vst [vmem:[%s563_s11 + $0x30] sm:$0xff] %v327_v3 }
  0x23   : > { %336 = vst [vmem:[%s563_s11 + $0x38] sm:$0xff] %v328_v4 }
  0x24 PF: > { %s15_s18 = sadd.s32 1, %s475_s18  }
  0x25   : > { %p12_p4 = scmp.ge.s32.totalorder %s15_s18, 4  }
  0x27   :  { %14 = sbr.rel (!%p12_p4) target bundleno = 1 (0x1), region = 73 }

// kernel: _lambda_.3
= control target key start
LH: loop header
LB: loop body
LE: loop exit
PB: predicated region body
PF: predicated region fallthrough
CT: control target
= control target key end

     0   :  { %s3025_s21 = smov 0   ;;  %s3516_s0 = inlined_call_operand.vmem [shape: bf16[8,9,9,128], index: 0, kind: input, shape index: {}]   ;;  %s3517_s1 = inlined_call_operand.vmem [shape: bf16[9,128,128], index: 1, kind: input, shape index: {}]   ;;  %s3518_s2 = inlined_call_operand.vmem [shape: bf16[128,128], index: 2, kind: input, shape index: {}]   ;;  %s3519_s3 = inlined_call_operand.vmem [shape: bf16[2,8,8,128], index: 3, kind: output, shape index: {0}]   ;;  %s3520_s4 = inlined_call_operand.vmem [shape: bf16[2,8,8,128], index: 4, kind: output, shape index: {1}]   ;;  %s3521_s5 = inlined_call_operand.vmem [shape: f32[2,8,128], index: 5, kind: output, shape index: {2}]   ;;  %s3522_s6 = inlined_call_operand.vmem [shape: f32[2,8,128], index: 6, kind: output, shape index: {3}]  }
   0x1 LB: > { %s3031_s22 = sadd.s32 4294967295, %s2988_s21   ;;  %p2178_p0 = scmp.ge.s32.totalorder %s2988_s21, 1  ;;  %s2988_s21 = sphi %s3025_s21, %s17_s21  }
   0x2   : > { %p221_p1 = scmp.lt.s32.totalorder %s2988_s21, 3 }
   0x4   : > { %p222_p2 = pnand %p2178_p0, %p221_p1 }
   0x5   : > { %s2179_s11 = sshll.u32 (!%p222_p2), %s3031_s22, 2  ;;  %p272_p4 = scmp.lt.s32.totalorder (!%p222_p2), %s3031_s22, 1 }
   0x6   : > { %225 = sbr.rel (%p222_p2) target bundleno = 353 (0x161), region = 32  ;;  %p266_p3 = scmp.lt.s32.totalorder (!%p222_p2), %s2179_s11, 7 }
   0xb   : > { %v2830_v0 = vld [vmem:[%s3517_s1 + $0x78] sm:$0xff]  ;;  %v2829_v2 = vld [vmem:[%s3517_s1 + $0x70] sm:$0xff]  ;;  %v2828_v4 = vld [vmem:[%s3517_s1 + $0x68] sm:$0xff]  ;;  %s3526_s11 = smov (!%p266_p3, %s2179_s11), 7  ;;  %vm558_vm0 = vsmask.f32 3328 }
   0xc   : > { %v2818_v1 = vld [vmem:[%s3517_s1 + $0x38] sm:$0xff]  ;;  %2957 = vmatpush.bf16.msra.mxu2 %v2830_v0  ;;  %v2817_v3 = vld [vmem:[%s3517_s1 + $0x30] sm:$0xff]  ;;  %412 = vmatpush.bf16.msra.mxu0 %v2830_v0  ;;  %v2816_v5 = vld [vmem:[%s3517_s1 + $0x28] sm:$0xff]  ;;  %s2973_s26 = smul.u32 72, %s3526_s11  ;;  %vm559_vm1 = vsmask.f32 7440 }
   0xd   : > { %513 = vmatpush.bf16.msra.mxu1 %v2818_v1  ;;  %2965 = vmatpush.bf16.msra.mxu3 %v2818_v1  ;;  %v2827_v6 = vld [vmem:[%s3517_s1 + $0x60] sm:$0xff]  ;;  %v2826_v8 = vld [vmem:[%s3517_s1 + $0x58] sm:$0xff]  ;;  %v2825_v10 = vld [vmem:[%s3517_s1 + $0x50] sm:$0xff]  ;;  %s3528_s22 = smov (!%p272_p4, %s3031_s22), 1  ;;  %vm1982_vm3 = vcmask 1040384   ;;  %vm1984_vm4 = vcmask 1041408  }
   0xe   : > { %v2815_v7 = vld [vmem:[%s3517_s1 + $0x20] sm:$0xff]  ;;  %v2814_v9 = vld [vmem:[%s3517_s1 + $0x18] sm:$0xff]  ;;  %v2813_v11 = vld [vmem:[%s3517_s1 + $0x10] sm:$0xff]  ;;  %s3081_s9 = scalar_lea.vmem %s3516_s0, %s2973_s26  ;;  %s2185_s24 = sshll.u32 %s3528_s22, 3 }
   0xf   : > { %v2824_v12 = vld [vmem:[%s3517_s1 + $0x48] sm:$0xff]  ;;  %v2823_v14 = vld [vmem:[%s3517_s1 + $0x40] sm:$0xff]  ;;  %v2821_v17 = vld [vmem:[%s3081_s9 + $0x6c] sm:$0xf0]  ;;  %s289_s27 = scalar_lea.vmem %s3522_s6, %s2185_s24  ;;  %s285_s29 = scalar_lea.vmem %s3521_s5, %s2185_s24 }
  0x10   : > { %2958 = vmatpush.bf16.msra.mxu2 %v2829_v2  ;;  %413 = vmatpush.bf16.msra.mxu0 %v2829_v2  ;;  %v2812_v13 = vld [vmem:[%s3517_s1 + $0x8] sm:$0xff]  ;;  %v2811_v15 = vld [vmem:[%s3517_s1] sm:$0xff]  ;;  %v2838_v22 = vld [vmem:[%s3517_s1 + $0xb8] sm:$0xff] }
  0x11   : > { %514 = vmatpush.bf16.msra.mxu1 %v2817_v3  ;;  %2966 = vmatpush.bf16.msra.mxu3 %v2817_v3  ;;  %v2221_v16 = vld [vmem:[%s3081_s9 + $0x68] sm:$0xf]  ;;  %v2261_v18 = vld [vmem:[%s3081_s9] sm:$0xf]  ;;  %v2850_v23 = vld [vmem:[%s3517_s1 + $0xf8] sm:$0xff] }
  0x12   : > { %v2807_v19 = vld [vmem:[%s3081_s9 + $0x4] sm:$0xf0]  ;;  %v2269_v20 = vld [vmem:[%s3081_s9 + $0x20] sm:$0xf]  ;;  %v2819_v25 = vld [vmem:[%s3081_s9 + $0x4c] sm:$0xf0]  ;;  %v2222_v26 = vor.u32 %v2821_v17, %v2221_v16 }
  0x13   : > { %v2809_v21 = vld [vmem:[%s3081_s9 + $0x24] sm:$0xf0]  ;;  %v2262_v27 = vor.u32 %v2807_v19, %v2261_v18  ;;  %v2870_v29 = vld [vmem:[%s3517_s1 + $0x178] sm:$0xff]  ;;  %v2837_v32 = vld [vmem:[%s3517_s1 + $0xb0] sm:$0xff] }
  0x14   : > { %2959 = vmatpush.bf16.msra.mxu2 %v2828_v4  ;;  %414 = vmatpush.bf16.msra.mxu0 %v2828_v4  ;;  %v2213_v24 = vld [vmem:[%s3081_s9 + $0x48] sm:$0xf]  ;;  %v2270_v28 = vor.u32 %v2809_v21, %v2269_v20  ;;  %v2862_v31 = vld [vmem:[%s3517_s1 + $0x138] sm:$0xff]  ;;  %v542_v33 = vld [vmem:[%s3081_s9] sm:$0xf] }
  0x15   : > { %515 = vmatpush.bf16.msra.mxu1 %v2816_v5  ;;  %2967 = vmatpush.bf16.msra.mxu3 %v2816_v5  ;;  %v2214_v30 = vor.u32 %v2819_v25, %v2213_v24  ;;  %v544_v34 = vld [vmem:[%s3081_s9 + $0x8] sm:$0xf]  ;;  %v2849_v35 = vld [vmem:[%s3517_s1 + $0xf0] sm:$0xff]  ;;  %v2501_v37 = vld [vmem:[%s3081_s9 + $0x98] sm:$0xf]  ;;  %v562_v39 = vshrl.u32 %v542_v33, 16 }
  0x16   : > { %v2499_v36 = vld [vmem:[%s3081_s9 + $0x90] sm:$0xf]  ;;  %v565_v40 = vshll.u32 %v542_v33, 16  ;;  %v576_v41 = vshrl.u32 %v544_v34, 16  ;;  %v579_v42 = vshll.u32 %v544_v34, 16  ;;  %v2836_v44 = vld [vmem:[%s3517_s1 + $0xa8] sm:$0xff]  ;;  %vm3177_vm2 = vmor %vm558_vm0, %vm559_vm1 }
  0x17   : > { %v2869_v38 = vld [vmem:[%s3517_s1 + $0x170] sm:$0xff]  ;;  %v1078_v45 = vshrl.u32 %v2499_v36, 16  ;;  %v1081_v46 = vshll.u32 %v2499_v36, 16  ;;  %v1092_v47 = vshrl.u32 %v2501_v37, 16  ;;  %v1095_v48 = vshll.u32 %v2501_v37, 16  ;;  %v2848_v49 = vld [vmem:[%s3517_s1 + $0xe8] sm:$0xff] }
  0x18   : > { %2960 = vmatpush.bf16.msra.mxu2 %v2827_v6  ;;  %415 = vmatpush.bf16.msra.mxu0 %v2827_v6  ;;  %v2861_v43 = vld [vmem:[%s3517_s1 + $0x130] sm:$0xff]  ;;  %v2868_v50 = vld [vmem:[%s3517_s1 + $0x168] sm:$0xff]  ;;  %v2835_v52 = vld [vmem:[%s3517_s1 + $0xa0] sm:$0xff]  ;;  %v564_v55 = vrot.slane %v562_v39, 4  ;;  %v567_v56 = vrot.slane %v565_v40, 5  ;;  %v578_v57 = vrot.slane %v576_v41, 4 }
  0x19   : > { %516 = vmatpush.bf16.msra.mxu1 %v2815_v7  ;;  %2968 = vmatpush.bf16.msra.mxu3 %v2815_v7  ;;  %v2860_v51 = vld [vmem:[%s3517_s1 + $0x128] sm:$0xff]  ;;  %v2847_v53 = vld [vmem:[%s3517_s1 + $0xe0] sm:$0xff]  ;;  %v581_v58 = vrot.slane %v579_v42, 5  ;;  %v2225_v60 = vld [vmem:[%s3081_s9 + $0x78] sm:$0xf]  ;;  %v1080_v63 = vrot.slane %v1078_v45, 4 }
  0x1a   : > { %v543_v54 = vld [vmem:[%s3081_s9 + $0x4] sm:$0x1]  ;;  %v2822_v61 = vld [vmem:[%s3081_s9 + $0x7c] sm:$0xf0]  ;;  %v545_v62 = vld [vmem:[%s3081_s9 + $0xc] sm:$0x1] }
  0x1b   : > { %v2867_v59 = vld [vmem:[%s3517_s1 + $0x160] sm:$0xff]  ;;  %v1083_v0 = vrot.slane %v1081_v46, 5  ;;  %v1094_v1 = vrot.slane %v1092_v47, 4  ;;  %v1097_v2 = vrot.slane %v1095_v48, 5  ;;  %v2265_v3 = vld [vmem:[%s3081_s9 + $0x10] sm:$0xf]  ;;  %v2226_v21 = vor.u32 %v2822_v61, %v2225_v60 }
  0x1c   : > { %2961 = vmatpush.bf16.msra.mxu2 %v2826_v8  ;;  %416 = vmatpush.bf16.msra.mxu0 %v2826_v8  ;;  %v2500_v4 = vld [vmem:[%s3081_s9 + $0x94] sm:$0x1]  ;;  %v2502_v5 = vld [vmem:[%s3081_s9 + $0x9c] sm:$0x1]  ;;  %v2808_v6 = vld [vmem:[%s3081_s9 + $0x14] sm:$0xf0] }
  0x1d   : > { %517 = vmatpush.bf16.msra.mxu1 %v2814_v9  ;;  %2969 = vmatpush.bf16.msra.mxu3 %v2814_v9  ;;  %v2273_v7 = vld [vmem:[%s3081_s9 + $0x30] sm:$0xf]  ;;  %v2810_v8 = vld [vmem:[%s3081_s9 + $0x34] sm:$0xf0]  ;;  %v1084_v17 = vor.u32 %v1083_v0, %v1080_v63  ;;  %v1087_v18 = vshll.u32 %v2500_v4, 16  ;;  %v1098_v19 = vor.u32 %v1097_v2, %v1094_v1  ;;  %v1101_v20 = vshll.u32 %v2502_v5, 16 }
  0x1e   : > { %v2217_v9 = vld [vmem:[%s3081_s9 + $0x58] sm:$0xf]  ;;  %v546_v39 = vld [vmem:[%s3081_s9 + $0x10] sm:$0xf]  ;;  %v2832_v46 = vld [vmem:[%s3517_s1 + $0x88] sm:$0xff] }
  0x1f   : > { %v2834_v16 = vld [vmem:[%s3517_s1 + $0x98] sm:$0xff]  ;;  %v1085_v34 = vrot.slane %v1084_v17, 4  ;;  %v1099_v36 = vrot.slane %v1098_v19, 4  ;;  %v1103_v37 = vrot.slane %v1101_v20, 5  ;;  %v2845_v41 = vld [vmem:[%s3517_s1 + $0xd0] sm:$0xff]  ;;  %v2856_v60 = vld [vmem:[%s3517_s1 + $0x108] sm:$0xff] }
  0x20   : > { %2962 = vmatpush.bf16.msra.mxu2 %v2825_v10  ;;  %417 = vmatpush.bf16.msra.mxu0 %v2825_v10  ;;  %v2820_v10 = vld [vmem:[%s3081_s9 + $0x5c] sm:$0xf0]  ;;  %v2866_v24 = vld [vmem:[%s3517_s1 + $0x158] sm:$0xff]  ;;  %v2857_v45 = vld [vmem:[%s3517_s1 + $0x110] sm:$0xff] }
  0x21   : > { %518 = vmatpush.bf16.msra.mxu1 %v2813_v11  ;;  %2970 = vmatpush.bf16.msra.mxu3 %v2813_v11  ;;  %v568_v11 = vor.u32 %v567_v56, %v564_v55  ;;  %v2218_v25 = vor.u32 %v2820_v10, %v2217_v9  ;;  %v548_v40 = vld [vmem:[%s3081_s9 + $0x18] sm:$0xf]  ;;  %v2864_v55 = vld [vmem:[%s3517_s1 + $0x148] sm:$0xff]  ;;  %v2831_v61 = vld [vmem:[%s3517_s1 + $0x80] sm:$0xff] }
  0x22   : > { %v2863_v63 = vld [vmem:[%s3517_s1 + $0x140] sm:$0xff]  ;;  %v2839_v2 = vld [vmem:[%s3081_s9 + $0x94] sm:$0xf0]  ;;  %v2506_v20 = vld [vmem:[%s3081_s9 + $0xac] sm:$0x1] }
  0x23   : > { %v2882_v5 = vld [vmem:[%s3517_s1 + $0x1b8] sm:$0xff] }
  0x24   : > { %2963 = vmatpush.bf16.msra.mxu2 %v2824_v12  ;;  %418 = vmatpush.bf16.msra.mxu0 %v2824_v12  ;;  %v571_v12 = vshll.u32 %v543_v54, 16  ;;  %v2844_v54 = vld [vmem:[%s3517_s1 + $0xc8] sm:$0xff]  ;;  %v2910_v19 = vld [vmem:[%s3518_s2 + $0x38] sm:$0xff] }
  0x25   : > { %519 = vmatpush.bf16.msra.mxu1 %v2812_v13  ;;  %2971 = vmatpush.bf16.msra.mxu3 %v2812_v13  ;;  %v582_v13 = vor.u32 %v581_v58, %v578_v57 }
  0x28   : > { %2964 = vmatpush.bf16.msra.mxu2 %v2823_v14  ;;  %419 = vmatpush.bf16.msra.mxu0 %v2823_v14  ;;  %v585_v14 = vshll.u32 %v545_v62, 16  ;;  %v3218_v62 = vld [vmem:[%s3081_s9 + $0x90] sm:$0xf] }
  0x29   : > { %520 = vmatpush.bf16.msra.mxu1 %v2811_v15  ;;  %2972 = vmatpush.bf16.msra.mxu3 %v2811_v15  ;;  %v2859_v15 = vld [vmem:[%s3517_s1 + $0x120] sm:$0xff] }
  0x2b   : > { %430 = vmatmul.bf16.vlgmr.msra.gmra.mxu2 %v2222_v26  ;;  %420 = vmatmul.bf16.vlgmr.msra.gmra.mxu0 %v2214_v30  ;;  %v2846_v26 = vld [vmem:[%s3517_s1 + $0xd8] sm:$0xff]  ;;  %v587_v30 = vrot.slane %v585_v14, 5 }
  0x2c   : > { %754 = vmatpush.bf16.msrb.mxu2 %v2838_v22  ;;  %521 = vmatmul.bf16.vlgmr.msra.gmra.mxu1 %v2262_v27  ;;  %v2266_v22 = vor.u32 %v2808_v6, %v2265_v3  ;;  %v569_v27 = vrot.slane %v568_v11, 4  ;;  %v547_v6 = vld [vmem:[%s3081_s9 + $0x14] sm:$0x1] }
  0x2d   : > { %889 = vmatpush.bf16.msrb.mxu3 %v2850_v23  ;;  %1270 = vmatpush.bf16.msrb.mxu1 %v2870_v29  ;;  %v2274_v23 = vor.u32 %v2810_v8, %v2273_v7  ;;  %v583_v29 = vrot.slane %v582_v13, 4  ;;  %v2843_v7 = vld [vmem:[%s3517_s1 + $0xc0] sm:$0xff]  ;;  %v549_v8 = vld [vmem:[%s3081_s9 + $0x1c] sm:$0x1] }
  0x2e   : > { %531 = vmatmul.bf16.vlgmr.msra.gmra.mxu3 %v2270_v28  ;;  %1024 = vmatpush.bf16.msrb.mxu0 %v2862_v31  ;;  %v573_v28 = vrot.slane %v571_v12, 5  ;;  %v2858_v31 = vld [vmem:[%s3517_s1 + $0x118] sm:$0xff]  ;;  %v2504_v13 = vld [vmem:[%s3081_s9 + $0xa4] sm:$0x1] }
  0x2f   : > { %v588_v47 = vsel %vm3177_vm2, %v583_v29, %v587_v30  ;;  %v1115_v30 = vshll.u32 %v2504_v13, 16 }
  0x30   : > { %755 = vmatpush.bf16.msrb.mxu2 %v2837_v32  ;;  %v2833_v32 = vld [vmem:[%s3517_s1 + $0x90] sm:$0xff]  ;;  %v574_v42 = vsel %vm3177_vm2, %v569_v27, %v573_v28  ;;  %v691_v1 = vunpack.c.l.b16 %v588_v47 }
  0x31   : > { %890 = vmatpush.bf16.msrb.mxu3 %v2849_v35  ;;  %1271 = vmatpush.bf16.msrb.mxu1 %v2869_v38  ;;  %v1089_v35 = vrot.slane %v1087_v18, 5  ;;  %v2865_v38 = vld [vmem:[%s3517_s1 + $0x150] sm:$0xff]  ;;  %v690_v0 = vunpack.c.l.b16 %v574_v42  ;;  %v2453_v18 = vld [vmem:[%s3081_s9 + $0xd8] sm:$0xf] }
  0x32   : > { %1025 = vmatpush.bf16.msrb.mxu0 %v2861_v43  ;;  %v2503_v43 = vld [vmem:[%s3081_s9 + $0xa0] sm:$0xf]  ;;  %v2507_v47 = vld [vmem:[%s3081_s9 + $0xb0] sm:$0xf] }
  0x33   : > { %v1090_v48 = vsel %vm3177_vm2, %v1085_v34, %v1089_v35  ;;  %v1106_v56 = vshrl.u32 %v2503_v43, 16  ;;  %v1109_v57 = vshll.u32 %v2503_v43, 16  ;;  %v698_v27 = vpack.c.b16 %v691_v1, %v690_v0  ;;  %v550_v43 = vld [vmem:[%s3081_s9 + $0x20] sm:$0xf] }
  0x34   : > { %756 = vmatpush.bf16.msrb.mxu2 %v2836_v44  ;;  %v2505_v44 = vld [vmem:[%s3081_s9 + $0xa8] sm:$0xf]  ;;  %v1206_v3 = vunpack.c.l.b16 %v1090_v48  ;;  %v2509_v48 = vld [vmem:[%s3081_s9 + $0xb8] sm:$0xf]  ;;  %v2879_v1 = vld [vmem:[%s3517_s1 + $0x1a0] sm:$0xff] }
  0x35   : > { %891 = vmatpush.bf16.msrb.mxu3 %v2848_v49  ;;  %1272 = vmatpush.bf16.msrb.mxu1 %v2868_v50  ;;  %v1104_v49 = vsel %vm3177_vm2, %v1099_v36, %v1103_v37  ;;  %v590_v50 = vshrl.u32 %v546_v39, 16  ;;  %v1120_v58 = vshrl.u32 %v2505_v44, 16  ;;  %v1108_v14 = vrot.slane %v1106_v56, 4 }
  0x36   : > { %1026 = vmatpush.bf16.msrb.mxu0 %v2860_v51  ;;  %v593_v51 = vshll.u32 %v546_v39, 16  ;;  %v1207_v4 = vunpack.c.l.b16 %v1104_v49  ;;  %v1129_v36 = vshll.u32 %v2506_v20, 16  ;;  %v2902_v39 = vld [vmem:[%s3517_s1 + $0x238] sm:$0xff]  ;;  %v621_v56 = vshll.u32 %v550_v43, 16 }
  0x37   : > { %v592_v9 = vrot.slane %v590_v50, 4  ;;  %v1151_v0 = vshll.u32 %v2509_v48, 16 }
  0x38   : > { %757 = vmatpush.bf16.msrb.mxu2 %v2835_v52  ;;  %v604_v52 = vshrl.u32 %v548_v40, 16  ;;  %v595_v10 = vrot.slane %v593_v51, 5  ;;  %v1214_v28 = vpack.c.b16 %v1207_v4, %v1206_v3 }
  0x39   : > { %892 = vmatpush.bf16.msrb.mxu3 %v2847_v53  ;;  %1273 = vmatpush.bf16.msrb.mxu1 %v2867_v59  ;;  %v607_v53 = vshll.u32 %v548_v40, 16  ;;  %v1123_v59 = vshll.u32 %v2505_v44, 16  ;;  %v2909_v40 = vld [vmem:[%s3518_s2 + $0x30] sm:$0xff]  ;;  %v552_v44 = vld [vmem:[%s3081_s9 + $0x28] sm:$0xf] }
  0x3a   : > { %1027 = vmatpush.bf16.msrb.mxu0 %v2859_v15  ;;  %v606_v11 = vrot.slane %v604_v52, 4  ;;  %v1111_v15 = vrot.slane %v1109_v57, 5  ;;  %v596_v29 = vor.u32 %v595_v10, %v592_v9  ;;  %v1131_v52 = vrot.slane %v1129_v36, 5  ;;  %v2900_v9 = vld [vmem:[%s3517_s1 + $0x228] sm:$0xff] }
  0x3b   : > { %435 = vmatmul.bf16.gmra.mxu2 %v2226_v21  ;;  %425 = vmatmul.bf16.gmra.mxu0 %v2218_v25  ;;  %v609_v12 = vrot.slane %v607_v53, 5  ;;  %v1125_v17 = vrot.slane %v1123_v59, 5  ;;  %v2855_v21 = vld [vmem:[%s3517_s1 + $0x100] sm:$0xff]  ;;  %v599_v25 = vshll.u32 %v547_v6, 16  ;;  %v2880_v53 = vld [vmem:[%s3517_s1 + $0x1a8] sm:$0xff]  ;;  %v632_v57 = vshrl.u32 %v552_v44, 16 }
  0x3c   : > { %758 = vmatpush.bf16.msrb.mxu2 %v2834_v16  ;;  %526 = vmatmul.bf16.gmra.mxu1 %v2266_v22  ;;  %v1122_v16 = vrot.slane %v1120_v58, 4  ;;  %v2382_v22 = vor.u32 %v2839_v2, %v3218_v62  ;;  %v1112_v34 = vor.u32 %v1111_v15, %v1108_v14  ;;  %v635_v58 = vshll.u32 %v552_v44, 16  ;;  %v2892_v59 = vld [vmem:[%s3517_s1 + $0x1e8] sm:$0xff]  ;;  %v2891_v6 = vld [vmem:[%s3517_s1 + $0x1e0] sm:$0xff]  ;;  %v2508_v15 = vld [vmem:[%s3081_s9 + $0xb4] sm:$0x1] }
  0x3d   : > { %1274 = vmatpush.bf16.msrb.mxu1 %v2866_v24  ;;  %893 = vmatpush.bf16.msrb.mxu3 %v2846_v26  ;;  %v2894_v24 = vld [vmem:[%s3517_s1 + $0x1f8] sm:$0xff]  ;;  %v613_v26 = vshll.u32 %v549_v8, 16  ;;  %v1137_v62 = vshll.u32 %v2507_v47, 16  ;;  %v553_v8 = vld [vmem:[%s3081_s9 + $0x2c] sm:$0x1]  ;;  %v2907_v14 = vld [vmem:[%s3518_s2 + $0x20] sm:$0xff] }
  0x3e   : > { %536 = vmatmul.bf16.gmra.mxu3 %v2274_v23  ;;  %1028 = vmatpush.bf16.msrb.mxu0 %v2858_v31  ;;  %v2851_v23 = vld [vmem:[%s3081_s9 + $0xdc] sm:$0xf0]  ;;  %v2881_v31 = vld [vmem:[%s3517_s1 + $0x1b0] sm:$0xff]  ;;  %v1126_v35 = vor.u32 %v1125_v17, %v1122_v16  ;;  %v1113_v50 = vrot.slane %v1112_v34, 4  ;;  %v637_v13 = vrot.slane %v635_v58, 5  ;;  %v1143_v34 = vshll.u32 %v2508_v15, 16 }
  0x3f   : > { %v3249_v37 = vor.u32 %v2851_v23, %v2453_v18  ;;  %v615_v42 = vrot.slane %v613_v26, 5  ;;  %v1139_v17 = vrot.slane %v1137_v62, 5  ;;  %v2840_v26 = vld [vmem:[%s3081_s9 + $0xa4] sm:$0xf0]  ;;  %v554_v58 = vld [vmem:[%s3081_s9 + $0x30] sm:$0xf] }
  0x40   : > { %759 = vmatpush.bf16.msrb.mxu2 %v2833_v32  ;;  %v610_v32 = vor.u32 %v609_v12, %v606_v11  ;;  %v1127_v51 = vrot.slane %v1126_v35, 4  ;;  %v623_v11 = vrot.slane %v621_v56, 5  ;;  %v634_v12 = vrot.slane %v632_v57, 4  ;;  %v2906_v35 = vld [vmem:[%s3518_s2 + $0x18] sm:$0xff]  ;;  %v2889_v56 = vld [vmem:[%s3517_s1 + $0x1d0] sm:$0xff]  ;;  %v2875_v15 = vld [vmem:[%s3517_s1 + $0x180] sm:$0xff] }
  0x41   : > { %1275 = vmatpush.bf16.msrb.mxu1 %v2865_v38  ;;  %894 = vmatpush.bf16.msrb.mxu3 %v2845_v41  ;;  %v2893_v38 = vld [vmem:[%s3517_s1 + $0x1f0] sm:$0xff]  ;;  %v601_v41 = vrot.slane %v599_v25, 5  ;;  %v2510_v25 = vld [vmem:[%s3081_s9 + $0xbc] sm:$0x1]  ;;  %v2511_v62 = vld [vmem:[%s3081_s9 + $0xc0] sm:$0xf] }
  0x42   : > { %1029 = vmatpush.bf16.msrb.mxu0 %v2857_v45  ;;  %v597_v45 = vrot.slane %v596_v29, 4  ;;  %v611_v49 = vrot.slane %v610_v32, 4  ;;  %v2852_v29 = vld [vmem:[%s3081_s9 + $0xec] sm:$0xf0]  ;;  %v641_v32 = vshll.u32 %v553_v8, 16  ;;  %v638_v36 = vor.u32 %v637_v13, %v634_v12  ;;  %v2898_v57 = vld [vmem:[%s3517_s1 + $0x218] sm:$0xff] }
  0x43   : > { %v1165_v12 = vshll.u32 %v2511_v62, 16 }
  0x44   : > { %760 = vmatpush.bf16.msrb.mxu2 %v2832_v46  ;;  %v1117_v46 = vrot.slane %v1115_v30, 5  ;;  %v602_v2 = vsel %vm3177_vm2, %v597_v45, %v601_v41  ;;  %v616_v3 = vsel %vm3177_vm2, %v611_v49, %v615_v42  ;;  %v2890_v41 = vld [vmem:[%s3517_s1 + $0x1d8] sm:$0xff]  ;;  %v2899_v42 = vld [vmem:[%s3517_s1 + $0x220] sm:$0xff] }
  0x45   : > { %1276 = vmatpush.bf16.msrb.mxu1 %v2864_v55  ;;  %895 = vmatpush.bf16.msrb.mxu3 %v2844_v54  ;;  %v2908_v54 = vld [vmem:[%s3518_s2 + $0x28] sm:$0xff]  ;;  %v618_v55 = vshrl.u32 %v550_v43, 16  ;;  %v692_v20 = vunpack.c.l.b16 %v602_v2 }
  0x46   : > { %1030 = vmatpush.bf16.msrb.mxu0 %v2856_v60  ;;  %v2901_v60 = vld [vmem:[%s3517_s1 + $0x230] sm:$0xff]  ;;  %v1118_v4 = vsel %vm3177_vm2, %v1113_v50, %v1117_v46  ;;  %v643_v50 = vrot.slane %v641_v32, 5 }
  0x47   : > { %v620_v10 = vrot.slane %v618_v55, 4  ;;  %v1208_v23 = vunpack.c.l.b16 %v1118_v4  ;;  %v2888_v4 = vld [vmem:[%s3517_s1 + $0x1c8] sm:$0xff] }
  0x48   : > { %761 = vmatpush.bf16.msrb.mxu2 %v2831_v61  ;;  %v1134_v61 = vshrl.u32 %v2507_v47, 16  ;;  %v2877_v47 = vld [vmem:[%s3517_s1 + $0x190] sm:$0xff] }
  0x49   : > { %1277 = vmatpush.bf16.msrb.mxu1 %v2863_v63  ;;  %896 = vmatpush.bf16.msrb.mxu3 %v2843_v7  ;;  %v1148_v63 = vshrl.u32 %v2509_v48, 16  ;;  %v551_v7 = vld [vmem:[%s3081_s9 + $0x24] sm:$0x1]  ;;  %v624_v30 = vor.u32 %v623_v11, %v620_v10  ;;  %v2904_v10 = vld [vmem:[%s3518_s2 + $0x8] sm:$0xff]  ;;  %v1162_v11 = vshrl.u32 %v2511_v62, 16 }
  0x4a   : > { %1031 = vmatpush.bf16.msrb.mxu0 %v2855_v21  ;;  %v1136_v16 = vrot.slane %v1134_v61, 4  ;;  %v693_v21 = vunpack.c.l.b16 %v616_v3 }
  0x4b   : > { %762 = vmatmul.bf16.vlgmr.msrb.gmra.mxu2 %v698_v27  ;;  %v1150_v18 = vrot.slane %v1148_v63, 4  ;;  %v2457_v27 = vld [vmem:[%s3081_s9 + $0xe8] sm:$0xf]  ;;  %v625_v48 = vrot.slane %v624_v30, 4  ;;  %v2903_v30 = vld [vmem:[%s3518_s2] sm:$0xff]  ;;  %v1164_v32 = vrot.slane %v1162_v11, 4 }
  0x4c   : > { %1405 = vmatpush.bf16.msra.mxu2 %v2882_v5  ;;  %1278 = vmatmul.bf16.vlgmr.msrb.gmra.mxu1 %v1214_v28  ;;  %v1132_v5 = vsel %vm3177_vm2, %v1127_v51, %v1131_v52  ;;  %v2878_v28 = vld [vmem:[%s3517_s1 + $0x198] sm:$0xff]  ;;  %v699_v43 = vpack.c.b16 %v693_v21, %v692_v20  ;;  %v3317_v46 = vor.u32 %v2852_v29, %v2457_v27  ;;  %v1145_v51 = vrot.slane %v1143_v34, 5  ;;  %v2513_v63 = vld [vmem:[%s3081_s9 + $0xc8] sm:$0xf] }
  0x4d   : > { %1887 = vmatpush.bf16.msra.mxu1 %v2910_v19  ;;  %1540 = vmatpush.bf16.msra.mxu3 %v2894_v24  ;;  %v1153_v19 = vrot.slane %v1151_v0, 5  ;;  %v1209_v24 = vunpack.c.l.b16 %v1132_v5  ;;  %v639_v52 = vrot.slane %v638_v36, 4  ;;  %v2905_v0 = vld [vmem:[%s3518_s2 + $0x10] sm:$0xff]  ;;  %v1176_v13 = vshrl.u32 %v2513_v63, 16 }
  0x4e   : > { %897 = vmatmul.bf16.vlgmr.msrb.gmra.mxu3 %v2382_v22  ;;  %1032 = vmatmul.bf16.vlgmr.msrb.gmra.mxu0 %v3249_v37  ;;  %v2385_v22 = vld [vmem:[%s3081_s9 + $0xa0] sm:$0xf]  ;;  %v2897_v5 = vld [vmem:[%s3517_s1 + $0x210] sm:$0xff]  ;;  %v1167_v34 = vrot.slane %v1165_v12, 5 }
  0x4f   : > { %1786 = vmatpush.bf16.msra.mxu0 %v2902_v39  ;;  %v1154_v39 = vor.u32 %v1153_v19, %v1150_v18  ;;  %v1215_v44 = vpack.c.b16 %v1209_v24, %v1208_v23  ;;  %v2386_v45 = vor.u32 %v2840_v26, %v2385_v22  ;;  %v555_v22 = vld [vmem:[%s3081_s9 + $0x34] sm:$0x1]  ;;  %v557_v23 = vld [vmem:[%s3081_s9 + $0x3c] sm:$0x1]  ;;  %v2887_v24 = vld [vmem:[%s3517_s1 + $0x1c0] sm:$0xff] }
  0x50   : > { %1406 = vmatpush.bf16.msra.mxu2 %v2881_v31  ;;  %v627_v31 = vshll.u32 %v551_v7, 16  ;;  %v649_v7 = vshll.u32 %v554_v58, 16 }
  0x51   : > { %1888 = vmatpush.bf16.msra.mxu1 %v2909_v40  ;;  %1541 = vmatpush.bf16.msra.mxu3 %v2893_v38  ;;  %v1140_v38 = vor.u32 %v1139_v17, %v1136_v16  ;;  %v1157_v40 = vshll.u32 %v2510_v25, 16  ;;  %v2389_v16 = vld [vmem:[%s3081_s9 + $0xb0] sm:$0xf]  ;;  %v2841_v17 = vld [vmem:[%s3081_s9 + $0xb4] sm:$0xf0]  ;;  %v2896_v25 = vld [vmem:[%s3517_s1 + $0x208] sm:$0xff] }
  0x52   : > { %v629_v49 = vrot.slane %v627_v31, 5  ;;  %v651_v27 = vrot.slane %v649_v7, 5  ;;  %v2512_v31 = vld [vmem:[%s3081_s9 + $0xc4] sm:$0x1] }
  0x53   : > { %1787 = vmatpush.bf16.msra.mxu0 %v2901_v60  ;;  %v1159_v55 = vrot.slane %v1157_v40, 5  ;;  %v2876_v60 = vld [vmem:[%s3517_s1 + $0x188] sm:$0xff]  ;;  %v2390_v40 = vor.u32 %v2841_v17, %v2389_v16  ;;  %v2854_v16 = vld [vmem:[%s3081_s9 + $0x10c] sm:$0xf0] }
  0x54   : > { %1407 = vmatpush.bf16.msra.mxu2 %v2880_v53  ;;  %v1141_v53 = vrot.slane %v1140_v38, 4  ;;  %v630_v61 = vsel %vm3177_vm2, %v625_v48, %v629_v49  ;;  %v2514_v38 = vld [vmem:[%s3081_s9 + $0xcc] sm:$0x1]  ;;  %v669_v48 = vshll.u32 %v557_v23, 16  ;;  %v1171_v49 = vshll.u32 %v2512_v31, 16 }
  0x55   : > { %1889 = vmatpush.bf16.msra.mxu1 %v2908_v54  ;;  %1542 = vmatpush.bf16.msra.mxu3 %v2892_v59  ;;  %v1155_v54 = vrot.slane %v1154_v39, 4  ;;  %v556_v59 = vld [vmem:[%s3081_s9 + $0x38] sm:$0xf]  ;;  %v694_v18 = vunpack.c.l.b16 %v630_v61  ;;  %v2708_v23 = vld [vmem:[%s3081_s9 + $0xc] sm:$0x1] }
  0x56   : > { %v1146_v2 = vsel %vm3177_vm2, %v1141_v53, %v1145_v51  ;;  %v660_v8 = vshrl.u32 %v556_v59, 16  ;;  %v1168_v51 = vor.u32 %v1167_v34, %v1164_v32  ;;  %v1185_v53 = vshll.u32 %v2514_v38, 16  ;;  %v2711_v31 = vld [vmem:[%s3081_s9 + $0x18] sm:$0xf]  ;;  %v2713_v32 = vld [vmem:[%s3081_s9 + $0x20] sm:$0xf] }
  0x57   : > { %1788 = vmatpush.bf16.msra.mxu0 %v2900_v9  ;;  %v1160_v3 = vsel %vm3177_vm2, %v1155_v54, %v1159_v55  ;;  %v663_v9 = vshll.u32 %v556_v59, 16  ;;  %v1210_v20 = vunpack.c.l.b16 %v1146_v2 }
  0x58   : > { %1408 = vmatpush.bf16.msra.mxu2 %v2879_v1  ;;  %v644_v1 = vsel %vm3177_vm2, %v639_v52, %v643_v50  ;;  %v1211_v21 = vunpack.c.l.b16 %v1160_v3  ;;  %v1187_v62 = vrot.slane %v1185_v53, 5 }
  0x59   : > { %1890 = vmatpush.bf16.msra.mxu1 %v2907_v14  ;;  %1543 = vmatpush.bf16.msra.mxu3 %v2891_v6  ;;  %v646_v6 = vshrl.u32 %v554_v58, 16  ;;  %v1179_v14 = vshll.u32 %v2513_v63, 16  ;;  %v695_v19 = vunpack.c.l.b16 %v644_v1  ;;  %v665_v29 = vrot.slane %v663_v9, 5  ;;  %v2707_v63 = vld [vmem:[%s3081_s9 + $0x8] sm:$0xf] }
  0x5a   : > { %v1173_v58 = vrot.slane %v1171_v49, 5  ;;  %v2883_v49 = vld [vmem:[%s3081_s9 + $0x54] sm:$0xf0] }
  0x5b   : > { %1789 = vmatpush.bf16.msra.mxu0 %v2899_v42  ;;  %767 = vmatmul.bf16.gmra.mxu2 %v699_v43  ;;  %v648_v26 = vrot.slane %v646_v6, 4  ;;  %v1181_v36 = vrot.slane %v1179_v14, 5  ;;  %v700_v39 = vpack.c.b16 %v695_v19, %v694_v18  ;;  %v2461_v42 = vld [vmem:[%s3081_s9 + $0xf8] sm:$0xf]  ;;  %v2853_v43 = vld [vmem:[%s3081_s9 + $0xfc] sm:$0xf0] }
  0x5c   : > { %1409 = vmatpush.bf16.msra.mxu2 %v2878_v28  ;;  %1283 = vmatmul.bf16.gmra.mxu1 %v1215_v44  ;;  %v662_v28 = vrot.slane %v660_v8, 4  ;;  %v2895_v44 = vld [vmem:[%s3517_s1 + $0x200] sm:$0xff]  ;;  %v3379_v54 = vor.u32 %v2853_v43, %v2461_v42  ;;  %v1597_v6 = vshll.u32 %v2707_v63, 16  ;;  %v2842_v14 = vld [vmem:[%s3081_s9 + $0xc4] sm:$0xf0]  ;;  %v1639_v42 = vshll.u32 %v2713_v32, 16 }
  0x5d   : > { %1891 = vmatpush.bf16.msra.mxu1 %v2906_v35  ;;  %1544 = vmatpush.bf16.msra.mxu3 %v2890_v41  ;;  %v1178_v35 = vrot.slane %v1176_v13, 4  ;;  %v1216_v41 = vpack.c.b16 %v1211_v21, %v1210_v20  ;;  %v2393_v13 = vld [vmem:[%s3081_s9 + $0xc0] sm:$0xf] }
  0x5e   : > { %902 = vmatmul.bf16.gmra.mxu3 %v2386_v45  ;;  %1037 = vmatmul.bf16.gmra.mxu0 %v3317_v46  ;;  %v652_v45 = vor.u32 %v651_v27, %v648_v26  ;;  %v666_v50 = vor.u32 %v665_v29, %v662_v28  ;;  %v1599_v18 = vrot.slane %v1597_v6, 5  ;;  %v1603_v28 = vshll.u32 %v2708_v23, 16  ;;  %v2715_v6 = vld [vmem:[%s3081_s9 + $0x28] sm:$0xf]  ;;  %v2716_v23 = vld [vmem:[%s3081_s9 + $0x2c] sm:$0x1] }
  0x5f   : > { %1790 = vmatpush.bf16.msra.mxu0 %v2898_v57  ;;  %v1182_v52 = vor.u32 %v1181_v36, %v1178_v35  ;;  %v671_v57 = vrot.slane %v669_v48, 5  ;;  %v2661_v48 = vld [vmem:[%s3081_s9 + $0x50] sm:$0xf]  ;;  %v1641_v53 = vrot.slane %v1639_v42, 5 }
  0x60   : > { %1410 = vmatpush.bf16.msra.mxu2 %v2877_v47  ;;  %v655_v47 = vshll.u32 %v555_v22, 16  ;;  %v653_v55 = vrot.slane %v652_v45, 4  ;;  %v667_v59 = vrot.slane %v666_v50, 4  ;;  %v1605_v35 = vrot.slane %v1603_v28, 5  ;;  %v2589_v45 = vld [vmem:[%s3081_s9 + $0x8] sm:$0xf] }
  0x61   : > { %1545 = vmatpush.bf16.msra.mxu3 %v2889_v56  ;;  %1892 = vmatpush.bf16.msra.mxu1 %v2905_v0  ;;  %v1183_v61 = vrot.slane %v1182_v52, 4  ;;  %v2709_v0 = vld [vmem:[%s3081_s9 + $0x10] sm:$0xf] }
  0x62   : > { %v657_v56 = vrot.slane %v655_v47, 5  ;;  %v672_v2 = vsel %vm3177_vm2, %v667_v59, %v671_v57  ;;  %v1608_v7 = vshrl.u32 %v2709_v0, 16  ;;  %v1611_v8 = vshll.u32 %v2709_v0, 16  ;;  %v2871_v47 = vld [vmem:[%s3081_s9 + $0xc] sm:$0xf0] }
  0x63   : > { %1791 = vmatpush.bf16.msra.mxu0 %v2897_v5  ;;  %v1594_v5 = vshrl.u32 %v2707_v63, 16  ;;  %v2712_v57 = vld [vmem:[%s3081_s9 + $0x1c] sm:$0x1]  ;;  %v2590_v59 = vor.u32 %v2871_v47, %v2589_v45  ;;  %v2597_v47 = vld [vmem:[%s3081_s9 + $0x28] sm:$0xf] }
  0x64   : > { %1411 = vmatpush.bf16.msra.mxu2 %v2876_v60  ;;  %v1169_v60 = vrot.slane %v1168_v51, 4  ;;  %v658_v1 = vsel %vm3177_vm2, %v653_v55, %v657_v56  ;;  %v1610_v19 = vrot.slane %v1608_v7, 4  ;;  %v1613_v20 = vrot.slane %v1611_v8, 5  ;;  %v2717_v7 = vld [vmem:[%s3081_s9 + $0x30] sm:$0xf] }
  0x65   : > { %1546 = vmatpush.bf16.msra.mxu3 %v2888_v4  ;;  %1893 = vmatpush.bf16.msra.mxu1 %v2904_v10  ;;  %v1188_v4 = vsel %vm3177_vm2, %v1183_v61, %v1187_v62  ;;  %v696_v9 = vunpack.c.l.b16 %v658_v1  ;;  %v697_v10 = vunpack.c.l.b16 %v672_v2  ;;  %v1596_v17 = vrot.slane %v1594_v5, 4 }
  0x66   : > { %v1174_v3 = vsel %vm3177_vm2, %v1169_v60, %v1173_v58  ;;  %v1213_v12 = vunpack.c.l.b16 %v1188_v4  ;;  %v1614_v29 = vor.u32 %v1613_v20, %v1610_v19  ;;  %v2714_v58 = vld [vmem:[%s3081_s9 + $0x24] sm:$0x1]  ;;  %v2662_v60 = vor.u32 %v2883_v49, %v2661_v48  ;;  %v2873_v48 = vld [vmem:[%s3081_s9 + $0x2c] sm:$0xf0] }
  0x67   : > { %1792 = vmatpush.bf16.msra.mxu0 %v2896_v25  ;;  %v1212_v11 = vunpack.c.l.b16 %v1174_v3  ;;  %v701_v21 = vpack.c.b16 %v697_v10, %v696_v9  ;;  %v2394_v25 = vor.u32 %v2842_v14, %v2393_v13  ;;  %v1600_v27 = vor.u32 %v1599_v18, %v1596_v17  ;;  %v2593_v13 = vld [vmem:[%s3081_s9 + $0x18] sm:$0xf]  ;;  %v2872_v14 = vld [vmem:[%s3081_s9 + $0x1c] sm:$0xf0]  ;;  %v2884_v18 = vld [vmem:[%s3081_s9 + $0x64] sm:$0xf0] }
  0x68   : > { %1412 = vmatpush.bf16.msra.mxu2 %v2875_v15  ;;  %v2465_v15 = vld [vmem:[%s3081_s9 + $0x108] sm:$0xf]  ;;  %v1615_v36 = vrot.slane %v1614_v29, 4  ;;  %v1631_v62 = vshll.u32 %v2712_v57, 16  ;;  %v1645_v0 = vshll.u32 %v2714_v58, 16  ;;  %v1653_v10 = vshll.u32 %v2715_v6, 16 }
  0x69   : > { %1547 = vmatpush.bf16.msra.mxu3 %v2887_v24  ;;  %1894 = vmatpush.bf16.msra.mxu1 %v2903_v30  ;;  %v1217_v22 = vpack.c.b16 %v1213_v12, %v1212_v11  ;;  %v2710_v24 = vld [vmem:[%s3081_s9 + $0x14] sm:$0x1]  ;;  %v3398_v26 = vor.u32 %v2854_v16, %v2465_v15  ;;  %v1601_v34 = vrot.slane %v1600_v27, 4  ;;  %v1664_v11 = vshrl.u32 %v2717_v7, 16  ;;  %v2665_v15 = vld [vmem:[%s3081_s9 + $0x60] sm:$0xf] }
  0x6a   : > { %v1617_v30 = vshll.u32 %v2710_v24, 16  ;;  %v1633_v3 = vrot.slane %v1631_v62, 5  ;;  %v1647_v5 = vrot.slane %v1645_v0, 5  ;;  %v1667_v12 = vshll.u32 %v2717_v7, 16  ;;  %v2718_v24 = vld [vmem:[%s3081_s9 + $0x34] sm:$0x1] }
  0x6b   : > { %1793 = vmatpush.bf16.msra.mxu0 %v2895_v44  ;;  %772 = vmatmul.bf16.gmra.mxu2 %v700_v39  ;;  %v1622_v39 = vshrl.u32 %v2711_v31, 16  ;;  %v1606_v43 = vsel %vm3177_vm2, %v1601_v34, %v1605_v35  ;;  %v1655_v20 = vrot.slane %v1653_v10, 5  ;;  %v2666_v27 = vor.u32 %v2884_v18, %v2665_v15  ;;  %v2669_v49 = vld [vmem:[%s3081_s9 + $0x70] sm:$0xf]  ;;  %v2673_v18 = vld [vmem:[%s3081_s9 + $0x80] sm:$0xf] }
  0x6c   : > { %1288 = vmatmul.bf16.gmra.mxu1 %v1216_v41  ;;  %v1619_v38 = vrot.slane %v1617_v30, 5  ;;  %v1636_v41 = vshrl.u32 %v2713_v32, 16  ;;  %v1722_v55 = vunpack.c.l.b16 %v1606_v43  ;;  %v1659_v30 = vshll.u32 %v2716_v23, 16 }
  0x6d   : > { %v1624_v50 = vrot.slane %v1622_v39, 4  ;;  %v1673_v32 = vshll.u32 %v2718_v24, 16  ;;  %v2719_v39 = vld [vmem:[%s3081_s9 + $0x38] sm:$0xf]  ;;  %v2598_v58 = vor.u32 %v2873_v48, %v2597_v47 }
  0x6e   : > { %907 = vmatmul.bf16.gmra.mxu3 %v2390_v40  ;;  %1042 = vmatmul.bf16.gmra.mxu0 %v3379_v54  ;;  %v1625_v40 = vshll.u32 %v2711_v31, 16  ;;  %v1620_v44 = vsel %vm3177_vm2, %v1615_v36, %v1619_v38  ;;  %v1638_v52 = vrot.slane %v1636_v41, 4  ;;  %v1661_v35 = vrot.slane %v1659_v30, 5 }
  0x6f   : > { %v1723_v56 = vunpack.c.l.b16 %v1620_v44  ;;  %v1675_v38 = vrot.slane %v1673_v32, 5  ;;  %v1678_v43 = vshrl.u32 %v2719_v39, 16 }
  0x70   : > { %v1627_v51 = vrot.slane %v1625_v40, 5  ;;  %v1642_v63 = vor.u32 %v1641_v53, %v1638_v52  ;;  %v2721_v40 = vld [vmem:[%s3081_s9 + $0x40] sm:$0xf] }
  0x71   : > { %v1730_v1 = vpack.c.b16 %v1723_v56, %v1722_v55  ;;  %v1692_v44 = vshrl.u32 %v2721_v40, 16  ;;  %v1695_v45 = vshll.u32 %v2721_v40, 16  ;;  %v1680_v53 = vrot.slane %v1678_v43, 4 }
  0x72   : > { %v1628_v61 = vor.u32 %v1627_v51, %v1624_v50  ;;  %v1643_v4 = vrot.slane %v1642_v63, 4  ;;  %v2885_v50 = vld [vmem:[%s3081_s9 + $0x74] sm:$0xf0] }
  0x73   : > { %v1694_v56 = vrot.slane %v1692_v44, 4  ;;  %v1697_v57 = vrot.slane %v1695_v45, 5  ;;  %v2670_v62 = vor.u32 %v2885_v50, %v2669_v49 }
  0x74   : > { %v1629_v2 = vrot.slane %v1628_v61, 4  ;;  %v1648_v9 = vsel %vm3177_vm2, %v1643_v4, %v1647_v5 }
  0x75   : > { %v1725_v17 = vunpack.c.l.b16 %v1648_v9 }
  0x76   : > { %v1634_v8 = vsel %vm3177_vm2, %v1629_v2, %v1633_v3  ;;  %v1698_v3 = vor.u32 %v1697_v57, %v1694_v56 }
  0x77   : > { %v1724_v16 = vunpack.c.l.b16 %v1634_v8 }
  0x78   : > { %v1699_v9 = vrot.slane %v1698_v3, 4 }
  0x79   : > { %v1731_v28 = vpack.c.b16 %v1725_v17, %v1724_v16  ;;  %v2601_v16 = vld [vmem:[%s3081_s9 + $0x38] sm:$0xf]  ;;  %v2874_v17 = vld [vmem:[%s3081_s9 + $0x3c] sm:$0xf0] }
  0x7a   : > { %v2602_v24 = vor.u32 %v2874_v17, %v2601_v16 }
  0x7b   : > { %777 = vmatmul.bf16.gmra.mxu2 %v701_v21  ;;  %v1666_v21 = vrot.slane %v1664_v11, 4 }
  0x7c   : > { %1293 = vmatmul.bf16.gmra.mxu1 %v1217_v22  ;;  %v1669_v22 = vrot.slane %v1667_v12, 5 }
  0x7e   : > { %912 = vmatmul.bf16.gmra.mxu3 %v2394_v25  ;;  %1047 = vmatmul.bf16.gmra.mxu0 %v3398_v26  ;;  %v2594_v25 = vor.u32 %v2872_v14, %v2593_v13  ;;  %v1670_v31 = vor.u32 %v1669_v22, %v1666_v21 }
  0x80   : > { %v1671_v36 = vrot.slane %v1670_v31, 4 }
  0x82   : > { %v1676_v42 = vsel %vm3177_vm2, %v1671_v36, %v1675_v38 }
  0x83   : > { %v1727_v52 = vunpack.c.l.b16 %v1676_v42 }
  0x8b   : > { %1413 = vmatmul.bf16.vlgmr.msra.gmra.mxu2 %v2590_v59  ;;  %v2720_v59 = vld [vmem:[%s3081_s9 + $0x3c] sm:$0x1] }
  0x8c   : > { %1895 = vmatmul.bf16.vlgmr.msra.gmra.mxu1 %v3249_v37  ;;  %v1650_v37 = vshrl.u32 %v2715_v6, 16  ;;  %v1687_v2 = vshll.u32 %v2720_v59, 16 }
  0x8e   : > { %1548 = vmatmul.bf16.vlgmr.msra.gmra.mxu3 %v2662_v60  ;;  %1794 = vmatmul.bf16.vlgmr.msra.gmra.mxu0 %v1730_v1  ;;  %v1652_v19 = vrot.slane %v1650_v37, 4  ;;  %v2722_v60 = vld [vmem:[%s3081_s9 + $0x44] sm:$0x1]  ;;  %v1689_v8 = vrot.slane %v1687_v2, 5 }
  0x8f   : > { %v1701_v4 = vshll.u32 %v2722_v60, 16 }
  0x90   : > { %v1656_v29 = vor.u32 %v1655_v20, %v1652_v19  ;;  %v2886_v19 = vld [vmem:[%s3081_s9 + $0x84] sm:$0xf0]  ;;  %s2805_s9 = sshll.u32 %s3528_s22, 5 }
  0x91   : > { %v1703_v37 = vrot.slane %v1701_v4, 5  ;;  %s3476_s18 = scalar_lea.vmem %s3520_s4, %s2805_s9  ;;  %s3484_s23 = scalar_lea.vmem %s3519_s3, %s2805_s9 }
  0x92   : > { %v1657_v34 = vrot.slane %v1656_v29, 4 }
  0x94   : > { %v1662_v41 = vsel %vm3177_vm2, %v1657_v34, %v1661_v35 }
  0x95   : > { %v1726_v51 = vunpack.c.l.b16 %v1662_v41 }
  0x97   : > { %v1732_v63 = vpack.c.b16 %v1727_v52, %v1726_v51 }
  0x9b   : > { %1418 = vmatmul.bf16.gmra.mxu2 %v2594_v25 }
  0x9c   : > { %1900 = vmatmul.bf16.gmra.mxu1 %v3317_v46  ;;  %v1681_v46 = vshll.u32 %v2719_v39, 16 }
  0x9e   : > { %1553 = vmatmul.bf16.gmra.mxu3 %v2666_v27  ;;  %1799 = vmatmul.bf16.gmra.mxu0 %v1731_v28  ;;  %v1683_v55 = vrot.slane %v1681_v46, 5  ;;  %v2674_v28 = vor.u32 %v2886_v19, %v2673_v18 }
  0xa0   : > { %v1684_v1 = vor.u32 %v1683_v55, %v1680_v53 }
  0xa2   : > { %v1685_v7 = vrot.slane %v1684_v1, 4 }
  0xa4   : > { %v1690_v14 = vsel %vm3177_vm2, %v1685_v7, %v1689_v8 }
  0xa5   : > { %v1728_v20 = vunpack.c.l.b16 %v1690_v14 }
  0xa8   : > { %v421_v0 = vpop.f32.mrf.mxu0 }
  0xa9   : > { %v522_v61 = vpop.f32.mrf.mxu1 }
  0xaa   : > { %v523_v5 = vadd.f32 %v522_v61, %v421_v0 }
  0xab   : > { %1423 = vmatmul.bf16.gmra.mxu2 %v2598_v58 }
  0xac   : > { %1905 = vmatmul.bf16.gmra.mxu1 %v3379_v54  ;;  %v1704_v54 = vsel %vm3177_vm2, %v1699_v9, %v1703_v37 }
  0xad   : > { %v1729_v21 = vunpack.c.l.b16 %v1704_v54 }
  0xae   : > { %1558 = vmatmul.bf16.gmra.mxu3 %v2670_v62  ;;  %1804 = vmatmul.bf16.gmra.mxu0 %v1732_v63  ;;  %v431_v6 = vpop.f32.mrf.mxu2 }
  0xaf   : > { %v1733_v29 = vpack.c.b16 %v1729_v21, %v1728_v20 }
  0xb0   : > { %v423_v13 = vpop.f32.mrf.mxu0 }
  0xb1   : > { %v532_v10 = vpop.f32.mrf.mxu3  ;;  %v524_v12 = vpop.f32.mrf.mxu1 }
  0xb2   : > { %v3440_v11 = vadd.f32 %v532_v10, %v431_v6  ;;  %v525_v15 = vadd.f32 %v524_v12, %v423_v13 }
  0xb6   : > { %v433_v22 = vpop.f32.mrf.mxu2 }
  0xb8   : > { %v426_v30 = vpop.f32.mrf.mxu0 }
  0xb9   : > { %v534_v23 = vpop.f32.mrf.mxu3  ;;  %v527_v27 = vpop.f32.mrf.mxu1 }
  0xba   : > { %v535_v25 = vadd.f32 %v534_v23, %v433_v22  ;;  %v528_v31 = vadd.f32 %v527_v27, %v426_v30 }
  0xbb   : > { %1428 = vmatmul.bf16.gmra.mxu2 %v2602_v24 }
  0xbc   : > { %1910 = vmatmul.bf16.gmra.mxu1 %v3398_v26 }
  0xbe   : > { %1563 = vmatmul.bf16.gmra.mxu3 %v2674_v28  ;;  %1809 = vmatmul.bf16.gmra.mxu0 %v1733_v29  ;;  %v436_v33 = vpop.f32.mrf.mxu2 }
  0xc0   : > { %v428_v36 = vpop.f32.mrf.mxu0 }
  0xc1   : > { %v537_v32 = vpop.f32.mrf.mxu3  ;;  %v529_v35 = vpop.f32.mrf.mxu1 }
  0xc2   : > { %v538_v34 = vadd.f32 %v537_v32, %v436_v33  ;;  %v530_v38 = vadd.f32 %v529_v35, %v428_v36 }
  0xc6   : > { %v438_v39 = vpop.f32.mrf.mxu2 }
  0xc9   : > { %v539_v40 = vpop.f32.mrf.mxu3  ;;  %v1279_v42 = vpop.f32.mrf.mxu1 }
  0xca   : > { %v540_v41 = vadd.f32 %v539_v40, %v438_v39 }
  0xcb   : > { %v1033_v43 = vpop.f32.mrf.mxu0 }
  0xce   : > { %v763_v46 = vpop.f32.mrf.mxu2 }
  0xcf   : > { %v783_v44 = vadd.f32 %v763_v46, %v523_v5 }
  0xd1   : > { %v898_v45 = vpop.f32.mrf.mxu3  ;;  %v1281_v47 = vpop.f32.mrf.mxu1 }
  0xd2   : > { %v918_v48 = vadd.f32 %v898_v45, %v783_v44 }
  0xd3   : > { %v1035_v49 = vpop.f32.mrf.mxu0 }
  0xd4   : > { %v1053_v26 = vadd.f32 %v1033_v43, %v918_v48 }
  0xd6   : > { %v3451_v50 = vadd.f32 %v1279_v42, %v1053_v26  ;;  %v765_v51 = vpop.f32.mrf.mxu2 }
  0xd7   : > { %v784_v52 = vadd.f32 %v765_v51, %v525_v15 }
  0xd9   : > { %v900_v53 = vpop.f32.mrf.mxu3  ;;  %v1284_v55 = vpop.f32.mrf.mxu1 }
  0xda   : > { %v919_v56 = vadd.f32 %v900_v53, %v784_v52 }
  0xdb   : > { %v1038_v57 = vpop.f32.mrf.mxu0 }
  0xdc   : > { %v1054_v58 = vadd.f32 %v1035_v49, %v919_v56 }
  0xde   : > { %v1300_v59 = vadd.f32 %v1281_v47, %v1054_v58  ;;  %v768_v60 = vpop.f32.mrf.mxu2 }
  0xdf   : > { %v785_v61 = vadd.f32 %v768_v60, %v528_v31 }
  0xe1   : > { %v903_v62 = vpop.f32.mrf.mxu3  ;;  %v1286_v63 = vpop.f32.mrf.mxu1 }
  0xe2   : > { %v920_v0 = vadd.f32 %v903_v62, %v785_v61 }
  0xe3   : > { %v1040_v1 = vpop.f32.mrf.mxu0 }
  0xe4   : > { %v1055_v2 = vadd.f32 %v1038_v57, %v920_v0 }
  0xe6   : > { %v3453_v3 = vadd.f32 %v1284_v55, %v1055_v2  ;;  %v770_v4 = vpop.f32.mrf.mxu2 }
  0xe7   : > { %v786_v5 = vadd.f32 %v770_v4, %v530_v38 }
  0xe9   : > { %v905_v6 = vpop.f32.mrf.mxu3  ;;  %v1289_v7 = vpop.f32.mrf.mxu1 }
  0xea   : > { %v921_v8 = vadd.f32 %v905_v6, %v786_v5 }
  0xeb   : > { %v1043_v9 = vpop.f32.mrf.mxu0 }
  0xec   : > { %v1056_v37 = vadd.f32 %v1040_v1, %v921_v8 }
  0xee   : > { %v3455_v10 = vadd.f32 %v1286_v63, %v1056_v37  ;;  %v773_v12 = vpop.f32.mrf.mxu2 }
  0xef   : > { %v787_v13 = vadd.f32 %v773_v12, %v3440_v11 }
  0xf1   : > { %v908_v14 = vpop.f32.mrf.mxu3  ;;  %v1291_v54 = vpop.f32.mrf.mxu1 }
  0xf2   : > { %v922_v15 = vadd.f32 %v908_v14, %v787_v13 }
  0xf3   : > { %v1045_v16 = vpop.f32.mrf.mxu0 }
  0xf4   : > { %v1057_v17 = vadd.f32 %v1043_v9, %v922_v15 }
  0xf6   : > { %v3458_v18 = vadd.f32 %v1289_v7, %v1057_v17  ;;  %v775_v19 = vpop.f32.mrf.mxu2 }
  0xf7   : > { %v788_v20 = vadd.f32 %v775_v19, %v535_v25 }
  0xf9   : > { %v910_v21 = vpop.f32.mrf.mxu3  ;;  %v1294_v22 = vpop.f32.mrf.mxu1 }
  0xfa   : > { %v923_v23 = vadd.f32 %v910_v21, %v788_v20 }
  0xfb   : > { %v1048_v24 = vpop.f32.mrf.mxu0 }
  0xfc   : > { %v1058_v27 = vadd.f32 %v1045_v16, %v923_v23 }
  0xfe   : > { %v3460_v28 = vadd.f32 %v1291_v54, %v1058_v27  ;;  %v778_v29 = vpop.f32.mrf.mxu2 }
  0xff   : > { %v789_v11 = vadd.f32 %v778_v29, %v538_v34 }
 0x101   : > { %v913_v30 = vpop.f32.mrf.mxu3  ;;  %v1296_v31 = vpop.f32.mrf.mxu1 }
 0x102   : > { %v924_v33 = vadd.f32 %v913_v30, %v789_v11 }
 0x103   : > { %v1050_v32 = vpop.f32.mrf.mxu0 }
 0x104   : > { %v1059_v35 = vadd.f32 %v1048_v24, %v924_v33 }
 0x106   : > { %v3463_v36 = vadd.f32 %v1294_v22, %v1059_v35  ;;  %v780_v38 = vpop.f32.mrf.mxu2 }
 0x107   : > { %v790_v25 = vadd.f32 %v780_v38, %v540_v41 }
 0x109   : > { %v915_v39 = vpop.f32.mrf.mxu3  ;;  %v3465_v40 = vpop.f32.mrf.mxu1 }
 0x10a   : > { %v925_v42 = vadd.f32 %v915_v39, %v790_v25 }
 0x10b   : > { %v1795_v43 = vpop.f32.mrf.mxu0 }
 0x10c   : > { %v1060_v46 = vadd.f32 %v1050_v32, %v925_v42 }
 0x10e   : > { %v3471_v34 = vadd.f32 %v1296_v31, %v1060_v46  ;;  %v1414_v44 = vpop.f32.mrf.mxu2 }
 0x10f   : > { %v1434_v47 = vadd.f32 %v1414_v44, %v3451_v50 }
 0x111   : > { %v1549_v45 = vpop.f32.mrf.mxu3  ;;  %v1898_v41 = vpop.f32.mrf.mxu1 }
 0x112   : > { %v2934_v48 = vpack.c.bf16 %v1898_v41, %v3465_v40  ;;  %v1569_v26 = vadd.f32 %v1549_v45, %v1434_v47  ;;  %v2001_v31 = vmul.f32 %v1898_v41, %v1898_v41  ;;  %v1987_v35 = vadd.f32 %v1898_v41, %v3465_v40 }
 0x113   : > { %v1797_v49 = vpop.f32.mrf.mxu0 }
 0x114   : > { %2935 = vst [vmem:[%s3476_s18] sm:$0xff] %v2934_v48   ;;  %v1815_v56 = vadd.f32 %v1795_v43, %v1569_v26 }
 0x116   : > { %v1416_v51 = vpop.f32.mrf.mxu2  ;;  %v1961_v50 = vmul.f32 %v1815_v56, %v1815_v56 }
 0x117   : > { %v1435_v52 = vadd.f32 %v1416_v51, %v1300_v59 }
 0x119   : > { %v1551_v53 = vpop.f32.mrf.mxu3  ;;  %v1901_v55 = vpop.f32.mrf.mxu1 }
 0x11a   : > { %v1570_v57 = vadd.f32 %v1551_v53, %v1435_v52  ;;  %v2002_v32 = vmul.f32 %v1901_v55, %v1901_v55 }
 0x11b   : > { %v1800_v58 = vpop.f32.mrf.mxu0 }
 0x11c   : > { %v1816_v60 = vadd.f32 %v1797_v49, %v1570_v57 }
 0x11e   : > { %v2914_v61 = vpack.c.bf16 %v1816_v60, %v1815_v56  ;;  %v1948_v62 = vadd.f32 %v1816_v60, %v1815_v56  ;;  %v1962_v63 = vmul.f32 %v1816_v60, %v1816_v60  ;;  %v1419_v0 = vpop.f32.mrf.mxu2 }
 0x11f   : > { %v1436_v1 = vadd.f32 %v1419_v0, %v3453_v3 }
 0x120   : > { %2915 = vst [vmem:[%s3484_s23] sm:$0xff] %v2914_v61   ;;  %v1969_v59 = vadd.f32 %v1962_v63, %v1961_v50 }
 0x121   : > { %v1554_v2 = vpop.f32.mrf.mxu3  ;;  %v1903_v4 = vpop.f32.mrf.mxu1 }
 0x122   : > { %v1571_v5 = vadd.f32 %v1554_v2, %v1436_v1  ;;  %v2939_v6 = vpack.c.bf16 %v1903_v4, %v1901_v55  ;;  %v2003_v42 = vmul.f32 %v1903_v4, %v1903_v4 }
 0x123   : > { %v1802_v7 = vpop.f32.mrf.mxu0 }
 0x124   : > { %v1817_v8 = vadd.f32 %v1800_v58, %v1571_v5  ;;  %2954 = vst [vmem:[%s3476_s18 + $0x8] sm:$0xff] %v2939_v6  }
 0x126   : > { %v1949_v9 = vadd.f32 %v1948_v62, %v1817_v8  ;;  %v1963_v37 = vmul.f32 %v1817_v8, %v1817_v8  ;;  %v1421_v12 = vpop.f32.mrf.mxu2 }
 0x127   : > { %v1437_v14 = vadd.f32 %v1421_v12, %v3455_v10  ;;  %v2000_v10 = vmul.f32 %v3465_v40, %v3465_v40 }
 0x128   : > { %v1970_v13 = vadd.f32 %v1969_v59, %v1963_v37 }
 0x129   : > { %v1556_v54 = vpop.f32.mrf.mxu3  ;;  %v1906_v15 = vpop.f32.mrf.mxu1  ;;  %v2008_v39 = vadd.f32 %v2001_v31, %v2000_v10 }
 0x12a   : > { %v1572_v16 = vadd.f32 %v1556_v54, %v1437_v14  ;;  %v2004_v49 = vmul.f32 %v1906_v15, %v1906_v15 }
 0x12b   : > { %v1805_v3 = vpop.f32.mrf.mxu0  ;;  %v2009_v48 = vadd.f32 %v2008_v39, %v2002_v32 }
 0x12c   : > { %v1818_v17 = vadd.f32 %v1802_v7, %v1572_v16 }
 0x12d   : > { %v2010_v53 = vadd.f32 %v2009_v48, %v2003_v42 }
 0x12e   : > { %v2919_v19 = vpack.c.bf16 %v1818_v17, %v1817_v8  ;;  %v1950_v20 = vadd.f32 %v1949_v9, %v1818_v17  ;;  %v1964_v21 = vmul.f32 %v1818_v17, %v1818_v17  ;;  %v1424_v22 = vpop.f32.mrf.mxu2 }
 0x12f   : > { %v1438_v24 = vadd.f32 %v1424_v22, %v3458_v18  ;;  %v1988_v18 = vadd.f32 %v1987_v35, %v1901_v55  ;;  %v2011_v57 = vadd.f32 %v2010_v53, %v2004_v49 }
 0x130   : > { %2951 = vst [vmem:[%s3484_s23 + $0x8] sm:$0xff] %v2919_v19   ;;  %v1971_v23 = vadd.f32 %v1970_v13, %v1964_v21 }
 0x131   : > { %v1559_v27 = vpop.f32.mrf.mxu3  ;;  %v1908_v29 = vpop.f32.mrf.mxu1  ;;  %v1989_v51 = vadd.f32 %v1988_v18, %v1903_v4 }
 0x132   : > { %v1573_v11 = vadd.f32 %v1559_v27, %v1438_v24  ;;  %v2944_v30 = vpack.c.bf16 %v1908_v29, %v1906_v15  ;;  %v2005_v56 = vmul.f32 %v1908_v29, %v1908_v29 }
 0x133   : > { %v1807_v43 = vpop.f32.mrf.mxu0  ;;  %v1990_v40 = vadd.f32 %v1989_v51, %v1906_v15 }
 0x134   : > { %v1819_v33 = vadd.f32 %v1805_v3, %v1573_v11  ;;  %2955 = vst [vmem:[%s3476_s18 + $0x10] sm:$0xff] %v2944_v30   ;;  %v2012_v62 = vadd.f32 %v2011_v57, %v2005_v56 }
 0x135   : > { %v1991_v60 = vadd.f32 %v1990_v40, %v1908_v29 }
 0x136   : > { %v1951_v38 = vadd.f32 %v1950_v20, %v1819_v33  ;;  %v1965_v25 = vmul.f32 %v1819_v33, %v1819_v33  ;;  %v1426_v46 = vpop.f32.mrf.mxu2 }
 0x137   : > { %v1439_v45 = vadd.f32 %v1426_v46, %v3460_v28 }
 0x138   : > { %v1972_v44 = vadd.f32 %v1971_v23, %v1965_v25 }
 0x139   : > { %v1561_v47 = vpop.f32.mrf.mxu3  ;;  %v1911_v26 = vpop.f32.mrf.mxu1 }
 0x13a   : > { %v1574_v52 = vadd.f32 %v1561_v47, %v1439_v45  ;;  %v2006_v58 = vmul.f32 %v1911_v26, %v1911_v26  ;;  %v1992_v0 = vadd.f32 %v1991_v60, %v1911_v26 }
 0x13b   : > { %v1810_v4 = vpop.f32.mrf.mxu0 }
 0x13c   : > { %v1820_v41 = vadd.f32 %v1807_v43, %v1574_v52  ;;  %v2013_v2 = vadd.f32 %v2012_v62, %v2006_v58 }
 0x13e   : > { %v2924_v50 = vpack.c.bf16 %v1820_v41, %v1819_v33  ;;  %v1952_v61 = vadd.f32 %v1951_v38, %v1820_v41  ;;  %v1966_v55 = vmul.f32 %v1820_v41, %v1820_v41  ;;  %v1429_v28 = vpop.f32.mrf.mxu2 }
 0x13f   : > { %v1440_v59 = vadd.f32 %v1429_v28, %v3463_v36 }
 0x140   : > { %2952 = vst [vmem:[%s3484_s23 + $0x10] sm:$0xff] %v2924_v50   ;;  %v1973_v63 = vadd.f32 %v1972_v44, %v1966_v55 }
 0x141   : > { %v1564_v1 = vpop.f32.mrf.mxu3  ;;  %v1913_v5 = vpop.f32.mrf.mxu1 }
 0x142   : > { %v1575_v6 = vadd.f32 %v1564_v1, %v1440_v59  ;;  %v2949_v7 = vpack.c.bf16 %v1913_v5, %v1911_v26  ;;  %v1993_v8 = vadd.f32 %v1992_v0, %v1913_v5  ;;  %v2007_v9 = vmul.f32 %v1913_v5, %v1913_v5 }
 0x143   : > { %v1812_v27 = vpop.f32.mrf.mxu0 }
 0x144   : > { %v1821_v37 = vadd.f32 %v1810_v4, %v1575_v6  ;;  %2956 = vst [vmem:[%s3476_s18 + $0x18] sm:$0xff] %v2949_v7   ;;  %v1994_v12 = vrot.slane %v1993_v8, 4  ;;  %v2014_v13 = vadd.f32 %v2013_v2, %v2007_v9 }
 0x146   : > { %v1953_v14 = vadd.f32 %v1952_v61, %v1821_v37  ;;  %v1967_v54 = vmul.f32 %v1821_v37, %v1821_v37  ;;  %v1995_v15 = vadd.f32 %v1994_v12, %v1993_v8  ;;  %v2015_v16 = vrot.slane %v2014_v13, 4  ;;  %v1431_v17 = vpop.f32.mrf.mxu2 }
 0x147   : > { %v1441_v20 = vadd.f32 %v1431_v17, %v3471_v34 }
 0x148   : > { %v1974_v3 = vadd.f32 %v1973_v63, %v1967_v54  ;;  %v1996_v36 = vrot.slane %v1995_v15, 2  ;;  %v2016_v19 = vadd.f32 %v2015_v16, %v2014_v13 }
 0x149   : > { %v1566_v21 = vpop.f32.mrf.mxu3 }
 0x14a   : > { %v1997_v22 = vadd.f32 %v1996_v36, %v1995_v15  ;;  %v2017_v23 = vrot.slane %v2016_v19, 2  ;;  %v1576_v24 = vadd.f32 %v1566_v21, %v1441_v20 }
 0x14c   : > { %v1998_v29 = vrot.slane %v1997_v22, 1  ;;  %v2018_v11 = vadd.f32 %v2017_v23, %v2016_v19  ;;  %v1822_v30 = vadd.f32 %v1812_v27, %v1576_v24 }
 0x14e   : > { %v2019_v10 = vrot.slane %v2018_v11, 1  ;;  %v2929_v31 = vpack.c.bf16 %v1822_v30, %v1821_v37  ;;  %v1954_v33 = vadd.f32 %v1953_v14, %v1822_v30  ;;  %v1968_v32 = vmul.f32 %v1822_v30, %v1822_v30 }
 0x14f   : > { %v1999_v35 = vadd.f32 %v1998_v29, %v1997_v22 }
 0x150   : > { %v2020_v38 = vadd.f32 %v2019_v10, %v2018_v11  ;;  %2953 = vst [vmem:[%s3484_s23 + $0x18] sm:$0xff] %v2929_v31   ;;  %v1955_v34 = vrot.slane %v1954_v33, 4  ;;  %v1975_v25 = vadd.f32 %v1974_v3, %v1968_v32 }
 0x152   : > { %v2021_v39 = vsel %vm1982_vm3, %v1999_v35, %v2020_v38  ;;  %v1956_v42 = vadd.f32 %v1955_v34, %v1954_v33  ;;  %v1976_v46 = vrot.slane %v1975_v25, 4 }
 0x153   : > { %v2022_v43 = vsel %vm1984_vm4, %v2021_v39, 0.0 }
 0x154   : > { %2023 = vst [vmem:[%s289_s27] sm:$0xff] %v2022_v43  ;;  %v1957_v18 = vrot.slane %v1956_v42, 2  ;;  %v1977_v44 = vadd.f32 %v1976_v46, %v1975_v25 }
 0x156   : > { %v1958_v45 = vadd.f32 %v1957_v18, %v1956_v42  ;;  %v1978_v47 = vrot.slane %v1977_v44, 2 }
 0x158   : > { %v1959_v48 = vrot.slane %v1958_v45, 1  ;;  %v1979_v49 = vadd.f32 %v1978_v47, %v1977_v44 }
 0x15a   : > { %v1980_v26 = vrot.slane %v1979_v49, 1  ;;  %v1960_v51 = vadd.f32 %v1959_v48, %v1958_v45 }
 0x15c   : > { %v1981_v52 = vadd.f32 %v1980_v26, %v1979_v49 }
 0x15e   : > { %v1983_v53 = vsel %vm1982_vm3, %v1960_v51, %v1981_v52 }
 0x15f   : > { %v1985_v56 = vsel %vm1984_vm4, %v1983_v53, 0.0 }
 0x160   : > { %1986 = vst [vmem:[%s285_s29] sm:$0xff] %v1985_v56 }
 0x161 PF: > { %s17_s21 = sadd.s32 1, %s2988_s21  }
 0x162   : > { %p14_p5 = scmp.ge.s32.totalorder %s17_s21, 4  }
 0x164   :  { %16 = sbr.rel (!%p14_p5) target bundleno = 1 (0x1), region = 111 }

// kernel: _lambda_.4
= control target key start
LH: loop header
LB: loop body
LE: loop exit
PB: predicated region body
PF: predicated region fallthrough
CT: control target
= control target key end

     0   :  { %s2692_s12 = smov 0   ;;  %s3305_s0 = inlined_call_operand.vmem [shape: bf16[2,10,10,128], index: 0, kind: input, shape index: {}]   ;;  %s3306_s1 = inlined_call_operand.vmem [shape: bf16[9,128,128], index: 1, kind: input, shape index: {}]   ;;  %s3307_s2 = inlined_call_operand.vmem [shape: bf16[2,8,8,128], index: 2, kind: output, shape index: {0}]   ;;  %s3308_s3 = inlined_call_operand.vmem [shape: f32[2,8,128], index: 3, kind: output, shape index: {1}]  }
   0x1 LB: > { %s1968_s13 = sadd.s32 4294967295, %s2670_s12   ;;  %p1972_p0 = scmp.ge.s32.totalorder %s2670_s12, 1  ;;  %s2670_s12 = sphi %s2692_s12, %s14_s12  }
   0x2   : > { %p140_p1 = scmp.lt.s32.totalorder %s2670_s12, 3 }
   0x4   : > { %p141_p2 = pnand %p1972_p0, %p140_p1 }
   0x5   : > { %p168_p3 = scmp.lt.s32.totalorder (!%p141_p2), %s1968_s13, 1 }
   0x6   : > { %144 = sbr.rel (%p141_p2) target bundleno = 348 (0x15c), region = 28 }
   0xb   : > { %v2551_v0 = vld [vmem:[%s3306_s1 + $0x78] sm:$0xff]  ;;  %v2550_v2 = vld [vmem:[%s3306_s1 + $0x70] sm:$0xff]  ;;  %s3314_s13 = smov (!%p168_p3, %s1968_s13), 1  ;;  %v2549_v6 = vld [vmem:[%s3306_s1 + $0x68] sm:$0xff]  ;;  %vm214_vm0 = vsmask.f32 3328 }
   0xc   : > { %v2559_v1 = vld [vmem:[%s3306_s1 + $0xb8] sm:$0xff]  ;;  %2639 = vmatpush.bf16.msra.mxu1 %v2551_v0  ;;  %410 = vmatpush.bf16.msra.mxu0 %v2551_v0  ;;  %v2558_v3 = vld [vmem:[%s3306_s1 + $0xb0] sm:$0xff]  ;;  %s2655_s24 = smul.u32 80, %s3314_s13  ;;  %v2557_v7 = vld [vmem:[%s3306_s1 + $0xa8] sm:$0xff]  ;;  %vm215_vm1 = vsmask.f32 7440 }
   0xd   : > { %680 = vmatpush.bf16.msra.mxu2 %v2559_v1  ;;  %v2571_v4 = vld [vmem:[%s3306_s1 + $0xf8] sm:$0xff]  ;;  %v2570_v5 = vld [vmem:[%s3306_s1 + $0xf0] sm:$0xff]  ;;  %v2548_v11 = vld [vmem:[%s3306_s1 + $0x60] sm:$0xff]  ;;  %vm564_vm2 = vcmask 1042432   ;;  %vm565_vm3 = vcmask 1046532   ;;  %s1976_s20 = sshll.u32 %s3314_s13, 3 }
   0xe   : > { %815 = vmatpush.bf16.msra.mxu3 %v2571_v4  ;;  %s2730_s6 = scalar_lea.vmem %s3305_s0, %s2655_s24  ;;  %v2556_v16 = vld [vmem:[%s3306_s1 + $0xa0] sm:$0xff]  ;;  %v2569_v17 = vld [vmem:[%s3306_s1 + $0xe8] sm:$0xff]  ;;  %v2547_v29 = vld [vmem:[%s3306_s1 + $0x58] sm:$0xff]  ;;  %vm1877_vm6 = vcmask 1040384   ;;  %vm1879_vm7 = vcmask 1041408   ;;  %s181_s23 = scalar_lea.vmem %s3308_s3, %s1976_s20 }
   0xf   : > { %v186_v8 = vld [vmem:[%s2730_s6 + $0x20] sm:$0xf]  ;;  %v187_v9 = vld [vmem:[%s2730_s6 + $0x28] sm:$0xf]  ;;  %v2735_v10 = vld [vmem:[%s2730_s6 + $0x24] sm:$0x1] }
  0x10   : > { %2640 = vmatpush.bf16.msra.mxu1 %v2550_v2  ;;  %411 = vmatpush.bf16.msra.mxu0 %v2550_v2  ;;  %v2741_v12 = vld [vmem:[%s2730_s6 + $0x2c] sm:$0x1]  ;;  %v274_v13 = vshrl.u32 %v186_v8, 16  ;;  %v277_v14 = vshll.u32 %v186_v8, 16  ;;  %v288_v15 = vshrl.u32 %v187_v9, 16  ;;  %v291_v18 = vshll.u32 %v187_v9, 16  ;;  %vm2768_vm4 = vmor %vm214_vm0, %vm215_vm1 }
  0x11   : > { %681 = vmatpush.bf16.msra.mxu2 %v2558_v3  ;;  %v182_v19 = vld [vmem:[%s2730_s6] sm:$0xf]  ;;  %v283_v22 = vshll.u32 %v2735_v10, 16  ;;  %v183_v24 = vld [vmem:[%s2730_s6 + $0x8] sm:$0xf]  ;;  %v297_v26 = vshll.u32 %v2741_v12, 16  ;;  %vm2777_vm5 = vmor %vm564_vm2, %vm565_vm3 }
  0x12   : > { %816 = vmatpush.bf16.msra.mxu3 %v2570_v5  ;;  %v276_v20 = vrot.slane %v274_v13, 4  ;;  %v279_v21 = vrot.slane %v277_v14, 5  ;;  %v290_v23 = vrot.slane %v288_v15, 4  ;;  %v293_v25 = vrot.slane %v291_v18, 5  ;;  %v206_v27 = vld [vmem:[%s2730_s6 + $0x4] sm:$0x1] }
  0x13   : > { %v207_v28 = vld [vmem:[%s2730_s6 + $0xc] sm:$0x1]  ;;  %v218_v31 = vshrl.u32 %v182_v19, 16  ;;  %v221_v32 = vshll.u32 %v182_v19, 16  ;;  %v2568_v34 = vld [vmem:[%s3306_s1 + $0xe0] sm:$0xff]  ;;  %v227_v35 = vshll.u32 %v206_v27, 16 }
  0x14   : > { %2641 = vmatpush.bf16.msra.mxu1 %v2549_v6  ;;  %412 = vmatpush.bf16.msra.mxu0 %v2549_v6  ;;  %v280_v30 = vor.u32 %v279_v21, %v276_v20  ;;  %v294_v33 = vor.u32 %v293_v25, %v290_v23  ;;  %v232_v36 = vshrl.u32 %v183_v24, 16  ;;  %v235_v37 = vshll.u32 %v183_v24, 16  ;;  %v540_v38 = vld [vmem:[%s2730_s6] sm:$0xe]  ;;  %v541_v43 = vld [vmem:[%s2730_s6 + $0x8] sm:$0xe] }
  0x15   : > { %682 = vmatpush.bf16.msra.mxu2 %v2557_v7  ;;  %v285_v39 = vrot.slane %v283_v22, 5  ;;  %v220_v40 = vrot.slane %v218_v31, 4  ;;  %v223_v41 = vrot.slane %v221_v32, 5  ;;  %v241_v42 = vshll.u32 %v207_v28, 16  ;;  %v2555_v44 = vld [vmem:[%s3306_s1 + $0x98] sm:$0xff]  ;;  %v2546_v60 = vld [vmem:[%s3306_s1 + $0x50] sm:$0xff] }
  0x16   : > { %817 = vmatpush.bf16.msra.mxu3 %v2569_v17  ;;  %v281_v45 = vrot.slane %v280_v30, 4  ;;  %v299_v46 = vrot.slane %v297_v26, 5  ;;  %v234_v47 = vrot.slane %v232_v36, 4  ;;  %v237_v48 = vrot.slane %v235_v37, 5  ;;  %v2567_v56 = vld [vmem:[%s3306_s1 + $0xd8] sm:$0xff]  ;;  %v2554_v0 = vld [vmem:[%s3306_s1 + $0x90] sm:$0xff] }
  0x17   : > { %v295_v50 = vrot.slane %v294_v33, 4  ;;  %v224_v51 = vor.u32 %v223_v41, %v220_v40  ;;  %v2073_v52 = vrot.slane %v540_v38, 9  ;;  %v569_v53 = vrot.slane %v206_v27, 5  ;;  %v188_v59 = vld [vmem:[%s2730_s6 + $0x30] sm:$0xf]  ;;  %v2545_v14 = vld [vmem:[%s3306_s1 + $0x48] sm:$0xff] }
  0x18   : > { %2642 = vmatpush.bf16.msra.mxu1 %v2548_v11  ;;  %413 = vmatpush.bf16.msra.mxu0 %v2548_v11  ;;  %v229_v54 = vrot.slane %v227_v35, 5  ;;  %v238_v55 = vor.u32 %v237_v48, %v234_v47  ;;  %v2074_v58 = vrot.slane %v541_v43, 9  ;;  %v243_v62 = vrot.slane %v241_v42, 5  ;;  %v189_v3 = vld [vmem:[%s2730_s6 + $0x38] sm:$0xf]  ;;  %v2566_v11 = vld [vmem:[%s3306_s1 + $0xd0] sm:$0xff] }
  0x19   : > { %683 = vmatpush.bf16.msra.mxu2 %v2556_v16  ;;  %v225_v61 = vrot.slane %v224_v51, 4  ;;  %v573_v63 = vrot.slane %v207_v28, 5  ;;  %v286_v1 = vsel %vm2768_vm4, %v281_v45, %v285_v39  ;;  %v300_v4 = vsel %vm2768_vm4, %v295_v50, %v299_v46  ;;  %v184_v7 = vld [vmem:[%s2730_s6 + $0x10] sm:$0xf]  ;;  %v2553_v19 = vld [vmem:[%s3306_s1 + $0x88] sm:$0xff]  ;;  %v2544_v24 = vld [vmem:[%s3306_s1 + $0x40] sm:$0xff] }
  0x1a   : > { %818 = vmatpush.bf16.msra.mxu3 %v2568_v34  ;;  %v239_v2 = vrot.slane %v238_v55, 4  ;;  %v570_v5 = vsel %vm2777_vm5, %v2073_v52, %v569_v53  ;;  %v302_v6 = vshrl.u32 %v188_v59, 16  ;;  %v305_v13 = vshll.u32 %v188_v59, 16  ;;  %v185_v22 = vld [vmem:[%s2730_s6 + $0x18] sm:$0xf]  ;;  %v2565_v31 = vld [vmem:[%s3306_s1 + $0xc8] sm:$0xff] }
  0x1b   : > { %v230_v8 = vsel %vm2768_vm4, %v225_v61, %v229_v54  ;;  %v574_v9 = vsel %vm2777_vm5, %v2074_v58, %v573_v63  ;;  %v2806_v15 = vunpack.c.l.b16 %v286_v1  ;;  %v316_v17 = vshrl.u32 %v189_v3, 16  ;;  %v2824_v32 = vld [vmem:[%s2730_s6 + $0x34] sm:$0x1]  ;;  %v2827_v36 = vld [vmem:[%s2730_s6 + $0x3c] sm:$0x1]  ;;  %v2552_v42 = vld [vmem:[%s3306_s1 + $0x80] sm:$0xff] }
  0x1c   : > { %2643 = vmatpush.bf16.msra.mxu1 %v2547_v29  ;;  %414 = vmatpush.bf16.msra.mxu0 %v2547_v29  ;;  %v244_v16 = vsel %vm2768_vm4, %v239_v2, %v243_v62  ;;  %v351_v18 = vunpack.c.l.b16 %v300_v4  ;;  %v616_v20 = vunpack.c.l.b16 %v570_v5  ;;  %v319_v21 = vshll.u32 %v189_v3, 16  ;;  %v2543_v29 = vld [vmem:[%s3306_s1 + $0x38] sm:$0xff]  ;;  %v2834_v43 = vld [vmem:[%s2730_s6 + $0x14] sm:$0x1]  ;;  %v2155_v62 = vld [vmem:[%s2730_s6 + $0x8] sm:$0xf] }
  0x1d   : > { %684 = vmatpush.bf16.msra.mxu2 %v2555_v44  ;;  %v246_v23 = vshrl.u32 %v184_v7, 16  ;;  %v346_v25 = vunpack.c.l.b16 %v230_v8  ;;  %v617_v26 = vunpack.c.l.b16 %v574_v9  ;;  %v304_v27 = vrot.slane %v302_v6, 4  ;;  %v2837_v44 = vld [vmem:[%s2730_s6 + $0x1c] sm:$0x1]  ;;  %v2560_v63 = vld [vmem:[%s2730_s6 + $0xc] sm:$0xf0] }
  0x1e   : > { %819 = vmatpush.bf16.msra.mxu3 %v2567_v56  ;;  %v249_v28 = vshll.u32 %v184_v7, 16  ;;  %v347_v30 = vunpack.c.l.b16 %v244_v16  ;;  %v307_v33 = vrot.slane %v305_v13, 5  ;;  %v318_v34 = vrot.slane %v316_v17, 4  ;;  %v2579_v45 = vld [vmem:[%s3306_s1 + $0x138] sm:$0xff]  ;;  %v2564_v56 = vld [vmem:[%s3306_s1 + $0xc0] sm:$0xff]  ;;  %v2578_v1 = vld [vmem:[%s3306_s1 + $0x130] sm:$0xff] }
  0x1f   : > { %v321_v35 = vrot.slane %v319_v21, 5  ;;  %v248_v37 = vrot.slane %v246_v23, 4  ;;  %v260_v39 = vshrl.u32 %v185_v22, 16  ;;  %v263_v40 = vshll.u32 %v185_v22, 16  ;;  %v2599_v48 = vld [vmem:[%s3306_s1 + $0x1b8] sm:$0xff]  ;;  %v2598_v6 = vld [vmem:[%s3306_s1 + $0x1b0] sm:$0xff] }
  0x20   : > { %2644 = vmatpush.bf16.msra.mxu1 %v2546_v60  ;;  %415 = vmatpush.bf16.msra.mxu0 %v2546_v60  ;;  %v251_v38 = vrot.slane %v249_v28, 5  ;;  %v356_v41 = vpack.c.b16 %v351_v18, %v2806_v15  ;;  %v624_v46 = vpack.c.b16 %v617_v26, %v616_v20  ;;  %v311_v47 = vshll.u32 %v2824_v32, 16  ;;  %v2607_v2 = vld [vmem:[%s3306_s1 + $0x1f8] sm:$0xff]  ;;  %v542_v4 = vld [vmem:[%s2730_s6 + $0x10] sm:$0xe]  ;;  %v2597_v26 = vld [vmem:[%s3306_s1 + $0x1a8] sm:$0xff] }
  0x21   : > { %685 = vmatpush.bf16.msra.mxu2 %v2554_v0  ;;  %v262_v50 = vrot.slane %v260_v39, 4  ;;  %v265_v51 = vrot.slane %v263_v40, 5  ;;  %v354_v52 = vpack.c.b16 %v347_v30, %v346_v25  ;;  %v308_v53 = vor.u32 %v307_v33, %v304_v27  ;;  %v2542_v0 = vld [vmem:[%s3306_s1 + $0x30] sm:$0xff]  ;;  %v543_v5 = vld [vmem:[%s2730_s6 + $0x18] sm:$0xe]  ;;  %v2577_v25 = vld [vmem:[%s3306_s1 + $0x128] sm:$0xff] }
  0x22   : > { %820 = vmatpush.bf16.msra.mxu3 %v2566_v11  ;;  %v322_v54 = vor.u32 %v321_v35, %v318_v34  ;;  %v325_v55 = vshll.u32 %v2827_v36, 16  ;;  %v252_v58 = vor.u32 %v251_v38, %v248_v37  ;;  %v255_v59 = vshll.u32 %v2834_v43, 16  ;;  %v2201_v13 = vld [vmem:[%s2730_s6 + $0x8] sm:$0xf]  ;;  %v2203_v18 = vld [vmem:[%s2730_s6 + $0x10] sm:$0xf] }
  0x23   : > { %v266_v60 = vor.u32 %v265_v51, %v262_v50  ;;  %v269_v61 = vshll.u32 %v2837_v44, 16  ;;  %v313_v3 = vrot.slane %v311_v47, 5  ;;  %v309_v7 = vrot.slane %v308_v53, 4  ;;  %v2540_v37 = vld [vmem:[%s3306_s1 + $0x20] sm:$0xff]  ;;  %v2605_v40 = vld [vmem:[%s3306_s1 + $0x1e8] sm:$0xff] }
  0x24   : > { %2645 = vmatpush.bf16.msra.mxu1 %v2545_v14  ;;  %416 = vmatpush.bf16.msra.mxu0 %v2545_v14  ;;  %v323_v8 = vrot.slane %v322_v54, 4  ;;  %v327_v9 = vrot.slane %v325_v55, 5  ;;  %v2156_v11 = vor.u32 %v2560_v63, %v2155_v62  ;;  %v253_v14 = vrot.slane %v252_v58, 4  ;;  %v2909_v47 = vld [vmem:[%s2730_s6 + $0xc] sm:$0x1]  ;;  %v2539_v55 = vld [vmem:[%s3306_s1 + $0x18] sm:$0xff] }
  0x25   : > { %686 = vmatpush.bf16.msra.mxu2 %v2553_v19  ;;  %v257_v15 = vrot.slane %v255_v59, 5  ;;  %v267_v16 = vrot.slane %v266_v60, 4  ;;  %v271_v17 = vrot.slane %v269_v61, 5  ;;  %v2541_v19 = vld [vmem:[%s3306_s1 + $0x28] sm:$0xff]  ;;  %v2075_v20 = vrot.slane %v542_v4, 9  ;;  %v2575_v58 = vld [vmem:[%s3306_s1 + $0x118] sm:$0xff] }
  0x26   : > { %821 = vmatpush.bf16.msra.mxu3 %v2565_v31  ;;  %v577_v21 = vrot.slane %v2834_v43, 5  ;;  %v2076_v22 = vrot.slane %v543_v5, 9  ;;  %v581_v23 = vrot.slane %v2837_v44, 5  ;;  %v314_v27 = vsel %vm2768_vm4, %v309_v7, %v313_v3  ;;  %v2576_v43 = vld [vmem:[%s3306_s1 + $0x120] sm:$0xff]  ;;  %v2159_v62 = vld [vmem:[%s2730_s6 + $0x18] sm:$0xf] }
  0x27   : > { %v328_v28 = vsel %vm2768_vm4, %v323_v8, %v327_v9  ;;  %v872_v30 = vshll.u32 %v2201_v13, 16  ;;  %v258_v31 = vsel %vm2768_vm4, %v253_v14, %v257_v15  ;;  %v272_v33 = vsel %vm2768_vm4, %v267_v16, %v271_v17  ;;  %v2596_v44 = vld [vmem:[%s3306_s1 + $0x1a0] sm:$0xff]  ;;  %v545_v5 = vld [vmem:[%s2730_s6 + $0x28] sm:$0xe]  ;;  %v2574_v7 = vld [vmem:[%s3306_s1 + $0x110] sm:$0xff] }
  0x28   : > { %2646 = vmatpush.bf16.msra.mxu1 %v2544_v24  ;;  %417 = vmatpush.bf16.msra.mxu0 %v2544_v24  ;;  %v2606_v24 = vld [vmem:[%s3306_s1 + $0x1f0] sm:$0xff]  ;;  %v883_v34 = vshrl.u32 %v2203_v18, 16  ;;  %v886_v35 = vshll.u32 %v2203_v18, 16  ;;  %v578_v38 = vsel %vm2777_vm5, %v2075_v20, %v577_v21  ;;  %v582_v39 = vsel %vm2777_vm5, %v2076_v22, %v581_v23  ;;  %v2561_v63 = vld [vmem:[%s2730_s6 + $0x1c] sm:$0xf0]  ;;  %v2595_v17 = vld [vmem:[%s3306_s1 + $0x198] sm:$0xff] }
  0x29   : > { %687 = vmatpush.bf16.msra.mxu2 %v2552_v42  ;;  %v353_v42 = vunpack.c.l.b16 %v328_v28  ;;  %v874_v50 = vrot.slane %v872_v30, 5  ;;  %v618_v51 = vunpack.c.l.b16 %v578_v38  ;;  %v878_v59 = vshll.u32 %v2909_v47, 16  ;;  %v2205_v20 = vld [vmem:[%s2730_s6 + $0x18] sm:$0xf]  ;;  %v2604_v21 = vld [vmem:[%s3306_s1 + $0x1e0] sm:$0xff]  ;;  %v2594_v23 = vld [vmem:[%s3306_s1 + $0x190] sm:$0xff] }
  0x2a   : > { %822 = vmatpush.bf16.msra.mxu3 %v2564_v56  ;;  %v885_v53 = vrot.slane %v883_v34, 4  ;;  %v888_v54 = vrot.slane %v886_v35, 5  ;;  %v2915_v56 = vld [vmem:[%s2730_s6 + $0x14] sm:$0x1]  ;;  %v2160_v8 = vor.u32 %v2561_v63, %v2159_v62  ;;  %v585_v14 = vrot.slane %v2735_v10, 5  ;;  %v2537_v10 = vld [vmem:[%s3306_s1 + $0x8] sm:$0xff] }
  0x2b   : > { %428 = vmatmul.bf16.vlgmr.msra.gmra.mxu1 %v356_v41  ;;  %418 = vmatmul.bf16.vlgmr.msra.gmra.mxu0 %v354_v52  ;;  %v352_v41 = vunpack.c.l.b16 %v314_v27  ;;  %v619_v52 = vunpack.c.l.b16 %v582_v39  ;;  %v892_v4 = vshll.u32 %v2915_v56, 16  ;;  %v880_v9 = vrot.slane %v878_v59, 5  ;;  %v2207_v22 = vld [vmem:[%s2730_s6 + $0x20] sm:$0xf]  ;;  %v2532_v39 = vld [vmem:[%s2730_s6 + $0x4] sm:$0xf0] }
  0x2c   : > { %511 = vmatpush.bf16.msrb.mxu1 %v2543_v29  ;;  %1061 = vmatpush.bf16.msrb.mxu0 %v2579_v45  ;;  %v869_v29 = vshrl.u32 %v2201_v13, 16  ;;  %v348_v45 = vunpack.c.l.b16 %v258_v31  ;;  %v889_v3 = vor.u32 %v888_v54, %v885_v53  ;;  %v2078_v15 = vrot.slane %v545_v5, 9  ;;  %v2536_v34 = vld [vmem:[%s3306_s1] sm:$0xff]  ;;  %v2586_v53 = vld [vmem:[%s3306_s1 + $0x170] sm:$0xff]  ;;  %v547_v5 = vld [vmem:[%s2730_s6 + $0x38] sm:$0xe] }
  0x2d   : > { %1370 = vmatpush.bf16.msrb.mxu2 %v2599_v48  ;;  %823 = vmatmul.bf16.vlgmr.msra.gmra.mxu3 %v2156_v11  ;;  %v357_v60 = vpack.c.b16 %v353_v42, %v352_v41  ;;  %v589_v16 = vrot.slane %v2741_v12, 5  ;;  %v2573_v12 = vld [vmem:[%s3306_s1 + $0x108] sm:$0xff]  ;;  %v897_v28 = vshrl.u32 %v2205_v20, 16  ;;  %v900_v30 = vshll.u32 %v2205_v20, 16  ;;  %v2027_v35 = vld [vmem:[%s2730_s6] sm:$0xf] }
  0x2e   : > { %688 = vmatmul.bf16.vlgmr.msra.gmra.mxu2 %v624_v46  ;;  %1616 = vmatpush.bf16.msrb.mxu3 %v2607_v2  ;;  %v349_v46 = vunpack.c.l.b16 %v272_v33  ;;  %v871_v48 = vrot.slane %v869_v29, 4  ;;  %v625_v2 = vpack.c.b16 %v619_v52, %v618_v51  ;;  %v890_v18 = vrot.slane %v889_v3, 4  ;;  %v2572_v38 = vld [vmem:[%s3306_s1 + $0x100] sm:$0xff]  ;;  %v2562_v62 = vld [vmem:[%s2730_s6 + $0x2c] sm:$0xf0] }
  0x2f   : > { %v590_v27 = vsel %vm2777_vm5, %v2078_v15, %v589_v16  ;;  %v911_v31 = vshrl.u32 %v2207_v22, 16  ;;  %v914_v33 = vshll.u32 %v2207_v22, 16  ;;  %v2028_v54 = vor.u32 %v2532_v39, %v2027_v35  ;;  %v2209_v3 = vld [vmem:[%s2730_s6 + $0x28] sm:$0xf]  ;;  %v2592_v22 = vld [vmem:[%s3306_s1 + $0x180] sm:$0xff] }
  0x30   : > { %512 = vmatpush.bf16.msrb.mxu1 %v2542_v0  ;;  %1062 = vmatpush.bf16.msrb.mxu0 %v2578_v1  ;;  %v355_v61 = vpack.c.b16 %v349_v46, %v348_v45  ;;  %v875_v0 = vor.u32 %v874_v50, %v871_v48  ;;  %v544_v1 = vld [vmem:[%s2730_s6 + $0x20] sm:$0xe]  ;;  %v2979_v45 = vld [vmem:[%s2730_s6 + $0x1c] sm:$0x1]  ;;  %v2982_v46 = vld [vmem:[%s2730_s6 + $0x24] sm:$0x1] }
  0x31   : > { %1371 = vmatpush.bf16.msrb.mxu2 %v2598_v6  ;;  %v2538_v6 = vld [vmem:[%s3306_s1 + $0x10] sm:$0xff]  ;;  %v2077_v11 = vrot.slane %v544_v1, 9  ;;  %v899_v48 = vrot.slane %v897_v28, 4  ;;  %v902_v50 = vrot.slane %v900_v30, 5  ;;  %v913_v51 = vrot.slane %v911_v31, 4  ;;  %v3011_v15 = vld [vmem:[%s3306_s1 + $0x228] sm:$0xff] }
  0x32   : > { %1617 = vmatpush.bf16.msrb.mxu3 %v2606_v24  ;;  %v876_v13 = vrot.slane %v875_v0, 4  ;;  %v2603_v24 = vld [vmem:[%s3306_s1 + $0x1d8] sm:$0xff]  ;;  %v916_v52 = vrot.slane %v914_v33, 5  ;;  %v920_v59 = vshll.u32 %v2982_v46, 16  ;;  %v2995_v1 = vld [vmem:[%s3306_s1 + $0x230] sm:$0xff]  ;;  %v925_v16 = vshrl.u32 %v2209_v3, 16 }
  0x33   : > { %v903_v63 = vor.u32 %v902_v50, %v899_v48  ;;  %v593_v20 = vrot.slane %v2824_v32, 5  ;;  %v2601_v32 = vld [vmem:[%s3306_s1 + $0x1c8] sm:$0xff]  ;;  %v3035_v28 = vld [vmem:[%s3306_s1 + $0x220] sm:$0xff]  ;;  %v2583_v31 = vld [vmem:[%s3306_s1 + $0x158] sm:$0xff] }
  0x34   : > { %513 = vmatpush.bf16.msrb.mxu1 %v2541_v19  ;;  %1063 = vmatpush.bf16.msrb.mxu0 %v2577_v25  ;;  %v894_v19 = vrot.slane %v892_v4, 5  ;;  %v881_v25 = vsel %vm2768_vm4, %v876_v13, %v880_v9  ;;  %v917_v0 = vor.u32 %v916_v52, %v913_v51  ;;  %v546_v4 = vld [vmem:[%s2730_s6 + $0x30] sm:$0xe]  ;;  %v922_v9 = vrot.slane %v920_v59, 5  ;;  %v3045_v33 = vld [vmem:[%s2730_s6 + $0x2c] sm:$0x1] }
  0x35   : > { %1372 = vmatpush.bf16.msrb.mxu2 %v2597_v26  ;;  %v586_v26 = vsel %vm2777_vm5, %v2077_v11, %v585_v14  ;;  %v2211_v11 = vld [vmem:[%s2730_s6 + $0x30] sm:$0xf]  ;;  %v904_v13 = vrot.slane %v903_v63, 4  ;;  %v3048_v39 = vld [vmem:[%s2730_s6 + $0x34] sm:$0x1]  ;;  %v934_v52 = vshll.u32 %v3045_v33, 16 }
  0x36   : > { %1618 = vmatpush.bf16.msrb.mxu3 %v2605_v40  ;;  %v895_v29 = vsel %vm2768_vm4, %v890_v18, %v894_v19  ;;  %v997_v40 = vunpack.c.l.b16 %v881_v25  ;;  %v620_v42 = vunpack.c.l.b16 %v586_v26  ;;  %v918_v14 = vrot.slane %v917_v0, 4  ;;  %v2602_v18 = vld [vmem:[%s3306_s1 + $0x1d0] sm:$0xff]  ;;  %v2403_v51 = vld [vmem:[%s2730_s6 + $0x18] sm:$0xf]  ;;  %v2563_v63 = vld [vmem:[%s2730_s6 + $0x3c] sm:$0xf0] }
  0x37   : > { %v998_v41 = vunpack.c.l.b16 %v895_v29  ;;  %v2079_v19 = vrot.slane %v546_v4, 9  ;;  %v927_v26 = vrot.slane %v925_v16, 4  ;;  %v948_v59 = vshll.u32 %v3048_v39, 16  ;;  %v2213_v0 = vld [vmem:[%s2730_s6 + $0x38] sm:$0xf] }
  0x38   : > { %514 = vmatpush.bf16.msrb.mxu1 %v2540_v37  ;;  %1064 = vmatpush.bf16.msrb.mxu0 %v2576_v43  ;;  %v2587_v37 = vld [vmem:[%s3306_s1 + $0x178] sm:$0xff]  ;;  %v621_v43 = vunpack.c.l.b16 %v590_v27  ;;  %v923_v25 = vsel %vm2768_vm4, %v918_v14, %v922_v9 }
  0x39   : > { %1373 = vmatpush.bf16.msrb.mxu2 %v2596_v44  ;;  %v2976_v44 = vld [vmem:[%s3306_s1 + $0x238] sm:$0xff]  ;;  %v594_v29 = vsel %vm2777_vm5, %v2079_v19, %v593_v20  ;;  %v950_v16 = vrot.slane %v948_v59, 5  ;;  %v2600_v20 = vld [vmem:[%s3306_s1 + $0x1c0] sm:$0xff] }
  0x3a   : > { %1619 = vmatpush.bf16.msrb.mxu3 %v2604_v21  ;;  %v2080_v21 = vrot.slane %v547_v5, 9  ;;  %v3066_v5 = vld [vmem:[%s2730_s6 + $0x14] sm:$0x1]  ;;  %v3078_v19 = vld [vmem:[%s3306_s1 + $0x218] sm:$0xff] }
  0x3b   : > { %433 = vmatmul.bf16.gmra.mxu1 %v357_v60  ;;  %423 = vmatmul.bf16.gmra.mxu0 %v355_v61  ;;  %v626_v60 = vpack.c.b16 %v621_v43, %v620_v42  ;;  %v2163_v61 = vld [vmem:[%s2730_s6 + $0x28] sm:$0xf]  ;;  %v2533_v42 = vld [vmem:[%s2730_s6 + $0x14] sm:$0xf0]  ;;  %v622_v43 = vunpack.c.l.b16 %v594_v29 }
  0x3c   : > { %515 = vmatpush.bf16.msrb.mxu1 %v2539_v55  ;;  %1065 = vmatpush.bf16.msrb.mxu0 %v2575_v58  ;;  %v1005_v55 = vpack.c.b16 %v998_v41, %v997_v40  ;;  %v906_v58 = vshll.u32 %v2979_v45, 16  ;;  %v2401_v40 = vld [vmem:[%s2730_s6 + $0x10] sm:$0xf]  ;;  %v2265_v29 = vld [vmem:[%s2730_s6 + $0x8] sm:$0xe] }
  0x3d   : > { %1374 = vmatpush.bf16.msrb.mxu2 %v2595_v17  ;;  %828 = vmatmul.bf16.gmra.mxu3 %v2160_v8  ;;  %v928_v17 = vshll.u32 %v2209_v3, 16  ;;  %v2031_v41 = vld [vmem:[%s2730_s6 + $0x10] sm:$0xf] }
  0x3e   : > { %693 = vmatmul.bf16.gmra.mxu2 %v625_v2  ;;  %1620 = vmatpush.bf16.msrb.mxu3 %v2603_v24  ;;  %v2585_v2 = vld [vmem:[%s3306_s1 + $0x168] sm:$0xff]  ;;  %v908_v8 = vrot.slane %v906_v58, 5  ;;  %v942_v24 = vshll.u32 %v2211_v11, 16 }
  0x3f   : > { %v930_v27 = vrot.slane %v928_v17, 5  ;;  %v2215_v17 = vld [vmem:[%s2730_s6 + $0x40] sm:$0xf] }
  0x40   : > { %516 = vmatpush.bf16.msrb.mxu1 %v2538_v6  ;;  %1066 = vmatpush.bf16.msrb.mxu0 %v2574_v7  ;;  %v2593_v6 = vld [vmem:[%s3306_s1 + $0x188] sm:$0xff]  ;;  %v2164_v7 = vor.u32 %v2562_v62, %v2163_v61  ;;  %v944_v35 = vrot.slane %v942_v24, 5  ;;  %v2032_v61 = vor.u32 %v2533_v42, %v2031_v41  ;;  %v3104_v42 = vld [vmem:[%s2730_s6 + $0x3c] sm:$0x1] }
  0x41   : > { %1375 = vmatpush.bf16.msrb.mxu2 %v2594_v23  ;;  %v939_v23 = vshrl.u32 %v2211_v11, 16  ;;  %v931_v50 = vor.u32 %v930_v27, %v927_v26  ;;  %v3091_v27 = vld [vmem:[%s3306_s1 + $0x210] sm:$0xff] }
  0x42   : > { %1621 = vmatpush.bf16.msrb.mxu3 %v2602_v18  ;;  %v953_v18 = vshrl.u32 %v2213_v0, 16 }
  0x43   : > { %v932_v4 = vrot.slane %v931_v50, 4 }
  0x44   : > { %517 = vmatpush.bf16.msrb.mxu1 %v2537_v10  ;;  %1067 = vmatpush.bf16.msrb.mxu0 %v2573_v12  ;;  %v597_v10 = vrot.slane %v2827_v36, 5  ;;  %v2584_v12 = vld [vmem:[%s3306_s1 + $0x160] sm:$0xff]  ;;  %v909_v36 = vsel %vm2768_vm4, %v904_v13, %v908_v8 }
  0x45   : > { %1376 = vmatpush.bf16.msrb.mxu2 %v2593_v6  ;;  %v936_v6 = vrot.slane %v934_v52, 5 }
  0x46   : > { %v598_v30 = vsel %vm2777_vm5, %v2080_v21, %v597_v10  ;;  %1622 = vmatpush.bf16.msrb.mxu3 %v2601_v32  ;;  %v956_v21 = vshll.u32 %v2213_v0, 16  ;;  %v1128_v32 = vrot.slane %v2915_v56, 5  ;;  %v955_v56 = vrot.slane %v953_v18, 4 }
  0x47   : > { %v623_v48 = vunpack.c.l.b16 %v598_v30 }
  0x48   : > { %518 = vmatpush.bf16.msrb.mxu1 %v2536_v34  ;;  %1068 = vmatpush.bf16.msrb.mxu0 %v2572_v38  ;;  %v941_v34 = vrot.slane %v939_v23, 4  ;;  %v1000_v38 = vunpack.c.l.b16 %v923_v25  ;;  %v1124_v23 = vrot.slane %v2909_v47, 5  ;;  %v970_v25 = vshll.u32 %v2215_v17, 16 }
  0x49   : > { %1377 = vmatpush.bf16.msrb.mxu2 %v2592_v22  ;;  %v627_v3 = vpack.c.b16 %v623_v48, %v622_v43  ;;  %v1433_v22 = vshll.u32 %v3066_v5, 16  ;;  %v937_v47 = vsel %vm2768_vm4, %v932_v4, %v936_v6  ;;  %v2355_v4 = vld [vmem:[%s2730_s6 + $0x10] sm:$0xf] }
  0x4a   : > { %v945_v58 = vor.u32 %v944_v35, %v941_v34  ;;  %1623 = vmatpush.bf16.msrb.mxu3 %v2600_v20  ;;  %v2266_v34 = vld [vmem:[%s2730_s6 + $0x10] sm:$0xe]  ;;  %v2273_v35 = vrot.slane %v2265_v29, 9  ;;  %v972_v52 = vrot.slane %v970_v25, 5 }
  0x4b   : > { %519 = vmatmul.bf16.vlgmr.msrb.gmra.mxu1 %v2028_v54  ;;  %1069 = vmatmul.bf16.vlgmr.msrb.gmra.mxu0 %v1005_v55  ;;  %v1427_v54 = vshll.u32 %v2401_v40, 16  ;;  %v1438_v55 = vshrl.u32 %v2403_v51, 16  ;;  %v2274_v41 = vrot.slane %v2266_v34, 9  ;;  %v2608_v34 = vld [vmem:[%s3306_s1 + $0x200] sm:$0xff] }
  0x4c   : > { %1235 = vmatpush.bf16.msra.mxu1 %v2587_v37  ;;  %1790 = vmatpush.bf16.msra.mxu0 %v2976_v44  ;;  %v999_v37 = vunpack.c.l.b16 %v909_v36  ;;  %v946_v14 = vrot.slane %v945_v58, 4  ;;  %v967_v36 = vshrl.u32 %v2215_v17, 16  ;;  %v1125_v50 = vsel %vm2777_vm5, %v2273_v35, %v1124_v23  ;;  %v3137_v23 = vld [vmem:[%s2730_s6 + $0x2c] sm:$0x1] }
  0x4d   : > { %833 = vmatmul.bf16.gmra.mxu3 %v2164_v7  ;;  %2647 = vmatpush.bf16.msra.mxu2 %v2976_v44  ;;  %v2167_v44 = vld [vmem:[%s2730_s6 + $0x38] sm:$0xf]  ;;  %v3069_v7 = vld [vmem:[%s2730_s6 + $0x1c] sm:$0x1]  ;;  %v1429_v9 = vrot.slane %v1427_v54, 5  ;;  %v1440_v11 = vrot.slane %v1438_v55, 4  ;;  %v1171_v54 = vunpack.c.l.b16 %v1125_v50  ;;  %v1001_v58 = vunpack.c.l.b16 %v937_v47 }
  0x4e   : > { %698 = vmatmul.bf16.gmra.mxu2 %v626_v60  ;;  %v2582_v60 = vld [vmem:[%s3306_s1 + $0x150] sm:$0xff]  ;;  %v1006_v62 = vpack.c.b16 %v1000_v38, %v999_v37  ;;  %v2168_v13 = vor.u32 %v2563_v63, %v2167_v44  ;;  %v1447_v24 = vshll.u32 %v3069_v7, 16  ;;  %v951_v30 = vsel %vm2768_vm4, %v946_v14, %v950_v16  ;;  %v2035_v55 = vld [vmem:[%s2730_s6 + $0x20] sm:$0xf]  ;;  %v2534_v44 = vld [vmem:[%s2730_s6 + $0x24] sm:$0xf0] }
  0x4f   : > { %v958_v37 = vrot.slane %v956_v21, 5  ;;  %v1002_v59 = vunpack.c.l.b16 %v951_v30  ;;  %v962_v63 = vshll.u32 %v3104_v42, 16  ;;  %v2036_v18 = vor.u32 %v2534_v44, %v2035_v55  ;;  %v2039_v55 = vld [vmem:[%s2730_s6 + $0x30] sm:$0xf] }
  0x50   : > { %1236 = vmatpush.bf16.msra.mxu1 %v2586_v53  ;;  %1791 = vmatpush.bf16.msra.mxu0 %v2995_v1  ;;  %v1424_v53 = vshrl.u32 %v2401_v40, 16  ;;  %v1435_v40 = vrot.slane %v1433_v22, 5  ;;  %v1449_v48 = vrot.slane %v1447_v24, 5 }
  0x51   : > { %2648 = vmatpush.bf16.msra.mxu2 %v2995_v1  ;;  %v2581_v1 = vld [vmem:[%s3306_s1 + $0x148] sm:$0xff] }
  0x52   : > { %v1426_v8 = vrot.slane %v1424_v53, 4  ;;  %v1129_v53 = vsel %vm2777_vm5, %v2274_v41, %v1128_v32 }
  0x54   : > { %1237 = vmatpush.bf16.msra.mxu1 %v2585_v2  ;;  %1792 = vmatpush.bf16.msra.mxu0 %v3011_v15  ;;  %v1441_v2 = vshll.u32 %v2403_v51, 16  ;;  %v1430_v10 = vor.u32 %v1429_v9, %v1426_v8  ;;  %v969_v51 = vrot.slane %v967_v36, 4 }
  0x55   : > { %2649 = vmatpush.bf16.msra.mxu2 %v3011_v15  ;;  %v2609_v15 = vld [vmem:[%s3306_s1 + $0x208] sm:$0xff] }
  0x56   : > { %v1431_v38 = vrot.slane %v1430_v10, 4 }
  0x58   : > { %1238 = vmatpush.bf16.msra.mxu1 %v2584_v12  ;;  %1793 = vmatpush.bf16.msra.mxu0 %v3035_v28  ;;  %v1443_v12 = vrot.slane %v1441_v2, 5  ;;  %v1436_v0 = vsel %vm2768_vm4, %v1431_v38, %v1435_v40  ;;  %v2405_v2 = vld [vmem:[%s2730_s6 + $0x20] sm:$0xf] }
  0x59   : > { %2650 = vmatpush.bf16.msra.mxu2 %v3035_v28  ;;  %v1452_v9 = vshrl.u32 %v2405_v2, 16  ;;  %v973_v28 = vor.u32 %v972_v52, %v969_v51  ;;  %v1552_v10 = vunpack.c.l.b16 %v1436_v0  ;;  %v2268_v38 = vld [vmem:[%s2730_s6 + $0x20] sm:$0xe]  ;;  %v1132_v52 = vrot.slane %v2979_v45, 5 }
  0x5a   : > { %v1444_v26 = vor.u32 %v1443_v12, %v1440_v11  ;;  %v1455_v11 = vshll.u32 %v2405_v2, 16  ;;  %v3134_v12 = vld [vmem:[%s2730_s6 + $0x24] sm:$0x1] }
  0x5b   : > { %524 = vmatmul.bf16.gmra.mxu1 %v2032_v61  ;;  %1074 = vmatmul.bf16.gmra.mxu0 %v1006_v62  ;;  %v1172_v61 = vunpack.c.l.b16 %v1129_v53  ;;  %v959_v62 = vor.u32 %v958_v37, %v955_v56  ;;  %v1454_v20 = vrot.slane %v1452_v9, 4  ;;  %v974_v29 = vrot.slane %v973_v28, 4  ;;  %v2267_v37 = vld [vmem:[%s2730_s6 + $0x18] sm:$0xe] }
  0x5c   : > { %1239 = vmatpush.bf16.msra.mxu1 %v2583_v31  ;;  %1794 = vmatpush.bf16.msra.mxu0 %v3078_v19  ;;  %v2580_v31 = vld [vmem:[%s3306_s1 + $0x140] sm:$0xff]  ;;  %v1445_v43 = vrot.slane %v1444_v26, 4  ;;  %v1457_v21 = vrot.slane %v1455_v11, 5  ;;  %v964_v26 = vrot.slane %v962_v63, 5  ;;  %v1461_v56 = vshll.u32 %v3134_v12, 16 }
  0x5d   : > { %838 = vmatmul.bf16.gmra.mxu3 %v2168_v13  ;;  %v3128_v8 = vpack.c.b16 %v1172_v61, %v1171_v54  ;;  %v2588_v13 = vld [vmem:[%s2730_s6 + $0x14] sm:$0xf0]  ;;  %2651 = vmatpush.bf16.msra.mxu2 %v3078_v19  ;;  %v960_v25 = vrot.slane %v959_v62, 4  ;;  %v1475_v19 = vshll.u32 %v3137_v23, 16  ;;  %v2275_v50 = vrot.slane %v2267_v37, 9 }
  0x5e   : > { %703 = vmatmul.bf16.gmra.mxu2 %v627_v3  ;;  %v2407_v3 = vld [vmem:[%s2730_s6 + $0x28] sm:$0xf]  ;;  %v1450_v6 = vsel %vm2768_vm4, %v1445_v43, %v1449_v48  ;;  %v2356_v36 = vor.u32 %v2588_v13, %v2355_v4  ;;  %v1458_v30 = vor.u32 %v1457_v21, %v1454_v20  ;;  %v1463_v43 = vrot.slane %v1461_v56, 5  ;;  %v2465_v63 = vld [vmem:[%s2730_s6 + $0x10] sm:$0xe] }
  0x5f   : > { %v1466_v16 = vshrl.u32 %v2407_v3, 16  ;;  %v1469_v17 = vshll.u32 %v2407_v3, 16  ;;  %v1553_v22 = vunpack.c.l.b16 %v1450_v6  ;;  %v965_v40 = vsel %vm2768_vm4, %v960_v25, %v964_v26  ;;  %v2466_v3 = vld [vmem:[%s2730_s6 + $0x18] sm:$0xe]  ;;  %v2409_v4 = vld [vmem:[%s2730_s6 + $0x30] sm:$0xf] }
  0x60   : > { %1240 = vmatpush.bf16.msra.mxu1 %v2582_v60  ;;  %1795 = vmatpush.bf16.msra.mxu0 %v3091_v27  ;;  %v3117_v60 = vld [vmem:[%s2730_s6 + $0x44] sm:$0x1]  ;;  %v1477_v48 = vrot.slane %v1475_v19, 5  ;;  %v2276_v53 = vrot.slane %v2268_v38, 9  ;;  %v1136_v54 = vrot.slane %v2982_v46, 5  ;;  %v1003_v44 = vunpack.c.l.b16 %v965_v40 }
  0x61   : > { %v976_v14 = vshll.u32 %v3117_v60, 16  ;;  %v1468_v24 = vrot.slane %v1466_v16, 4  ;;  %v1471_v32 = vrot.slane %v1469_v17, 5  ;;  %2652 = vmatpush.bf16.msra.mxu2 %v3091_v27  ;;  %v1459_v27 = vrot.slane %v1458_v30, 4  ;;  %v2411_v6 = vld [vmem:[%s2730_s6 + $0x38] sm:$0xf] }
  0x62   : > { %v1137_v61 = vsel %vm2777_vm5, %v2276_v53, %v1136_v54  ;;  %v1679_v62 = vrot.slane %v3066_v5, 5  ;;  %v1480_v11 = vshrl.u32 %v2409_v4, 16  ;;  %v1483_v13 = vshll.u32 %v2409_v4, 16  ;;  %v2359_v17 = vld [vmem:[%s2730_s6 + $0x20] sm:$0xf] }
  0x63   : > { %v978_v47 = vrot.slane %v976_v14, 5  ;;  %v1472_v35 = vor.u32 %v1471_v32, %v1468_v24  ;;  %v1174_v0 = vunpack.c.l.b16 %v1137_v61  ;;  %v1464_v46 = vsel %vm2768_vm4, %v1459_v27, %v1463_v43  ;;  %v2269_v53 = vld [vmem:[%s2730_s6 + $0x28] sm:$0xe]  ;;  %v2270_v54 = vld [vmem:[%s2730_s6 + $0x30] sm:$0xe] }
  0x64   : > { %1241 = vmatpush.bf16.msra.mxu1 %v2581_v1  ;;  %1796 = vmatpush.bf16.msra.mxu0 %v2609_v15  ;;  %v1007_v1 = vpack.c.b16 %v1002_v59, %v1001_v58  ;;  %v1133_v59 = vsel %vm2777_vm5, %v2275_v50, %v1132_v52  ;;  %v1494_v5 = vshrl.u32 %v2411_v6, 16  ;;  %v1683_v16 = vrot.slane %v3069_v7, 5  ;;  %v2363_v50 = vld [vmem:[%s2730_s6 + $0x30] sm:$0xf]  ;;  %v2467_v4 = vld [vmem:[%s2730_s6 + $0x20] sm:$0xe] }
  0x65   : > { %v979_v41 = vsel %vm2768_vm4, %v974_v29, %v978_v47  ;;  %2653 = vmatpush.bf16.msra.mxu2 %v2609_v15  ;;  %v1473_v51 = vrot.slane %v1472_v35, 4  ;;  %v2535_v15 = vld [vmem:[%s2730_s6 + $0x34] sm:$0xf0]  ;;  %v1173_v45 = vunpack.c.l.b16 %v1133_v59  ;;  %v1554_v20 = vunpack.c.l.b16 %v1464_v46  ;;  %v3174_v29 = vld [vmem:[%s2730_s6 + $0x34] sm:$0x1] }
  0x66   : > { %v1004_v58 = vunpack.c.l.b16 %v979_v41  ;;  %v2040_v28 = vor.u32 %v2535_v15, %v2039_v55  ;;  %v1482_v24 = vrot.slane %v1480_v11, 4  ;;  %v1485_v32 = vrot.slane %v1483_v13, 5  ;;  %v3177_v47 = vld [vmem:[%s2730_s6 + $0x3c] sm:$0x1]  ;;  %v2413_v55 = vld [vmem:[%s2730_s6 + $0x40] sm:$0xf] }
  0x67   : > { %v1478_v2 = vsel %vm2768_vm4, %v1473_v51, %v1477_v48  ;;  %v3168_v9 = vpack.c.b16 %v1174_v0, %v1173_v45  ;;  %v1503_v35 = vshll.u32 %v3177_v47, 16  ;;  %v2278_v59 = vrot.slane %v2270_v54, 9  ;;  %v2415_v15 = vld [vmem:[%s2730_s6 + $0x48] sm:$0xf] }
  0x68   : > { %1242 = vmatpush.bf16.msra.mxu1 %v2580_v31  ;;  %v1560_v31 = vpack.c.b16 %v1553_v22, %v1552_v10  ;;  %1797 = vmatpush.bf16.msra.mxu0 %v2608_v34  ;;  %v1008_v14 = vpack.c.b16 %v1004_v58, %v1003_v44  ;;  %v1555_v21 = vunpack.c.l.b16 %v1478_v2  ;;  %v2473_v10 = vrot.slane %v2465_v63, 9  ;;  %v2468_v11 = vld [vmem:[%s2730_s6 + $0x28] sm:$0xe] }
  0x69   : > { %2654 = vmatpush.bf16.msra.mxu2 %v2608_v34  ;;  %v2474_v22 = vrot.slane %v2466_v3, 9  ;;  %v1486_v19 = vor.u32 %v1485_v32, %v1482_v24  ;;  %v1505_v43 = vrot.slane %v1503_v35, 5  ;;  %v2277_v44 = vrot.slane %v2269_v53, 9 }
  0x6a   : > { %v1561_v30 = vpack.c.b16 %v1555_v21, %v1554_v20  ;;  %v1680_v7 = vsel %vm2777_vm5, %v2473_v10, %v1679_v62  ;;  %v1140_v58 = vrot.slane %v3045_v33, 5  ;;  %v1144_v61 = vrot.slane %v3048_v39, 5  ;;  %v2590_v62 = vld [vmem:[%s2730_s6 + $0x34] sm:$0xf0] }
  0x6b   : > { %529 = vmatmul.bf16.gmra.mxu1 %v2036_v18  ;;  %1079 = vmatmul.bf16.gmra.mxu0 %v1007_v1  ;;  %v2589_v18 = vld [vmem:[%s2730_s6 + $0x24] sm:$0xf0]  ;;  %v1497_v1 = vshll.u32 %v2411_v6, 16  ;;  %v1684_v56 = vsel %vm2777_vm5, %v2474_v22, %v1683_v16  ;;  %v1726_v37 = vunpack.c.l.b16 %v1680_v7  ;;  %v1487_v40 = vrot.slane %v1486_v19, 4  ;;  %v3204_v16 = vld [vmem:[%s2730_s6 + $0x44] sm:$0x1] }
  0x6c   : > { %v2360_v26 = vor.u32 %v2589_v18, %v2359_v17  ;;  %v1727_v38 = vunpack.c.l.b16 %v1684_v56  ;;  %v1508_v63 = vshrl.u32 %v2413_v55, 16  ;;  %v1511_v45 = vshll.u32 %v2413_v55, 16  ;;  %v3207_v17 = vld [vmem:[%s2730_s6 + $0x4c] sm:$0x1] }
  0x6d   : > { %1624 = vmatmul.bf16.vlgmr.msrb.gmra.mxu3 %v1560_v31  ;;  %v1499_v25 = vrot.slane %v1497_v1, 5  ;;  %v1489_v31 = vshll.u32 %v3174_v29, 16  ;;  %v1522_v0 = vshrl.u32 %v2415_v15, 16  ;;  %v1525_v46 = vshll.u32 %v2415_v15, 16 }
  0x6e   : > { %1378 = vmatmul.bf16.vlgmr.msrb.gmra.mxu2 %v2356_v36  ;;  %v1496_v36 = vrot.slane %v1494_v5, 4  ;;  %v1734_v48 = vpack.c.b16 %v1727_v38, %v1726_v37  ;;  %v1141_v6 = vsel %vm2777_vm5, %v2277_v44, %v1140_v58  ;;  %v1145_v33 = vsel %vm2777_vm5, %v2278_v59, %v1144_v61  ;;  %v2271_v38 = vld [vmem:[%s2730_s6 + $0x38] sm:$0xe] }
  0x6f   : > { %v1491_v41 = vrot.slane %v1489_v31, 5  ;;  %v1175_v13 = vunpack.c.l.b16 %v1141_v6  ;;  %v1176_v39 = vunpack.c.l.b16 %v1145_v33  ;;  %v1510_v5 = vrot.slane %v1508_v63, 4  ;;  %v2470_v61 = vld [vmem:[%s2730_s6 + $0x38] sm:$0xe]  ;;  %v2472_v63 = vld [vmem:[%s2730_s6 + $0x48] sm:$0xe] }
  0x70   : > { %v1500_v34 = vor.u32 %v1499_v25, %v1496_v36  ;;  %v1524_v18 = vrot.slane %v1522_v0, 4  ;;  %v1527_v1 = vrot.slane %v1525_v46, 5  ;;  %v2475_v20 = vrot.slane %v2467_v4, 9 }
  0x71   : > { %v1492_v51 = vsel %vm2768_vm4, %v1487_v40, %v1491_v41  ;;  %v3209_v21 = vpack.c.b16 %v1176_v39, %v1175_v13  ;;  %v1687_v22 = vrot.slane %v3134_v12, 5  ;;  %v2476_v24 = vrot.slane %v2468_v11, 9  ;;  %v2272_v40 = vld [vmem:[%s2730_s6 + $0x40] sm:$0xe] }
  0x72   : > { %v1501_v27 = vrot.slane %v1500_v34, 4  ;;  %v1556_v2 = vunpack.c.l.b16 %v1492_v51  ;;  %v1691_v32 = vrot.slane %v3137_v23, 5  ;;  %v1517_v25 = vshll.u32 %v3204_v16, 16  ;;  %v2591_v51 = vld [vmem:[%s2730_s6 + $0x44] sm:$0xf0] }
  0x73   : > { %v1688_v7 = vsel %vm2777_vm5, %v2475_v20, %v1687_v22  ;;  %v2279_v41 = vrot.slane %v2271_v38, 9  ;;  %v1695_v0 = vrot.slane %v3174_v29, 5  ;;  %v2478_v46 = vrot.slane %v2470_v61, 9 }
  0x74   : > { %v1506_v52 = vsel %vm2768_vm4, %v1501_v27, %v1505_v43  ;;  %v1692_v12 = vsel %vm2777_vm5, %v2476_v24, %v1691_v32  ;;  %v1519_v23 = vrot.slane %v1517_v25, 5  ;;  %v1728_v31 = vunpack.c.l.b16 %v1688_v7 }
  0x75   : > { %v1557_v3 = vunpack.c.l.b16 %v1506_v52  ;;  %v1729_v34 = vunpack.c.l.b16 %v1692_v12  ;;  %v1148_v27 = vrot.slane %v3104_v42, 5  ;;  %v2280_v43 = vrot.slane %v2272_v40, 9  ;;  %v2469_v42 = vld [vmem:[%s2730_s6 + $0x30] sm:$0xe] }
  0x76   : > { %v1707_v4 = vrot.slane %v3207_v17, 5  ;;  %v2480_v33 = vrot.slane %v2472_v63, 9 }
  0x77   : > { %v1562_v10 = vpack.c.b16 %v1557_v3, %v1556_v2  ;;  %v1735_v52 = vpack.c.b16 %v1729_v34, %v1728_v31  ;;  %v1149_v53 = vsel %vm2777_vm5, %v2279_v41, %v1148_v27  ;;  %v1699_v2 = vrot.slane %v3177_v47, 5 }
  0x78   : > { %v1177_v44 = vunpack.c.l.b16 %v1149_v53  ;;  %v1703_v3 = vrot.slane %v3204_v16, 5  ;;  %v1708_v29 = vsel %vm2777_vm5, %v2480_v33, %v1707_v4 }
  0x7b   : > { %534 = vmatmul.bf16.gmra.mxu1 %v2040_v28  ;;  %1084 = vmatmul.bf16.gmra.mxu0 %v1008_v14  ;;  %v1513_v28 = vrot.slane %v1511_v45, 5  ;;  %v2364_v14 = vor.u32 %v2590_v62, %v2363_v50  ;;  %v2367_v50 = vld [vmem:[%s2730_s6 + $0x40] sm:$0xf]  ;;  %v2477_v45 = vrot.slane %v2469_v42, 9 }
  0x7c   : > { %v2368_v59 = vor.u32 %v2591_v51, %v2367_v50  ;;  %v2471_v62 = vld [vmem:[%s2730_s6 + $0x40] sm:$0xe]  ;;  %s2531_s6 = sshll.u32 %s3314_s13, 5 }
  0x7d   : > { %1629 = vmatmul.bf16.gmra.mxu3 %v1561_v30  ;;  %v1514_v36 = vor.u32 %v1513_v28, %v1510_v5  ;;  %v1531_v30 = vshll.u32 %v3207_v17, 16  ;;  %v2479_v6 = vrot.slane %v2471_v62, 9  ;;  %v1696_v11 = vsel %vm2777_vm5, %v2477_v45, %v1695_v0  ;;  %s3281_s19 = scalar_lea.vmem %s3307_s2, %s2531_s6 }
  0x7e   : > { %1383 = vmatmul.bf16.gmra.mxu2 %v2360_v26  ;;  %v1528_v26 = vor.u32 %v1527_v1, %v1524_v18  ;;  %v1730_v47 = vunpack.c.l.b16 %v1696_v11  ;;  %v1733_v28 = vunpack.c.l.b16 %v1708_v29 }
  0x7f   : > { %v1533_v19 = vrot.slane %v1531_v30, 5  ;;  %v1704_v13 = vsel %vm2777_vm5, %v2479_v6, %v1703_v3 }
  0x80   : > { %v1529_v56 = vrot.slane %v1528_v26, 4  ;;  %v1732_v5 = vunpack.c.l.b16 %v1704_v13 }
  0x82   : > { %v1534_v37 = vsel %vm2768_vm4, %v1529_v56, %v1533_v19  ;;  %v1737_v18 = vpack.c.b16 %v1733_v28, %v1732_v5 }
  0x83   : > { %v1559_v55 = vunpack.c.l.b16 %v1534_v37 }
  0x8b   : > { %1243 = vmatmul.bf16.vlgmr.msra.gmra.mxu1 %v3128_v8  ;;  %1798 = vmatmul.bf16.vlgmr.msra.gmra.mxu0 %v1734_v48  ;;  %v1515_v8 = vrot.slane %v1514_v36, 4  ;;  %v1152_v48 = vrot.slane %v3117_v60, 5 }
  0x8d   : > { %1634 = vmatmul.bf16.gmra.mxu3 %v1562_v10  ;;  %v1520_v35 = vsel %vm2768_vm4, %v1515_v8, %v1519_v23  ;;  %v1153_v49 = vsel %vm2777_vm5, %v2280_v43, %v1152_v48 }
  0x8e   : > { %1388 = vmatmul.bf16.gmra.mxu2 %v2364_v14  ;;  %v1558_v54 = vunpack.c.l.b16 %v1520_v35  ;;  %v1178_v58 = vunpack.c.l.b16 %v1153_v49 }
  0x90   : > { %v1182_v15 = vpack.c.b16 %v1178_v58, %v1177_v44  ;;  %v1563_v60 = vpack.c.b16 %v1559_v55, %v1558_v54 }
  0x9b   : > { %1248 = vmatmul.bf16.gmra.mxu1 %v3168_v9  ;;  %1803 = vmatmul.bf16.gmra.mxu0 %v1735_v52  ;;  %v1700_v9 = vsel %vm2777_vm5, %v2478_v46, %v1699_v2 }
  0x9c   : > { %v1731_v39 = vunpack.c.l.b16 %v1700_v9 }
  0x9d   : > { %1639 = vmatmul.bf16.gmra.mxu3 %v1563_v60 }
  0x9e   : > { %1393 = vmatmul.bf16.gmra.mxu2 %v2368_v59  ;;  %v1736_v14 = vpack.c.b16 %v1731_v39, %v1730_v47 }
  0xa8   : > { %v429_v16 = vpop.f32.mrf.mxu1  ;;  %v419_v17 = vpop.f32.mrf.mxu0 }
  0xab   : > { %1253 = vmatmul.bf16.gmra.mxu1 %v3209_v21  ;;  %1808 = vmatmul.bf16.gmra.mxu0 %v1736_v14 }
  0xae   : > { %1813 = vmatmul.bf16.vlgmr.msra.gmra.mxu2 %v1737_v18 }
  0xb0   : > { %v431_v20 = vpop.f32.mrf.mxu1  ;;  %v421_v10 = vpop.f32.mrf.mxu0 }
  0xb1   : > { %v689_v1 = vpop.f32.mrf.mxu2  ;;  %v824_v22 = vpop.f32.mrf.mxu3 }
  0xb8   : > { %v434_v32 = vpop.f32.mrf.mxu1  ;;  %v424_v57 = vpop.f32.mrf.mxu0 }
  0xb9   : > { %v691_v24 = vpop.f32.mrf.mxu2  ;;  %v3252_v36 = vpop.f32.mrf.mxu3 }
  0xbb   : > { %1258 = vmatmul.bf16.gmra.mxu1 %v1182_v15 }
  0xc0   : > { %v436_v26 = vpop.f32.mrf.mxu1  ;;  %v426_v30 = vpop.f32.mrf.mxu0 }
  0xc1   : > { %v694_v25 = vpop.f32.mrf.mxu2  ;;  %v829_v7 = vpop.f32.mrf.mxu3 }
  0xc8   : > { %v520_v8 = vpop.f32.mrf.mxu1  ;;  %v1070_v23 = vpop.f32.mrf.mxu0 }
  0xc9   : > { %v696_v12 = vpop.f32.mrf.mxu2  ;;  %v521_v21 = vadd.f32 %v520_v8, %v419_v17  ;;  %v3254_v19 = vpop.f32.mrf.mxu3 }
  0xcb   : > { %v709_v56 = vadd.f32 %v689_v1, %v521_v21 }
  0xcd   : > { %v844_v31 = vadd.f32 %v824_v22, %v709_v56 }
  0xcf   : > { %v1090_v34 = vadd.f32 %v1070_v23, %v844_v31 }
  0xd0   : > { %v522_v37 = vpop.f32.mrf.mxu1  ;;  %v1072_v38 = vpop.f32.mrf.mxu0 }
  0xd1   : > { %v699_v35 = vpop.f32.mrf.mxu2  ;;  %v523_v40 = vadd.f32 %v522_v37, %v421_v10  ;;  %v834_v27 = vpop.f32.mrf.mxu3 }
  0xd3   : > { %v710_v41 = vadd.f32 %v691_v24, %v523_v40 }
  0xd8   : > { %v525_v48 = vpop.f32.mrf.mxu1  ;;  %v1075_v50 = vpop.f32.mrf.mxu0 }
  0xd9   : > { %v701_v43 = vpop.f32.mrf.mxu2  ;;  %v526_v51 = vadd.f32 %v525_v48, %v424_v57  ;;  %v3256_v55 = vpop.f32.mrf.mxu3  ;;  %v845_v57 = vadd.f32 %v3252_v36, %v710_v41 }
  0xdb   : > { %v711_v52 = vadd.f32 %v694_v25, %v526_v51 }
  0xdd   : > { %v846_v53 = vadd.f32 %v829_v7, %v711_v52 }
  0xdf   : > { %v1092_v49 = vadd.f32 %v1075_v50, %v846_v53 }
  0xe0   : > { %v527_v44 = vpop.f32.mrf.mxu1  ;;  %v1077_v58 = vpop.f32.mrf.mxu0 }
  0xe1   : > { %v704_v54 = vpop.f32.mrf.mxu2  ;;  %v528_v59 = vadd.f32 %v527_v44, %v426_v30  ;;  %v3258_v60 = vpop.f32.mrf.mxu3 }
  0xe3   : > { %v712_v42 = vadd.f32 %v696_v12, %v528_v59 }
  0xe8   : > { %v530_v15 = vpop.f32.mrf.mxu1  ;;  %v1080_v62 = vpop.f32.mrf.mxu0 }
  0xe9   : > { %v706_v61 = vpop.f32.mrf.mxu2  ;;  %v531_v63 = vadd.f32 %v530_v15, %v429_v16  ;;  %v3266_v11 = vpop.f32.mrf.mxu3 }
  0xeb   : > { %v713_v45 = vadd.f32 %v699_v35, %v531_v63 }
  0xed   : > { %v848_v0 = vadd.f32 %v834_v27, %v713_v45 }
  0xef   : > { %v3260_v46 = vadd.f32 %v1080_v62, %v848_v0 }
  0xf0   : > { %v532_v3 = vpop.f32.mrf.mxu1  ;;  %v3262_v4 = vpop.f32.mrf.mxu0 }
  0xf1   : > { %v1379_v2 = vpop.f32.mrf.mxu2  ;;  %v533_v6 = vadd.f32 %v532_v3, %v431_v20  ;;  %v1625_v5 = vpop.f32.mrf.mxu3 }
  0xf3   : > { %v3264_v33 = vadd.f32 %v701_v43, %v533_v6  ;;  %v847_v43 = vadd.f32 %v3254_v19, %v712_v42 }
  0xf8   : > { %v535_v13 = vpop.f32.mrf.mxu1  ;;  %v3268_v29 = vpop.f32.mrf.mxu0 }
  0xf9   : > { %v1381_v9 = vpop.f32.mrf.mxu2  ;;  %v536_v47 = vadd.f32 %v535_v13, %v434_v32  ;;  %v1627_v1 = vpop.f32.mrf.mxu3  ;;  %v1091_v32 = vadd.f32 %v1072_v38, %v845_v57 }
  0xfb   : > { %v3270_v39 = vadd.f32 %v704_v54, %v536_v47  ;;  %v1093_v54 = vadd.f32 %v1077_v58, %v847_v43 }
 0x100   : > { %v537_v14 = vpop.f32.mrf.mxu1  ;;  %v3272_v16 = vpop.f32.mrf.mxu0 }
 0x101   : > { %v1384_v28 = vpop.f32.mrf.mxu2  ;;  %v538_v17 = vadd.f32 %v537_v14, %v436_v26  ;;  %v1630_v23 = vpop.f32.mrf.mxu3 }
 0x103   : > { %v3274_v18 = vadd.f32 %v706_v61, %v538_v17 }
 0x108   : > { %v1244_v20 = vpop.f32.mrf.mxu1  ;;  %v1799_v10 = vpop.f32.mrf.mxu0 }
 0x109   : > { %v1264_v22 = vadd.f32 %v1244_v20, %v1090_v34  ;;  %v1386_v24 = vpop.f32.mrf.mxu2  ;;  %v1632_v51 = vpop.f32.mrf.mxu3 }
 0x10b   : > { %v1399_v25 = vadd.f32 %v1379_v2, %v1264_v22 }
 0x10d   : > { %v1645_v30 = vadd.f32 %v1625_v5, %v1399_v25  ;;  %v849_v5 = vadd.f32 %v3256_v55, %v3264_v33 }
 0x10f   : > { %v1819_v56 = vadd.f32 %v1799_v10, %v1645_v30 }
 0x110   : > { %v1246_v7 = vpop.f32.mrf.mxu1  ;;  %v1801_v12 = vpop.f32.mrf.mxu0 }
 0x111   : > { %v1265_v8 = vadd.f32 %v1246_v7, %v1091_v32  ;;  %v1389_v26 = vpop.f32.mrf.mxu2  ;;  %v1856_v37 = vmul.f32 %v1819_v56, %v1819_v56 }
 0x113   : > { %v1400_v21 = vadd.f32 %v1381_v9, %v1265_v8 }
 0x115   : > { %v1646_v31 = vadd.f32 %v1627_v1, %v1400_v21  ;;  %v1095_v1 = vadd.f32 %v3262_v4, %v849_v5 }
 0x117   : > { %v1820_v35 = vadd.f32 %v1801_v12, %v1646_v31 }
 0x118   : > { %v1249_v36 = vpop.f32.mrf.mxu1  ;;  %v1804_v34 = vpop.f32.mrf.mxu0 }
 0x119   : > { %v2619_v38 = vpack.c.bf16 %v1820_v35, %v1819_v56  ;;  %v1843_v40 = vadd.f32 %v1820_v35, %v1819_v56  ;;  %v1857_v41 = vmul.f32 %v1820_v35, %v1820_v35  ;;  %v1266_v27 = vadd.f32 %v1249_v36, %v1092_v49  ;;  %v1391_v53 = vpop.f32.mrf.mxu2  ;;  %v1635_v49 = vpop.f32.mrf.mxu3 }
 0x11a   : > { %v851_v35 = vadd.f32 %v3266_v11, %v3274_v18 }
 0x11b   : > { %2620 = vst [vmem:[%s3281_s19] sm:$0xff] %v2619_v38   ;;  %v1864_v48 = vadd.f32 %v1857_v41, %v1856_v37  ;;  %v1401_v50 = vadd.f32 %v1384_v28, %v1266_v27 }
 0x11d   : > { %v1647_v52 = vadd.f32 %v1630_v23, %v1401_v50 }
 0x11f   : > { %v1821_v44 = vadd.f32 %v1804_v34, %v1647_v52  ;;  %v1097_v34 = vadd.f32 %v3272_v16, %v851_v35 }
 0x120   : > { %v1251_v59 = vpop.f32.mrf.mxu1  ;;  %v1806_v61 = vpop.f32.mrf.mxu0 }
 0x121   : > { %v1844_v15 = vadd.f32 %v1843_v40, %v1821_v44  ;;  %v1858_v62 = vmul.f32 %v1821_v44, %v1821_v44  ;;  %v1267_v63 = vadd.f32 %v1251_v59, %v1093_v54  ;;  %v1394_v19 = vpop.f32.mrf.mxu2  ;;  %v1637_v10 = vpop.f32.mrf.mxu3 }
 0x123   : > { %v1865_v45 = vadd.f32 %v1864_v48, %v1858_v62  ;;  %v1402_v0 = vadd.f32 %v1386_v24, %v1267_v63 }
 0x125   : > { %v1648_v2 = vadd.f32 %v1632_v51, %v1402_v0 }
 0x127   : > { %v1822_v3 = vadd.f32 %v1806_v61, %v1648_v2 }
 0x128   : > { %v1254_v42 = vpop.f32.mrf.mxu1  ;;  %v1809_v58 = vpop.f32.mrf.mxu0 }
 0x129   : > { %v2624_v6 = vpack.c.bf16 %v1822_v3, %v1821_v44  ;;  %v1845_v9 = vadd.f32 %v1844_v15, %v1822_v3  ;;  %v1859_v13 = vmul.f32 %v1822_v3, %v1822_v3  ;;  %v1268_v47 = vadd.f32 %v1254_v42, %v3260_v46  ;;  %v1396_v32 = vpop.f32.mrf.mxu2  ;;  %v1640_v31 = vpop.f32.mrf.mxu3 }
 0x12a   : > { %v850_v46 = vadd.f32 %v3258_v60, %v3270_v39 }
 0x12b   : > { %2636 = vst [vmem:[%s3281_s19 + $0x8] sm:$0xff] %v2624_v6   ;;  %v1866_v28 = vadd.f32 %v1865_v45, %v1859_v13  ;;  %v1403_v14 = vadd.f32 %v1389_v26, %v1268_v47 }
 0x12c   : > { %v1096_v12 = vadd.f32 %v3268_v29, %v850_v46 }
 0x12d   : > { %v1649_v17 = vadd.f32 %v1635_v49, %v1403_v14 }
 0x12f   : > { %v1823_v20 = vadd.f32 %v1809_v58, %v1649_v17 }
 0x130   : > { %v1256_v22 = vpop.f32.mrf.mxu1  ;;  %v1811_v55 = vpop.f32.mrf.mxu0 }
 0x131   : > { %v1846_v24 = vadd.f32 %v1845_v9, %v1823_v20  ;;  %v1860_v57 = vmul.f32 %v1823_v20, %v1823_v20  ;;  %v1269_v25 = vadd.f32 %v1256_v22, %v1095_v1  ;;  %v1814_v60 = vpop.f32.mrf.mxu2  ;;  %v1642_v50 = vpop.f32.mrf.mxu3 }
 0x133   : > { %v1867_v30 = vadd.f32 %v1866_v28, %v1860_v57  ;;  %v1404_v7 = vadd.f32 %v1391_v53, %v1269_v25 }
 0x135   : > { %v1650_v33 = vadd.f32 %v1637_v10, %v1404_v7 }
 0x137   : > { %v1824_v8 = vadd.f32 %v1811_v55, %v1650_v33 }
 0x138   : > { %v1259_v23 = vpop.f32.mrf.mxu1 }
 0x139   : > { %v2629_v4 = vpack.c.bf16 %v1824_v8, %v1823_v20  ;;  %v1847_v21 = vadd.f32 %v1846_v24, %v1824_v8  ;;  %v1861_v56 = vmul.f32 %v1824_v8, %v1824_v8  ;;  %v1270_v26 = vadd.f32 %v1259_v23, %v1096_v12  ;;  %v1816_v52 = vpop.f32.mrf.mxu2 }
 0x13b   : > { %2637 = vst [vmem:[%s3281_s19 + $0x10] sm:$0xff] %v2629_v4   ;;  %v1868_v37 = vadd.f32 %v1867_v30, %v1861_v56  ;;  %v1405_v36 = vadd.f32 %v1394_v19, %v1270_v26 }
 0x13d   : > { %v1651_v39 = vadd.f32 %v1640_v31, %v1405_v36 }
 0x13f   : > { %v1825_v38 = vadd.f32 %v1814_v60, %v1651_v39 }
 0x140   : > { %v1261_v29 = vpop.f32.mrf.mxu1 }
 0x141   : > { %v1848_v40 = vadd.f32 %v1847_v21, %v1825_v38  ;;  %v1862_v41 = vmul.f32 %v1825_v38, %v1825_v38  ;;  %v1271_v27 = vadd.f32 %v1261_v29, %v1097_v34 }
 0x143   : > { %v1869_v43 = vadd.f32 %v1868_v37, %v1862_v41  ;;  %v1406_v48 = vadd.f32 %v1396_v32, %v1271_v27 }
 0x145   : > { %v1652_v51 = vadd.f32 %v1642_v50, %v1406_v48 }
 0x147   : > { %v1826_v11 = vadd.f32 %v1816_v52, %v1652_v51 }
 0x149   : > { %v2634_v18 = vpack.c.bf16 %v1826_v11, %v1825_v38  ;;  %v1849_v53 = vadd.f32 %v1848_v40, %v1826_v11  ;;  %v1863_v54 = vmul.f32 %v1826_v11, %v1826_v11 }
 0x14b   : > { %2638 = vst [vmem:[%s3281_s19 + $0x18] sm:$0xff] %v2634_v18   ;;  %v1850_v44 = vrot.slane %v1849_v53, 4  ;;  %v1870_v59 = vadd.f32 %v1869_v43, %v1863_v54 }
 0x14d   : > { %v1851_v61 = vadd.f32 %v1850_v44, %v1849_v53  ;;  %v1871_v16 = vrot.slane %v1870_v59, 4 }
 0x14f   : > { %v1852_v15 = vrot.slane %v1851_v61, 2  ;;  %v1872_v62 = vadd.f32 %v1871_v16, %v1870_v59 }
 0x151   : > { %v1853_v63 = vadd.f32 %v1852_v15, %v1851_v61  ;;  %v1873_v45 = vrot.slane %v1872_v62, 2 }
 0x153   : > { %v1854_v0 = vrot.slane %v1853_v63, 1  ;;  %v1874_v2 = vadd.f32 %v1873_v45, %v1872_v62 }
 0x155   : > { %v1875_v49 = vrot.slane %v1874_v2, 1  ;;  %v1855_v3 = vadd.f32 %v1854_v0, %v1853_v63 }
 0x157   : > { %v1876_v19 = vadd.f32 %v1875_v49, %v1874_v2 }
 0x159   : > { %v1878_v42 = vsel %vm1877_vm6, %v1855_v3, %v1876_v19 }
 0x15a   : > { %v1880_v6 = vsel %vm1879_vm7, %v1878_v42, 0.0 }
 0x15b   : > { %1881 = vst [vmem:[%s181_s23] sm:$0xff] %v1880_v6 }
 0x15c PF: > { %s14_s12 = sadd.s32 1, %s2670_s12  }
 0x15d   : > { %p11_p4 = scmp.ge.s32.totalorder %s14_s12, 4  }
 0x15f   :  { %13 = sbr.rel (!%p11_p4) target bundleno = 1 (0x1), region = 80 }

</bundles_post_ra>
